<compile_context>
chip_gen: v7x
topology: tpu7x:2x2x1
jax: 0.10.0
libtpu: 0.0.40
codegen_flags: <defaults>
</compile_context>

<pallas_src>
import jax
import jax.numpy as jnp
from jax.experimental import pallas as pl
from jax.experimental.pallas import tpu as pltpu


# ----------------------------- Pallas kernel ------------------------------- #

def _basic_block_kernel(x_ref, w1_ref, w2_ref, s1_ref, b1_ref, s2_ref, b2_ref,
                        out_ref, xpad_ref, hpad_ref):
    # x_ref:          (1, H, W, Cin)   unpadded input tile (one batch element)
    # w1_ref/w2_ref:  (9, Cin, Cout)   3x3 taps flattened as kh*3+kw
    # s*/b* refs:     (1, Cout)        folded BatchNorm affine (eval mode)
    # out_ref:        (1, H, W, Cout)
    # xpad_ref:       (H+2, W+2, Cin)  VMEM scratch, zero-padded input
    # hpad_ref:       (H+2, W+2, Cout) VMEM scratch, zero-padded intermediate h
    _, H, W, Cout = out_ref.shape
    Cin = x_ref.shape[-1]

    x = x_ref[...].astype(jnp.float32)            # (1, H, W, Cin), one HBM read

    # --- stage 0: zero-padded copy of the input into VMEM scratch ----------- #
    xpad_ref[...] = jnp.zeros_like(xpad_ref)
    xpad_ref[1:H + 1, 1:W + 1, :] = x.reshape(H, W, Cin)

    # --- stage 1: conv3x3 + BN + ReLU  (result stays in VMEM) --------------- #
    acc1 = jnp.zeros((H * W, Cout), jnp.float32)
    for k in range(9):                            # static unrolled taps
        dy, dx = k // 3, k % 3
        xs = xpad_ref[dy:dy + H, dx:dx + W, :].reshape(H * W, Cin)
        acc1 = acc1 + jnp.dot(xs, w1_ref[k], preferred_element_type=jnp.float32)
    h = jnp.maximum(acc1 * s1_ref[...] + b1_ref[...], 0.0)

    hpad_ref[...] = jnp.zeros_like(hpad_ref)
    hpad_ref[1:H + 1, 1:W + 1, :] = h.reshape(H, W, Cout)

    # --- stage 2: conv3x3 + BN + residual add + ReLU ------------------------ #
    acc2 = jnp.zeros((H * W, Cout), jnp.float32)
    for k in range(9):
        dy, dx = k // 3, k % 3
        hs = hpad_ref[dy:dy + H, dx:dx + W, :].reshape(H * W, Cout)
        acc2 = acc2 + jnp.dot(hs, w2_ref[k], preferred_element_type=jnp.float32)
    y = acc2 * s2_ref[...] + b2_ref[...]
    y = y + x.reshape(H * W, Cout)                # identity add (VMEM-resident x)
    out_ref[...] = jnp.maximum(y, 0.0).reshape(out_ref.shape).astype(out_ref.dtype)


# ------------------------------ JAX wrappers -------------------------------- #

def basic_block_forward_nhwc(x_nhwc, params):
    """Fully-fused BasicBlock (stride=1, no downsample), NHWC in / NHWC out."""
    N, H, W, Cin = x_nhwc.shape
    Cout = params["w1_taps"].shape[-1]

    return pl.pallas_call(
        _basic_block_kernel,
        out_shape=jax.ShapeDtypeStruct((N, H, W, Cout), x_nhwc.dtype),
        grid=(N,),
        in_specs=[
            pl.BlockSpec((1, H, W, Cin), lambda n: (n, 0, 0, 0)),
            pl.BlockSpec((9, Cin, Cout), lambda n: (0, 0, 0)),
            pl.BlockSpec((9, Cout, Cout), lambda n: (0, 0, 0)),
            pl.BlockSpec((1, Cout), lambda n: (0, 0)),
            pl.BlockSpec((1, Cout), lambda n: (0, 0)),
            pl.BlockSpec((1, Cout), lambda n: (0, 0)),
            pl.BlockSpec((1, Cout), lambda n: (0, 0)),
        ],
        out_specs=pl.BlockSpec((1, H, W, Cout), lambda n: (n, 0, 0, 0)),
        scratch_shapes=[
            pltpu.VMEM((H + 2, W + 2, Cin), jnp.float32),
            pltpu.VMEM((H + 2, W + 2, Cout), jnp.float32),
        ],
        compiler_params=pltpu.CompilerParams(
            dimension_semantics=("parallel",),
            vmem_limit_bytes=32 * 1024 * 1024,
        ),
    )(x_nhwc,
      params["w1_taps"], params["w2_taps"],
      params["scale1"].reshape(1, Cout), params["bias1"].reshape(1, Cout),
      params["scale2"].reshape(1, Cout), params["bias2"].reshape(1, Cout))


def basic_block_forward(x_nchw, params):
    """PyTorch-interface wrapper: NCHW in / NCHW out (layout shim only)."""
    x = jnp.transpose(x_nchw, (0, 2, 3, 1))       # NCHW -> NHWC
    out = basic_block_forward_nhwc(x, params)
    return jnp.transpose(out, (0, 3, 1, 2))       # NHWC -> NCHW


# ------------------------------- Reference ---------------------------------- #

def _ref_block(x_nchw, w1_hwio, s1, b1, w2_hwio, s2, b2):
    x = jnp.transpose(x_nchw, (0, 2, 3, 1))
    dn = ("NHWC", "HWIO", "NHWC")
    h = jax.lax.conv_general_dilated(x, w1_hwio, (1, 1), [(1, 1), (1, 1)],
                                     dimension_numbers=dn)
    h = jnp.maximum(h * s1 + b1, 0.0)
    o = jax.lax.conv_general_dilated(h, w2_hwio, (1, 1), [(1, 1), (1, 1)],
                                     dimension_numbers=dn)
    o = jnp.maximum(o * s2 + b2 + x, 0.0)
    return jnp.transpose(o, (0, 3, 1, 2))


# --------------------------------- Main -------------------------------------- #

if __name__ == "__main__":
    N, C, H, W = 2, 4, 16, 16          # in_chn == out_chn, stride=1, no downsample
    eps = 1e-5

    key = jax.random.PRNGKey(0)
    k = jax.random.split(key, 11)
    x = jax.random.normal(k[0], (N, C, H, W), jnp.float32)

    # conv weights, PyTorch layout (Cout, Cin, kH, kW), no bias
    w1 = 0.1 * jax.random.normal(k[1], (C, C, 3, 3), jnp.float32)
    w2 = 0.1 * jax.random.normal(k[2], (C, C, 3, 3), jnp.float32)

    # BatchNorm2d params (eval mode: running stats)
    g1 = 1.0 + 0.1 * jax.random.normal(k[3], (C,), jnp.float32)
    b1 = 0.1 * jax.random.normal(k[4], (C,), jnp.float32)
    m1 = 0.1 * jax.random.normal(k[5], (C,), jnp.float32)
    v1 = 1.0 + 0.1 * jax.random.uniform(k[6], (C,), jnp.float32)
    g2 = 1.0 + 0.1 * jax.random.normal(k[7], (C,), jnp.float32)
    b2 = 0.1 * jax.random.normal(k[8], (C,), jnp.float32)
    m2 = 0.1 * jax.random.normal(k[9], (C,), jnp.float32)
    v2 = 1.0 + 0.1 * jax.random.uniform(k[10], (C,), jnp.float32)

    # Fold BN into per-channel scale/bias
    scale1 = g1 / jnp.sqrt(v1 + eps)
    bias1 = b1 - m1 * scale1
    scale2 = g2 / jnp.sqrt(v2 + eps)
    bias2 = b2 - m2 * scale2

    # Weight layout for the kernel: (kH, kW, Cin, Cout) -> (9, Cin, Cout)
    w1_hwio = jnp.transpose(w1, (2, 3, 1, 0))
    w2_hwio = jnp.transpose(w2, (2, 3, 1, 0))
    params = {
        "w1_taps": w1_hwio.reshape(9, C, C),
        "w2_taps": w2_hwio.reshape(9, C, C),
        "scale1": scale1, "bias1": bias1,
        "scale2": scale2, "bias2": bias2,
    }

    out = jax.block_until_ready(basic_block_forward(x, params))
    ref = jax.block_until_ready(
        _ref_block(x, w1_hwio, scale1, bias1, w2_hwio, scale2, bias2))

    assert out.shape == (N, C, H, W)
    assert jnp.allclose(out, ref, atol=1e-3, rtol=1e-3), \
        f"max abs err {jnp.max(jnp.abs(out - ref))}"
    print("KERNEL_OK")
</pallas_src>

<mosaic_0001>
module attributes {stable_mosaic.version = 11 : i64} {
  func.func @_basic_block_kernel(%arg0: i32, %arg1: memref<1x16x16x4xf32, #tpu.memory_space<vmem>>, %arg2: memref<9x4x4xf32, #tpu.memory_space<vmem>>, %arg3: memref<9x4x4xf32, #tpu.memory_space<vmem>>, %arg4: memref<1x4xf32, #tpu.memory_space<vmem>>, %arg5: memref<1x4xf32, #tpu.memory_space<vmem>>, %arg6: memref<1x4xf32, #tpu.memory_space<vmem>>, %arg7: memref<1x4xf32, #tpu.memory_space<vmem>>, %arg8: memref<1x16x16x4xf32, #tpu.memory_space<vmem>>, %arg9: memref<18x18x4xf32, #tpu.memory_space<vmem>>, %arg10: memref<18x18x4xf32, #tpu.memory_space<vmem>>) attributes {dimension_semantics = [#tpu.dimension_semantics<parallel>], iteration_bounds = array<i64: 2>, scalar_prefetch = 0 : i64, scratch_operands = 2 : i64, tpu.core_type = #tpu.core_type<tc>, window_params = [{transform_indices = @transform_0, window_bounds = array<i64: 1, 16, 16, 4>}, {pipeline_mode = #tpu.pipeline_mode<synchronous>, transform_indices = @transform_1, window_bounds = array<i64: 9, 4, 4>}, {pipeline_mode = #tpu.pipeline_mode<synchronous>, transform_indices = @transform_2, window_bounds = array<i64: 9, 4, 4>}, {pipeline_mode = #tpu.pipeline_mode<synchronous>, transform_indices = @transform_3, window_bounds = array<i64: 1, 4>}, {pipeline_mode = #tpu.pipeline_mode<synchronous>, transform_indices = @transform_4, window_bounds = array<i64: 1, 4>}, {pipeline_mode = #tpu.pipeline_mode<synchronous>, transform_indices = @transform_5, window_bounds = array<i64: 1, 4>}, {pipeline_mode = #tpu.pipeline_mode<synchronous>, transform_indices = @transform_6, window_bounds = array<i64: 1, 4>}, {transform_indices = @transform_7, window_bounds = array<i64: 1, 16, 16, 4>}]} {
    %c0 = arith.constant 0 : index
    %c0_0 = arith.constant 0 : index
    %c0_1 = arith.constant 0 : index
    %c0_2 = arith.constant 0 : index
    %0 = vector.load %arg1[%c0, %c0_0, %c0_1, %c0_2] : memref<1x16x16x4xf32, #tpu.memory_space<vmem>>, vector<1x16x16x4xf32>
    %cst = arith.constant 0.000000e+00 : f32
    %1 = vector.broadcast %cst : f32 to vector<18x18x4xf32>
    %c0_3 = arith.constant 0 : index
    %c0_4 = arith.constant 0 : index
    %c0_5 = arith.constant 0 : index
    %2 = vector.load %arg9[%c0_3, %c0_4, %c0_5] : memref<18x18x4xf32, #tpu.memory_space<vmem>>, vector<18x18x4xf32>
    tpu.vector_store %arg9[%c0_3, %c0_4, %c0_5], %1 {strides = array<i32>} : memref<18x18x4xf32, #tpu.memory_space<vmem>>, vector<18x18x4xf32>,
    %3 = vector.shape_cast %0 : vector<1x16x16x4xf32> to vector<16x16x4xf32>
    %c1 = arith.constant 1 : index
    %c1_6 = arith.constant 1 : index
    %c0_7 = arith.constant 0 : index
    %4 = vector.load %arg9[%c1, %c1_6, %c0_7] : memref<18x18x4xf32, #tpu.memory_space<vmem>>, vector<16x16x4xf32>
    tpu.vector_store %arg9[%c1, %c1_6, %c0_7], %3 {strides = array<i32>} : memref<18x18x4xf32, #tpu.memory_space<vmem>>, vector<16x16x4xf32>,
    %cst_8 = arith.constant 0.000000e+00 : f32
    %5 = vector.broadcast %cst_8 : f32 to vector<256x4xf32>
    %c0_9 = arith.constant 0 : index
    %c0_10 = arith.constant 0 : index
    %c0_11 = arith.constant 0 : index
    %6 = vector.load %arg9[%c0_9, %c0_10, %c0_11] : memref<18x18x4xf32, #tpu.memory_space<vmem>>, vector<16x16x4xf32>
    %7 = vector.shape_cast %6 : vector<16x16x4xf32> to vector<256x4xf32>
    %c0_12 = arith.constant 0 : index
    %c0_13 = arith.constant 0 : index
    %c0_14 = arith.constant 0 : index
    %8 = vector.load %arg2[%c0_12, %c0_13, %c0_14] : memref<9x4x4xf32, #tpu.memory_space<vmem>>, vector<1x4x4xf32>
    %9 = vector.shape_cast %8 : vector<1x4x4xf32> to vector<4x4xf32>
    %cst_15 = arith.constant dense<0.000000e+00> : vector<256x4xf32>
    %10 = tpu.matmul %7, %9, %cst_15 {dimension_numbers = #tpu.dot_dimension_numbers<[1], [0], [0], [1], [0, 0, 1, 1], [], []>} : vector<256x4xf32>, vector<4x4xf32>, vector<256x4xf32> -> vector<256x4xf32>
    %11 = arith.addf %5, %10 : vector<256x4xf32>
    %c0_16 = arith.constant 0 : index
    %c1_17 = arith.constant 1 : index
    %c0_18 = arith.constant 0 : index
    %12 = vector.load %arg9[%c0_16, %c1_17, %c0_18] : memref<18x18x4xf32, #tpu.memory_space<vmem>>, vector<16x16x4xf32>
    %13 = vector.shape_cast %12 : vector<16x16x4xf32> to vector<256x4xf32>
    %c1_19 = arith.constant 1 : index
    %c0_20 = arith.constant 0 : index
    %c0_21 = arith.constant 0 : index
    %14 = vector.load %arg2[%c1_19, %c0_20, %c0_21] : memref<9x4x4xf32, #tpu.memory_space<vmem>>, vector<1x4x4xf32>
    %15 = vector.shape_cast %14 : vector<1x4x4xf32> to vector<4x4xf32>
    %cst_22 = arith.constant dense<0.000000e+00> : vector<256x4xf32>
    %16 = tpu.matmul %13, %15, %cst_22 {dimension_numbers = #tpu.dot_dimension_numbers<[1], [0], [0], [1], [0, 0, 1, 1], [], []>} : vector<256x4xf32>, vector<4x4xf32>, vector<256x4xf32> -> vector<256x4xf32>
    %17 = arith.addf %11, %16 : vector<256x4xf32>
    %c0_23 = arith.constant 0 : index
    %c2 = arith.constant 2 : index
    %c0_24 = arith.constant 0 : index
    %18 = vector.load %arg9[%c0_23, %c2, %c0_24] : memref<18x18x4xf32, #tpu.memory_space<vmem>>, vector<16x16x4xf32>
    %19 = vector.shape_cast %18 : vector<16x16x4xf32> to vector<256x4xf32>
    %c2_25 = arith.constant 2 : index
    %c0_26 = arith.constant 0 : index
    %c0_27 = arith.constant 0 : index
    %20 = vector.load %arg2[%c2_25, %c0_26, %c0_27] : memref<9x4x4xf32, #tpu.memory_space<vmem>>, vector<1x4x4xf32>
    %21 = vector.shape_cast %20 : vector<1x4x4xf32> to vector<4x4xf32>
    %cst_28 = arith.constant dense<0.000000e+00> : vector<256x4xf32>
    %22 = tpu.matmul %19, %21, %cst_28 {dimension_numbers = #tpu.dot_dimension_numbers<[1], [0], [0], [1], [0, 0, 1, 1], [], []>} : vector<256x4xf32>, vector<4x4xf32>, vector<256x4xf32> -> vector<256x4xf32>
    %23 = arith.addf %17, %22 : vector<256x4xf32>
    %c1_29 = arith.constant 1 : index
    %c0_30 = arith.constant 0 : index
    %c0_31 = arith.constant 0 : index
    %24 = vector.load %arg9[%c1_29, %c0_30, %c0_31] : memref<18x18x4xf32, #tpu.memory_space<vmem>>, vector<16x16x4xf32>
    %25 = vector.shape_cast %24 : vector<16x16x4xf32> to vector<256x4xf32>
    %c3 = arith.constant 3 : index
    %c0_32 = arith.constant 0 : index
    %c0_33 = arith.constant 0 : index
    %26 = vector.load %arg2[%c3, %c0_32, %c0_33] : memref<9x4x4xf32, #tpu.memory_space<vmem>>, vector<1x4x4xf32>
    %27 = vector.shape_cast %26 : vector<1x4x4xf32> to vector<4x4xf32>
    %cst_34 = arith.constant dense<0.000000e+00> : vector<256x4xf32>
    %28 = tpu.matmul %25, %27, %cst_34 {dimension_numbers = #tpu.dot_dimension_numbers<[1], [0], [0], [1], [0, 0, 1, 1], [], []>} : vector<256x4xf32>, vector<4x4xf32>, vector<256x4xf32> -> vector<256x4xf32>
    %29 = arith.addf %23, %28 : vector<256x4xf32>
    %c1_35 = arith.constant 1 : index
    %c1_36 = arith.constant 1 : index
    %c0_37 = arith.constant 0 : index
    %30 = vector.load %arg9[%c1_35, %c1_36, %c0_37] : memref<18x18x4xf32, #tpu.memory_space<vmem>>, vector<16x16x4xf32>
    %31 = vector.shape_cast %30 : vector<16x16x4xf32> to vector<256x4xf32>
    %c4 = arith.constant 4 : index
    %c0_38 = arith.constant 0 : index
    %c0_39 = arith.constant 0 : index
    %32 = vector.load %arg2[%c4, %c0_38, %c0_39] : memref<9x4x4xf32, #tpu.memory_space<vmem>>, vector<1x4x4xf32>
    %33 = vector.shape_cast %32 : vector<1x4x4xf32> to vector<4x4xf32>
    %cst_40 = arith.constant dense<0.000000e+00> : vector<256x4xf32>
    %34 = tpu.matmul %31, %33, %cst_40 {dimension_numbers = #tpu.dot_dimension_numbers<[1], [0], [0], [1], [0, 0, 1, 1], [], []>} : vector<256x4xf32>, vector<4x4xf32>, vector<256x4xf32> -> vector<256x4xf32>
    %35 = arith.addf %29, %34 : vector<256x4xf32>
    %c1_41 = arith.constant 1 : index
    %c2_42 = arith.constant 2 : index
    %c0_43 = arith.constant 0 : index
    %36 = vector.load %arg9[%c1_41, %c2_42, %c0_43] : memref<18x18x4xf32, #tpu.memory_space<vmem>>, vector<16x16x4xf32>
    %37 = vector.shape_cast %36 : vector<16x16x4xf32> to vector<256x4xf32>
    %c5 = arith.constant 5 : index
    %c0_44 = arith.constant 0 : index
    %c0_45 = arith.constant 0 : index
    %38 = vector.load %arg2[%c5, %c0_44, %c0_45] : memref<9x4x4xf32, #tpu.memory_space<vmem>>, vector<1x4x4xf32>
    %39 = vector.shape_cast %38 : vector<1x4x4xf32> to vector<4x4xf32>
    %cst_46 = arith.constant dense<0.000000e+00> : vector<256x4xf32>
    %40 = tpu.matmul %37, %39, %cst_46 {dimension_numbers = #tpu.dot_dimension_numbers<[1], [0], [0], [1], [0, 0, 1, 1], [], []>} : vector<256x4xf32>, vector<4x4xf32>, vector<256x4xf32> -> vector<256x4xf32>
    %41 = arith.addf %35, %40 : vector<256x4xf32>
    %c2_47 = arith.constant 2 : index
    %c0_48 = arith.constant 0 : index
    %c0_49 = arith.constant 0 : index
    %42 = vector.load %arg9[%c2_47, %c0_48, %c0_49] : memref<18x18x4xf32, #tpu.memory_space<vmem>>, vector<16x16x4xf32>
    %43 = vector.shape_cast %42 : vector<16x16x4xf32> to vector<256x4xf32>
    %c6 = arith.constant 6 : index
    %c0_50 = arith.constant 0 : index
    %c0_51 = arith.constant 0 : index
    %44 = vector.load %arg2[%c6, %c0_50, %c0_51] : memref<9x4x4xf32, #tpu.memory_space<vmem>>, vector<1x4x4xf32>
    %45 = vector.shape_cast %44 : vector<1x4x4xf32> to vector<4x4xf32>
    %cst_52 = arith.constant dense<0.000000e+00> : vector<256x4xf32>
    %46 = tpu.matmul %43, %45, %cst_52 {dimension_numbers = #tpu.dot_dimension_numbers<[1], [0], [0], [1], [0, 0, 1, 1], [], []>} : vector<256x4xf32>, vector<4x4xf32>, vector<256x4xf32> -> vector<256x4xf32>
    %47 = arith.addf %41, %46 : vector<256x4xf32>
    %c2_53 = arith.constant 2 : index
    %c1_54 = arith.constant 1 : index
    %c0_55 = arith.constant 0 : index
    %48 = vector.load %arg9[%c2_53, %c1_54, %c0_55] : memref<18x18x4xf32, #tpu.memory_space<vmem>>, vector<16x16x4xf32>
    %49 = vector.shape_cast %48 : vector<16x16x4xf32> to vector<256x4xf32>
    %c7 = arith.constant 7 : index
    %c0_56 = arith.constant 0 : index
    %c0_57 = arith.constant 0 : index
    %50 = vector.load %arg2[%c7, %c0_56, %c0_57] : memref<9x4x4xf32, #tpu.memory_space<vmem>>, vector<1x4x4xf32>
    %51 = vector.shape_cast %50 : vector<1x4x4xf32> to vector<4x4xf32>
    %cst_58 = arith.constant dense<0.000000e+00> : vector<256x4xf32>
    %52 = tpu.matmul %49, %51, %cst_58 {dimension_numbers = #tpu.dot_dimension_numbers<[1], [0], [0], [1], [0, 0, 1, 1], [], []>} : vector<256x4xf32>, vector<4x4xf32>, vector<256x4xf32> -> vector<256x4xf32>
    %53 = arith.addf %47, %52 : vector<256x4xf32>
    %c2_59 = arith.constant 2 : index
    %c2_60 = arith.constant 2 : index
    %c0_61 = arith.constant 0 : index
    %54 = vector.load %arg9[%c2_59, %c2_60, %c0_61] : memref<18x18x4xf32, #tpu.memory_space<vmem>>, vector<16x16x4xf32>
    %55 = vector.shape_cast %54 : vector<16x16x4xf32> to vector<256x4xf32>
    %c8 = arith.constant 8 : index
    %c0_62 = arith.constant 0 : index
    %c0_63 = arith.constant 0 : index
    %56 = vector.load %arg2[%c8, %c0_62, %c0_63] : memref<9x4x4xf32, #tpu.memory_space<vmem>>, vector<1x4x4xf32>
    %57 = vector.shape_cast %56 : vector<1x4x4xf32> to vector<4x4xf32>
    %cst_64 = arith.constant dense<0.000000e+00> : vector<256x4xf32>
    %58 = tpu.matmul %55, %57, %cst_64 {dimension_numbers = #tpu.dot_dimension_numbers<[1], [0], [0], [1], [0, 0, 1, 1], [], []>} : vector<256x4xf32>, vector<4x4xf32>, vector<256x4xf32> -> vector<256x4xf32>
    %59 = arith.addf %53, %58 : vector<256x4xf32>
    %c0_65 = arith.constant 0 : index
    %c0_66 = arith.constant 0 : index
    %60 = vector.load %arg4[%c0_65, %c0_66] : memref<1x4xf32, #tpu.memory_space<vmem>>, vector<1x4xf32>
    %61 = vector.broadcast %60 : vector<1x4xf32> to vector<256x4xf32>
    %62 = arith.mulf %59, %61 : vector<256x4xf32>
    %c0_67 = arith.constant 0 : index
    %c0_68 = arith.constant 0 : index
    %63 = vector.load %arg5[%c0_67, %c0_68] : memref<1x4xf32, #tpu.memory_space<vmem>>, vector<1x4xf32>
    %64 = vector.broadcast %63 : vector<1x4xf32> to vector<256x4xf32>
    %65 = arith.addf %62, %64 : vector<256x4xf32>
    %cst_69 = arith.constant 0.000000e+00 : f32
    %66 = vector.broadcast %cst_69 : f32 to vector<256x4xf32>
    %67 = arith.maximumf %65, %66 : vector<256x4xf32>
    %cst_70 = arith.constant 0.000000e+00 : f32
    %68 = vector.broadcast %cst_70 : f32 to vector<18x18x4xf32>
    %c0_71 = arith.constant 0 : index
    %c0_72 = arith.constant 0 : index
    %c0_73 = arith.constant 0 : index
    %69 = vector.load %arg10[%c0_71, %c0_72, %c0_73] : memref<18x18x4xf32, #tpu.memory_space<vmem>>, vector<18x18x4xf32>
    tpu.vector_store %arg10[%c0_71, %c0_72, %c0_73], %68 {strides = array<i32>} : memref<18x18x4xf32, #tpu.memory_space<vmem>>, vector<18x18x4xf32>,
    %70 = vector.shape_cast %67 : vector<256x4xf32> to vector<16x16x4xf32>
    %c1_74 = arith.constant 1 : index
    %c1_75 = arith.constant 1 : index
    %c0_76 = arith.constant 0 : index
    %71 = vector.load %arg10[%c1_74, %c1_75, %c0_76] : memref<18x18x4xf32, #tpu.memory_space<vmem>>, vector<16x16x4xf32>
    tpu.vector_store %arg10[%c1_74, %c1_75, %c0_76], %70 {strides = array<i32>} : memref<18x18x4xf32, #tpu.memory_space<vmem>>, vector<16x16x4xf32>,
    %cst_77 = arith.constant 0.000000e+00 : f32
    %72 = vector.broadcast %cst_77 : f32 to vector<256x4xf32>
    %c0_78 = arith.constant 0 : index
    %c0_79 = arith.constant 0 : index
    %c0_80 = arith.constant 0 : index
    %73 = vector.load %arg10[%c0_78, %c0_79, %c0_80] : memref<18x18x4xf32, #tpu.memory_space<vmem>>, vector<16x16x4xf32>
    %74 = vector.shape_cast %73 : vector<16x16x4xf32> to vector<256x4xf32>
    %c0_81 = arith.constant 0 : index
    %c0_82 = arith.constant 0 : index
    %c0_83 = arith.constant 0 : index
    %75 = vector.load %arg3[%c0_81, %c0_82, %c0_83] : memref<9x4x4xf32, #tpu.memory_space<vmem>>, vector<1x4x4xf32>
    %76 = vector.shape_cast %75 : vector<1x4x4xf32> to vector<4x4xf32>
    %cst_84 = arith.constant dense<0.000000e+00> : vector<256x4xf32>
    %77 = tpu.matmul %74, %76, %cst_84 {dimension_numbers = #tpu.dot_dimension_numbers<[1], [0], [0], [1], [0, 0, 1, 1], [], []>} : vector<256x4xf32>, vector<4x4xf32>, vector<256x4xf32> -> vector<256x4xf32>
    %78 = arith.addf %72, %77 : vector<256x4xf32>
    %c0_85 = arith.constant 0 : index
    %c1_86 = arith.constant 1 : index
    %c0_87 = arith.constant 0 : index
    %79 = vector.load %arg10[%c0_85, %c1_86, %c0_87] : memref<18x18x4xf32, #tpu.memory_space<vmem>>, vector<16x16x4xf32>
    %80 = vector.shape_cast %79 : vector<16x16x4xf32> to vector<256x4xf32>
    %c1_88 = arith.constant 1 : index
    %c0_89 = arith.constant 0 : index
    %c0_90 = arith.constant 0 : index
    %81 = vector.load %arg3[%c1_88, %c0_89, %c0_90] : memref<9x4x4xf32, #tpu.memory_space<vmem>>, vector<1x4x4xf32>
    %82 = vector.shape_cast %81 : vector<1x4x4xf32> to vector<4x4xf32>
    %cst_91 = arith.constant dense<0.000000e+00> : vector<256x4xf32>
    %83 = tpu.matmul %80, %82, %cst_91 {dimension_numbers = #tpu.dot_dimension_numbers<[1], [0], [0], [1], [0, 0, 1, 1], [], []>} : vector<256x4xf32>, vector<4x4xf32>, vector<256x4xf32> -> vector<256x4xf32>
    %84 = arith.addf %78, %83 : vector<256x4xf32>
    %c0_92 = arith.constant 0 : index
    %c2_93 = arith.constant 2 : index
    %c0_94 = arith.constant 0 : index
    %85 = vector.load %arg10[%c0_92, %c2_93, %c0_94] : memref<18x18x4xf32, #tpu.memory_space<vmem>>, vector<16x16x4xf32>
    %86 = vector.shape_cast %85 : vector<16x16x4xf32> to vector<256x4xf32>
    %c2_95 = arith.constant 2 : index
    %c0_96 = arith.constant 0 : index
    %c0_97 = arith.constant 0 : index
    %87 = vector.load %arg3[%c2_95, %c0_96, %c0_97] : memref<9x4x4xf32, #tpu.memory_space<vmem>>, vector<1x4x4xf32>
    %88 = vector.shape_cast %87 : vector<1x4x4xf32> to vector<4x4xf32>
    %cst_98 = arith.constant dense<0.000000e+00> : vector<256x4xf32>
    %89 = tpu.matmul %86, %88, %cst_98 {dimension_numbers = #tpu.dot_dimension_numbers<[1], [0], [0], [1], [0, 0, 1, 1], [], []>} : vector<256x4xf32>, vector<4x4xf32>, vector<256x4xf32> -> vector<256x4xf32>
    %90 = arith.addf %84, %89 : vector<256x4xf32>
    %c1_99 = arith.constant 1 : index
    %c0_100 = arith.constant 0 : index
    %c0_101 = arith.constant 0 : index
    %91 = vector.load %arg10[%c1_99, %c0_100, %c0_101] : memref<18x18x4xf32, #tpu.memory_space<vmem>>, vector<16x16x4xf32>
    %92 = vector.shape_cast %91 : vector<16x16x4xf32> to vector<256x4xf32>
    %c3_102 = arith.constant 3 : index
    %c0_103 = arith.constant 0 : index
    %c0_104 = arith.constant 0 : index
    %93 = vector.load %arg3[%c3_102, %c0_103, %c0_104] : memref<9x4x4xf32, #tpu.memory_space<vmem>>, vector<1x4x4xf32>
    %94 = vector.shape_cast %93 : vector<1x4x4xf32> to vector<4x4xf32>
    %cst_105 = arith.constant dense<0.000000e+00> : vector<256x4xf32>
    %95 = tpu.matmul %92, %94, %cst_105 {dimension_numbers = #tpu.dot_dimension_numbers<[1], [0], [0], [1], [0, 0, 1, 1], [], []>} : vector<256x4xf32>, vector<4x4xf32>, vector<256x4xf32> -> vector<256x4xf32>
    %96 = arith.addf %90, %95 : vector<256x4xf32>
    %c1_106 = arith.constant 1 : index
    %c1_107 = arith.constant 1 : index
    %c0_108 = arith.constant 0 : index
    %97 = vector.load %arg10[%c1_106, %c1_107, %c0_108] : memref<18x18x4xf32, #tpu.memory_space<vmem>>, vector<16x16x4xf32>
    %98 = vector.shape_cast %97 : vector<16x16x4xf32> to vector<256x4xf32>
    %c4_109 = arith.constant 4 : index
    %c0_110 = arith.constant 0 : index
    %c0_111 = arith.constant 0 : index
    %99 = vector.load %arg3[%c4_109, %c0_110, %c0_111] : memref<9x4x4xf32, #tpu.memory_space<vmem>>, vector<1x4x4xf32>
    %100 = vector.shape_cast %99 : vector<1x4x4xf32> to vector<4x4xf32>
    %cst_112 = arith.constant dense<0.000000e+00> : vector<256x4xf32>
    %101 = tpu.matmul %98, %100, %cst_112 {dimension_numbers = #tpu.dot_dimension_numbers<[1], [0], [0], [1], [0, 0, 1, 1], [], []>} : vector<256x4xf32>, vector<4x4xf32>, vector<256x4xf32> -> vector<256x4xf32>
    %102 = arith.addf %96, %101 : vector<256x4xf32>
    %c1_113 = arith.constant 1 : index
    %c2_114 = arith.constant 2 : index
    %c0_115 = arith.constant 0 : index
    %103 = vector.load %arg10[%c1_113, %c2_114, %c0_115] : memref<18x18x4xf32, #tpu.memory_space<vmem>>, vector<16x16x4xf32>
    %104 = vector.shape_cast %103 : vector<16x16x4xf32> to vector<256x4xf32>
    %c5_116 = arith.constant 5 : index
    %c0_117 = arith.constant 0 : index
    %c0_118 = arith.constant 0 : index
    %105 = vector.load %arg3[%c5_116, %c0_117, %c0_118] : memref<9x4x4xf32, #tpu.memory_space<vmem>>, vector<1x4x4xf32>
    %106 = vector.shape_cast %105 : vector<1x4x4xf32> to vector<4x4xf32>
    %cst_119 = arith.constant dense<0.000000e+00> : vector<256x4xf32>
    %107 = tpu.matmul %104, %106, %cst_119 {dimension_numbers = #tpu.dot_dimension_numbers<[1], [0], [0], [1], [0, 0, 1, 1], [], []>} : vector<256x4xf32>, vector<4x4xf32>, vector<256x4xf32> -> vector<256x4xf32>
    %108 = arith.addf %102, %107 : vector<256x4xf32>
    %c2_120 = arith.constant 2 : index
    %c0_121 = arith.constant 0 : index
    %c0_122 = arith.constant 0 : index
    %109 = vector.load %arg10[%c2_120, %c0_121, %c0_122] : memref<18x18x4xf32, #tpu.memory_space<vmem>>, vector<16x16x4xf32>
    %110 = vector.shape_cast %109 : vector<16x16x4xf32> to vector<256x4xf32>
    %c6_123 = arith.constant 6 : index
    %c0_124 = arith.constant 0 : index
    %c0_125 = arith.constant 0 : index
    %111 = vector.load %arg3[%c6_123, %c0_124, %c0_125] : memref<9x4x4xf32, #tpu.memory_space<vmem>>, vector<1x4x4xf32>
    %112 = vector.shape_cast %111 : vector<1x4x4xf32> to vector<4x4xf32>
    %cst_126 = arith.constant dense<0.000000e+00> : vector<256x4xf32>
    %113 = tpu.matmul %110, %112, %cst_126 {dimension_numbers = #tpu.dot_dimension_numbers<[1], [0], [0], [1], [0, 0, 1, 1], [], []>} : vector<256x4xf32>, vector<4x4xf32>, vector<256x4xf32> -> vector<256x4xf32>
    %114 = arith.addf %108, %113 : vector<256x4xf32>
    %c2_127 = arith.constant 2 : index
    %c1_128 = arith.constant 1 : index
    %c0_129 = arith.constant 0 : index
    %115 = vector.load %arg10[%c2_127, %c1_128, %c0_129] : memref<18x18x4xf32, #tpu.memory_space<vmem>>, vector<16x16x4xf32>
    %116 = vector.shape_cast %115 : vector<16x16x4xf32> to vector<256x4xf32>
    %c7_130 = arith.constant 7 : index
    %c0_131 = arith.constant 0 : index
    %c0_132 = arith.constant 0 : index
    %117 = vector.load %arg3[%c7_130, %c0_131, %c0_132] : memref<9x4x4xf32, #tpu.memory_space<vmem>>, vector<1x4x4xf32>
    %118 = vector.shape_cast %117 : vector<1x4x4xf32> to vector<4x4xf32>
    %cst_133 = arith.constant dense<0.000000e+00> : vector<256x4xf32>
    %119 = tpu.matmul %116, %118, %cst_133 {dimension_numbers = #tpu.dot_dimension_numbers<[1], [0], [0], [1], [0, 0, 1, 1], [], []>} : vector<256x4xf32>, vector<4x4xf32>, vector<256x4xf32> -> vector<256x4xf32>
    %120 = arith.addf %114, %119 : vector<256x4xf32>
    %c2_134 = arith.constant 2 : index
    %c2_135 = arith.constant 2 : index
    %c0_136 = arith.constant 0 : index
    %121 = vector.load %arg10[%c2_134, %c2_135, %c0_136] : memref<18x18x4xf32, #tpu.memory_space<vmem>>, vector<16x16x4xf32>
    %122 = vector.shape_cast %121 : vector<16x16x4xf32> to vector<256x4xf32>
    %c8_137 = arith.constant 8 : index
    %c0_138 = arith.constant 0 : index
    %c0_139 = arith.constant 0 : index
    %123 = vector.load %arg3[%c8_137, %c0_138, %c0_139] : memref<9x4x4xf32, #tpu.memory_space<vmem>>, vector<1x4x4xf32>
    %124 = vector.shape_cast %123 : vector<1x4x4xf32> to vector<4x4xf32>
    %cst_140 = arith.constant dense<0.000000e+00> : vector<256x4xf32>
    %125 = tpu.matmul %122, %124, %cst_140 {dimension_numbers = #tpu.dot_dimension_numbers<[1], [0], [0], [1], [0, 0, 1, 1], [], []>} : vector<256x4xf32>, vector<4x4xf32>, vector<256x4xf32> -> vector<256x4xf32>
    %126 = arith.addf %120, %125 : vector<256x4xf32>
    %c0_141 = arith.constant 0 : index
    %c0_142 = arith.constant 0 : index
    %127 = vector.load %arg6[%c0_141, %c0_142] : memref<1x4xf32, #tpu.memory_space<vmem>>, vector<1x4xf32>
    %128 = vector.broadcast %127 : vector<1x4xf32> to vector<256x4xf32>
    %129 = arith.mulf %126, %128 : vector<256x4xf32>
    %c0_143 = arith.constant 0 : index
    %c0_144 = arith.constant 0 : index
    %130 = vector.load %arg7[%c0_143, %c0_144] : memref<1x4xf32, #tpu.memory_space<vmem>>, vector<1x4xf32>
    %131 = vector.broadcast %130 : vector<1x4xf32> to vector<256x4xf32>
    %132 = arith.addf %129, %131 : vector<256x4xf32>
    %133 = vector.shape_cast %0 : vector<1x16x16x4xf32> to vector<256x4xf32>
    %134 = arith.addf %132, %133 : vector<256x4xf32>
    %cst_145 = arith.constant 0.000000e+00 : f32
    %135 = vector.broadcast %cst_145 : f32 to vector<256x4xf32>
    %136 = arith.maximumf %134, %135 : vector<256x4xf32>
    %137 = vector.shape_cast %136 : vector<256x4xf32> to vector<1x16x16x4xf32>
    %c0_146 = arith.constant 0 : index
    %c0_147 = arith.constant 0 : index
    %c0_148 = arith.constant 0 : index
    %c0_149 = arith.constant 0 : index
    %138 = vector.load %arg8[%c0_146, %c0_147, %c0_148, %c0_149] : memref<1x16x16x4xf32, #tpu.memory_space<vmem>>, vector<1x16x16x4xf32>
    tpu.vector_store %arg8[%c0_146, %c0_147, %c0_148, %c0_149], %137 {strides = array<i32>} : memref<1x16x16x4xf32, #tpu.memory_space<vmem>>, vector<1x16x16x4xf32>,
    return
  }
  func.func @transform_0(%arg0: i32) -> (i32, i32, i32, i32) {
    %c0_i32 = arith.constant 0 : i32
    %c0_i32_0 = arith.constant 0 : i32
    %c0_i32_1 = arith.constant 0 : i32
    %c0_i32_2 = arith.constant 0 : i32
    return %arg0, %c0_i32, %c0_i32_0, %c0_i32_1 : i32, i32, i32, i32
  }
  func.func @transform_1(%arg0: i32) -> (i32, i32, i32) {
    %c0_i32 = arith.constant 0 : i32
    %c0_i32_0 = arith.constant 0 : i32
    %c0_i32_1 = arith.constant 0 : i32
    %c0_i32_2 = arith.constant 0 : i32
    return %c0_i32, %c0_i32_0, %c0_i32_1 : i32, i32, i32
  }
  func.func @transform_2(%arg0: i32) -> (i32, i32, i32) {
    %c0_i32 = arith.constant 0 : i32
    %c0_i32_0 = arith.constant 0 : i32
    %c0_i32_1 = arith.constant 0 : i32
    %c0_i32_2 = arith.constant 0 : i32
    return %c0_i32, %c0_i32_0, %c0_i32_1 : i32, i32, i32
  }
  func.func @transform_3(%arg0: i32) -> (i32, i32) {
    %c0_i32 = arith.constant 0 : i32
    %c0_i32_0 = arith.constant 0 : i32
    %c0_i32_1 = arith.constant 0 : i32
    return %c0_i32, %c0_i32_0 : i32, i32
  }
  func.func @transform_4(%arg0: i32) -> (i32, i32) {
    %c0_i32 = arith.constant 0 : i32
    %c0_i32_0 = arith.constant 0 : i32
    %c0_i32_1 = arith.constant 0 : i32
    return %c0_i32, %c0_i32_0 : i32, i32
  }
  func.func @transform_5(%arg0: i32) -> (i32, i32) {
    %c0_i32 = arith.constant 0 : i32
    %c0_i32_0 = arith.constant 0 : i32
    %c0_i32_1 = arith.constant 0 : i32
    return %c0_i32, %c0_i32_0 : i32, i32
  }
  func.func @transform_6(%arg0: i32) -> (i32, i32) {
    %c0_i32 = arith.constant 0 : i32
    %c0_i32_0 = arith.constant 0 : i32
    %c0_i32_1 = arith.constant 0 : i32
    return %c0_i32, %c0_i32_0 : i32, i32
  }
  func.func @transform_7(%arg0: i32) -> (i32, i32, i32, i32) {
    %c0_i32 = arith.constant 0 : i32
    %c0_i32_0 = arith.constant 0 : i32
    %c0_i32_1 = arith.constant 0 : i32
    %c0_i32_2 = arith.constant 0 : i32
    return %arg0, %c0_i32, %c0_i32_0, %c0_i32_1 : i32, i32, i32, i32
  }
}

</mosaic_0001>

<bundles_post_ra>
// kernel: tpu_custom_call.1
= control target key start
LH: loop header
LB: loop body
LE: loop exit
PB: predicated region body
PF: predicated region fallthrough
CT: control target
= control target key end

     0   :  { %s10410_s24 = smov 0   ;;  %s12713_s0 = inlined_call_operand.vmem [shape: f32[2,16,16,4], index: 0, kind: input, shape index: {}]   ;;  %s12714_s1 = inlined_call_operand.vmem [shape: f32[9,4,4], index: 1, kind: input, shape index: {}]   ;;  %s12715_s2 = inlined_call_operand.vmem [shape: f32[9,4,4], index: 2, kind: input, shape index: {}]   ;;  %s12716_s3 = inlined_call_operand.vmem [shape: f32[1,4], index: 3, kind: input, shape index: {}]   ;;  %s12717_s4 = inlined_call_operand.vmem [shape: f32[1,4], index: 4, kind: input, shape index: {}]   ;;  %s12718_s5 = inlined_call_operand.vmem [shape: f32[1,4], index: 5, kind: input, shape index: {}]   ;;  %s12719_s6 = inlined_call_operand.vmem [shape: f32[1,4], index: 6, kind: input, shape index: {}]   ;;  %s12720_s7 = inlined_call_operand.vmem [shape: f32[2,16,16,4], index: 7, kind: output, shape index: {}]  }
   0x1 LB: > { %s7719_s25 = sadd.s32 4294967295, %s10367_s24   ;;  %p7723_p0 = scmp.ge.s32.totalorder %s10367_s24, 1  ;;  %s10367_s24 = sphi %s10410_s24, %s17_s24  }
   0x2   : > { %p237_p1 = scmp.lt.s32.totalorder %s10367_s24, 3 }
   0x4   : > { %p238_p2 = pnand %p7723_p0, %p237_p1 }
   0x6   : > { %241 = sbr.rel (%p238_p2) target bundleno = 1604 (0x644), region = 48 }
   0xd   : > { %v10421_v0 = vld [vmem:[%s12714_s1 + $0x4] sm:$0xf]  ;;  %vm563_vm0 = vcmask 1043456   ;;  %vm311_vm1 = vcmask 31744   ;;  %vm314_vm2 = vcmask 25600   ;;  %v10369_v1 = vmov 0.0  }
   0xe   : > { %8940 = vmatprep.subr.msk.mxu0 %vm563_vm0, %v10421_v0  ;;  %312 = vst.msk [vmem:[#allocation2] sm:$0xff] %vm311_vm1, %v10369_v1  ;;  %313 = vst.msk [vmem:[#allocation2 + $0x8] sm:$0xff] %vm311_vm1, %v10369_v1  ;;  %v10572_v2 = vld [vmem:[%s12714_s1] sm:$0xf]  ;;  %p269_p3 = scmp.lt.s32.totalorder %s7719_s25, 1 }
   0xf   : > { %316 = vst.msk [vmem:[#allocation2 + $0x18] sm:$0xff] %vm311_vm1, %v10369_v1  ;;  %317 = vst.msk [vmem:[#allocation2 + $0x20] sm:$0xff] %vm311_vm1, %v10369_v1  ;;  %8941 = vmatpush3.msk.msra.mxu0 %vm563_vm0, %v10421_v0  ;;  %v10676_v6 = vld [vmem:[%s12714_s1 + $0x8] sm:$0xf] }
  0x10   : > { %319 = vst.msk [vmem:[#allocation2 + $0x30] sm:$0xff] %vm311_vm1, %v10369_v1  ;;  %320 = vst.msk [vmem:[#allocation2 + $0x38] sm:$0xff] %vm311_vm1, %v10369_v1  ;;  %8990 = vmatprep.subr.msk.mxu0 %vm563_vm0, %v10572_v2  ;;  %s13089_s25 = smov (!%p269_p3, %s7719_s25), 1 }
  0x11   : > { %322 = vst.msk [vmem:[#allocation2 + $0x48] sm:$0xff] %vm311_vm1, %v10369_v1  ;;  %323 = vst.msk [vmem:[#allocation2 + $0x50] sm:$0xff] %vm311_vm1, %v10369_v1  ;;  %s8344_s30 = sshll.u32 %s13089_s25, 8 }
  0x12   : > { %325 = vst.msk [vmem:[#allocation2 + $0x60] sm:$0xff] %vm311_vm1, %v10369_v1  ;;  %326 = vst.msk [vmem:[#allocation2 + $0x68] sm:$0xff] %vm311_vm1, %v10369_v1  ;;  %s10662_s10 = scalar_lea.vmem %s12713_s0, %s8344_s30  ;;  %s12554_s13 = scalar_lea.vmem %s12720_s7, %s8344_s30 }
  0x13   : > { %328 = vst.msk [vmem:[#allocation2 + $0x78] sm:$0xff] %vm311_vm1, %v10369_v1  ;;  %329 = vst.msk [vmem:[#allocation2 + $0x80] sm:$0xff] %vm311_vm1, %v10369_v1  ;;  %v10665_v3 = vld [vmem:[%s10662_s10] sm:$0xff]  ;;  %v10668_v4 = vld [vmem:[%s10662_s10 + $0x8] sm:$0xff] }
  0x14   : > { %331 = vst.msk [vmem:[#allocation2 + $0x90] sm:$0xff] %vm311_vm1, %v10369_v1  ;;  %332 = vst.msk [vmem:[#allocation2 + $0x98] sm:$0xff] %vm311_vm1, %v10369_v1  ;;  %v10671_v5 = vld [vmem:[%s10662_s10 + $0x10] sm:$0xff]  ;;  %v10685_v9 = vld [vmem:[%s10662_s10 + $0x18] sm:$0xff] }
  0x15   : > { %334 = vst.msk [vmem:[#allocation2 + $0xa8] sm:$0xff] %vm311_vm1, %v10369_v1  ;;  %335 = vst.msk [vmem:[#allocation2 + $0xb0] sm:$0xff] %vm311_vm1, %v10369_v1  ;;  %v433_v7 = vld [vmem:[#allocation2 + $0x1] sm:$0xff]  ;;  %v10697_v12 = vld [vmem:[%s10662_s10 + $0x30] sm:$0xff] }
  0x16   : > { %337 = vst.msk [vmem:[#allocation2 + $0xc0] sm:$0xff] %vm311_vm1, %v10369_v1  ;;  %338 = vst.msk [vmem:[#allocation2 + $0xc8] sm:$0xff] %vm311_vm1, %v10369_v1  ;;  %8942 = vmatprep.mubr.msk.f32.mxu0 %vm311_vm1, %v433_v7  ;;  %v10691_v10 = vld [vmem:[%s10662_s10 + $0x20] sm:$0xff]  ;;  %v10694_v11 = vld [vmem:[%s10662_s10 + $0x28] sm:$0xff] }
  0x17   : > { %340 = vst.msk [vmem:[#allocation2 + $0xd8] sm:$0xff] %vm311_vm1, %v10369_v1  ;;  %341 = vst.msk [vmem:[#allocation2 + $0xe0] sm:$0xff] %vm311_vm1, %v10369_v1  ;;  %v10707_v13 = vld [vmem:[%s10662_s10 + $0x38] sm:$0xff]  ;;  %v10710_v14 = vld [vmem:[%s10662_s10 + $0x40] sm:$0xff] }
  0x18   : > { %343 = vst.msk [vmem:[#allocation2 + $0xf0] sm:$0xff] %vm311_vm1, %v10369_v1  ;;  %344 = vst.msk [vmem:[#allocation2 + $0xf8] sm:$0xff] %vm311_vm1, %v10369_v1  ;;  %v10713_v15 = vld [vmem:[%s10662_s10 + $0x48] sm:$0xff]  ;;  %v10724_v16 = vld [vmem:[%s10662_s10 + $0x50] sm:$0xff] }
  0x19   : > { %346 = vst.msk [vmem:[#allocation2 + $0x108] sm:$0xff] %vm311_vm1, %v10369_v1  ;;  %347 = vst.msk [vmem:[#allocation2 + $0x110] sm:$0xff] %vm311_vm1, %v10369_v1  ;;  %v10727_v17 = vld [vmem:[%s10662_s10 + $0x58] sm:$0xff]  ;;  %v10730_v18 = vld [vmem:[%s10662_s10 + $0x60] sm:$0xff] }
  0x1a   : > { %349 = vst.msk [vmem:[#allocation2 + $0x120] sm:$0xff] %vm311_vm1, %v10369_v1  ;;  %350 = vst.msk [vmem:[#allocation2 + $0x128] sm:$0xff] %vm311_vm1, %v10369_v1  ;;  %v10739_v19 = vld [vmem:[%s10662_s10 + $0x68] sm:$0xff]  ;;  %v10742_v20 = vld [vmem:[%s10662_s10 + $0x70] sm:$0xff] }
  0x1b   : > { %352 = vst.msk [vmem:[#allocation2 + $0x138] sm:$0xff] %vm311_vm1, %v10369_v1  ;;  %353 = vst.msk [vmem:[#allocation2 + $0x140] sm:$0xff] %vm311_vm1, %v10369_v1  ;;  %v10745_v21 = vld [vmem:[%s10662_s10 + $0x78] sm:$0xff]  ;;  %v10756_v22 = vld [vmem:[%s10662_s10 + $0x80] sm:$0xff] }
  0x1c   : > { %355 = vst.msk [vmem:[#allocation2 + $0x150] sm:$0xff] %vm311_vm1, %v10369_v1  ;;  %356 = vst.msk [vmem:[#allocation2 + $0x158] sm:$0xff] %vm311_vm1, %v10369_v1  ;;  %v10759_v23 = vld [vmem:[%s10662_s10 + $0x88] sm:$0xff]  ;;  %v10762_v24 = vld [vmem:[%s10662_s10 + $0x90] sm:$0xff] }
  0x1d   : > { %358 = vst.msk [vmem:[#allocation2 + $0x168] sm:$0xff] %vm311_vm1, %v10369_v1  ;;  %359 = vst.msk [vmem:[#allocation2 + $0x170] sm:$0xff] %vm311_vm1, %v10369_v1  ;;  %v10771_v25 = vld [vmem:[%s10662_s10 + $0x98] sm:$0xff]  ;;  %v10774_v26 = vld [vmem:[%s10662_s10 + $0xa0] sm:$0xff] }
  0x1e   : > { %361 = vst.msk [vmem:[#allocation2 + $0x180] sm:$0xff] %vm311_vm1, %v10369_v1  ;;  %362 = vst.msk [vmem:[#allocation2 + $0x188] sm:$0xff] %vm311_vm1, %v10369_v1  ;;  %v10777_v27 = vld [vmem:[%s10662_s10 + $0xa8] sm:$0xff]  ;;  %v10794_v31 = vld [vmem:[%s10662_s10 + $0xb0] sm:$0xff] }
  0x1f   : > { %364 = vst.msk [vmem:[#allocation2 + $0x198] sm:$0xff] %vm311_vm1, %v10369_v1  ;;  %365 = vst.msk [vmem:[#allocation2 + $0x1a0] sm:$0xff] %vm311_vm1, %v10369_v1  ;;  %v10797_v32 = vld [vmem:[%s10662_s10 + $0xb8] sm:$0xff]  ;;  %v10820_v37 = vld [vmem:[%s10662_s10 + $0xc0] sm:$0xff] }
  0x20   : > { %3957 = vst.msk [vmem:[#allocation3] sm:$0xff] %vm311_vm1, %v10369_v1  ;;  %3958 = vst.msk [vmem:[#allocation3 + $0x8] sm:$0xff] %vm311_vm1, %v10369_v1  ;;  %v10823_v38 = vld [vmem:[%s10662_s10 + $0xc8] sm:$0xff]  ;;  %v10826_v39 = vld [vmem:[%s10662_s10 + $0xd0] sm:$0xff] }
  0x21   : > { %3960 = vst.msk [vmem:[#allocation3 + $0x18] sm:$0xff] %vm311_vm1, %v10369_v1  ;;  %3961 = vst.msk [vmem:[#allocation3 + $0x20] sm:$0xff] %vm311_vm1, %v10369_v1  ;;  %v10835_v40 = vld [vmem:[%s10662_s10 + $0xd8] sm:$0xff]  ;;  %v10842_v41 = vld [vmem:[%s10662_s10 + $0xe0] sm:$0xff] }
  0x22   : > { %3963 = vst.msk [vmem:[#allocation3 + $0x30] sm:$0xff] %vm311_vm1, %v10369_v1  ;;  %3964 = vst.msk [vmem:[#allocation3 + $0x38] sm:$0xff] %vm311_vm1, %v10369_v1  ;;  %v10845_v42 = vld [vmem:[%s10662_s10 + $0xe8] sm:$0xff] }
  0x23   : > { %3966 = vst.msk [vmem:[#allocation3 + $0x48] sm:$0xff] %vm311_vm1, %v10369_v1  ;;  %3967 = vst.msk [vmem:[#allocation3 + $0x50] sm:$0xff] %vm311_vm1, %v10369_v1  ;;  %v401_v7 = vld [vmem:[#allocation2 + $0x8] sm:$0xff] }
  0x24   : > { %3969 = vst.msk [vmem:[#allocation3 + $0x60] sm:$0xff] %vm311_vm1, %v10369_v1  ;;  %3970 = vst.msk [vmem:[#allocation3 + $0x68] sm:$0xff] %vm311_vm1, %v10369_v1 }
  0x25   : > { %3972 = vst.msk [vmem:[#allocation3 + $0x78] sm:$0xff] %vm311_vm1, %v10369_v1  ;;  %3973 = vst.msk [vmem:[#allocation3 + $0x80] sm:$0xff] %vm311_vm1, %v10369_v1 }
  0x26   : > { %3975 = vst.msk [vmem:[#allocation3 + $0x90] sm:$0xff] %vm311_vm1, %v10369_v1  ;;  %3976 = vst.msk [vmem:[#allocation3 + $0x98] sm:$0xff] %vm311_vm1, %v10369_v1 }
  0x27   : > { %3978 = vst.msk [vmem:[#allocation3 + $0xa8] sm:$0xff] %vm311_vm1, %v10369_v1  ;;  %3979 = vst.msk [vmem:[#allocation3 + $0xb0] sm:$0xff] %vm311_vm1, %v10369_v1 }
  0x28   : > { %3981 = vst.msk [vmem:[#allocation3 + $0xc0] sm:$0xff] %vm311_vm1, %v10369_v1  ;;  %3982 = vst.msk [vmem:[#allocation3 + $0xc8] sm:$0xff] %vm311_vm1, %v10369_v1 }
  0x29   : > { %3984 = vst.msk [vmem:[#allocation3 + $0xd8] sm:$0xff] %vm311_vm1, %v10369_v1  ;;  %3985 = vst.msk [vmem:[#allocation3 + $0xe0] sm:$0xff] %vm311_vm1, %v10369_v1 }
  0x2a   : > { %3987 = vst.msk [vmem:[#allocation3 + $0xf0] sm:$0xff] %vm311_vm1, %v10369_v1  ;;  %3988 = vst.msk [vmem:[#allocation3 + $0xf8] sm:$0xff] %vm311_vm1, %v10369_v1 }
  0x2b   : > { %3990 = vst.msk [vmem:[#allocation3 + $0x108] sm:$0xff] %vm311_vm1, %v10369_v1  ;;  %3991 = vst.msk [vmem:[#allocation3 + $0x110] sm:$0xff] %vm311_vm1, %v10369_v1 }
  0x2c   : > { %3993 = vst.msk [vmem:[#allocation3 + $0x120] sm:$0xff] %vm311_vm1, %v10369_v1  ;;  %3994 = vst.msk [vmem:[#allocation3 + $0x128] sm:$0xff] %vm311_vm1, %v10369_v1 }
  0x2d   : > { %3996 = vst.msk [vmem:[#allocation3 + $0x138] sm:$0xff] %vm311_vm1, %v10369_v1  ;;  %3997 = vst.msk [vmem:[#allocation3 + $0x140] sm:$0xff] %vm311_vm1, %v10369_v1 }
  0x2e   : > { %3999 = vst.msk [vmem:[#allocation3 + $0x150] sm:$0xff] %vm311_vm1, %v10369_v1  ;;  %4000 = vst.msk [vmem:[#allocation3 + $0x158] sm:$0xff] %vm311_vm1, %v10369_v1 }
  0x2f   : > { %4002 = vst.msk [vmem:[#allocation3 + $0x168] sm:$0xff] %vm311_vm1, %v10369_v1  ;;  %4003 = vst.msk [vmem:[#allocation3 + $0x170] sm:$0xff] %vm311_vm1, %v10369_v1 }
  0x30   : > { %4005 = vst.msk [vmem:[#allocation3 + $0x180] sm:$0xff] %vm311_vm1, %v10369_v1  ;;  %4006 = vst.msk [vmem:[#allocation3 + $0x188] sm:$0xff] %vm311_vm1, %v10369_v1 }
  0x31   : > { %4008 = vst.msk [vmem:[#allocation3 + $0x198] sm:$0xff] %vm311_vm1, %v10369_v1  ;;  %4009 = vst.msk [vmem:[#allocation3 + $0x1a0] sm:$0xff] %vm311_vm1, %v10369_v1 }
  0x32   : > { %315 = vst.msk [vmem:[#allocation2 + $0x10] sm:$0x3] %vm314_vm2, %v10369_v1  ;;  %318 = vst.msk [vmem:[#allocation2 + $0x28] sm:$0x3] %vm314_vm2, %v10369_v1 }
  0x33   : > { %321 = vst.msk [vmem:[#allocation2 + $0x40] sm:$0x3] %vm314_vm2, %v10369_v1  ;;  %324 = vst.msk [vmem:[#allocation2 + $0x58] sm:$0x3] %vm314_vm2, %v10369_v1 }
  0x34   : > { %327 = vst.msk [vmem:[#allocation2 + $0x70] sm:$0x3] %vm314_vm2, %v10369_v1  ;;  %330 = vst.msk [vmem:[#allocation2 + $0x88] sm:$0x3] %vm314_vm2, %v10369_v1 }
  0x35   : > { %333 = vst.msk [vmem:[#allocation2 + $0xa0] sm:$0x3] %vm314_vm2, %v10369_v1  ;;  %336 = vst.msk [vmem:[#allocation2 + $0xb8] sm:$0x3] %vm314_vm2, %v10369_v1 }
  0x36   : > { %339 = vst.msk [vmem:[#allocation2 + $0xd0] sm:$0x3] %vm314_vm2, %v10369_v1  ;;  %342 = vst.msk [vmem:[#allocation2 + $0xe8] sm:$0x3] %vm314_vm2, %v10369_v1 }
  0x37   : > { %345 = vst.msk [vmem:[#allocation2 + $0x100] sm:$0x3] %vm314_vm2, %v10369_v1  ;;  %348 = vst.msk [vmem:[#allocation2 + $0x118] sm:$0x3] %vm314_vm2, %v10369_v1 }
  0x38   : > { %351 = vst.msk [vmem:[#allocation2 + $0x130] sm:$0x3] %vm314_vm2, %v10369_v1  ;;  %354 = vst.msk [vmem:[#allocation2 + $0x148] sm:$0x3] %vm314_vm2, %v10369_v1 }
  0x39   : > { %357 = vst.msk [vmem:[#allocation2 + $0x160] sm:$0x3] %vm314_vm2, %v10369_v1  ;;  %360 = vst.msk [vmem:[#allocation2 + $0x178] sm:$0x3] %vm314_vm2, %v10369_v1  ;;  %v434_v8 = vld [vmem:[#allocation2 + $0x9] sm:$0xff] }
  0x3a   : > { %363 = vst.msk [vmem:[#allocation2 + $0x190] sm:$0x3] %vm314_vm2, %v10369_v1  ;;  %366 = vst.msk [vmem:[#allocation2 + $0x1a8] sm:$0x3] %vm314_vm2, %v10369_v1  ;;  %8943 = vmatmul.mubr.msk.f32.vlgmr.msra.gmra.mrb[0].mxu0 %vm311_vm1, %v434_v8 }
  0x3b   : > { %3959 = vst.msk [vmem:[#allocation3 + $0x10] sm:$0x3] %vm314_vm2, %v10369_v1  ;;  %3962 = vst.msk [vmem:[#allocation3 + $0x28] sm:$0x3] %vm314_vm2, %v10369_v1  ;;  %8991 = vmatpush3.msk.msra.mxu0 %vm563_vm0, %v10572_v2  ;;  %v400_v2 = vld [vmem:[#allocation2] sm:$0xff] }
  0x3c   : > { %3965 = vst.msk [vmem:[#allocation3 + $0x40] sm:$0x3] %vm314_vm2, %v10369_v1  ;;  %3968 = vst.msk [vmem:[#allocation3 + $0x58] sm:$0x3] %vm314_vm2, %v10369_v1  ;;  %9040 = vmatprep.subr.msk.mxu0 %vm563_vm0, %v10676_v6 }
  0x3d   : > { %3971 = vst.msk [vmem:[#allocation3 + $0x70] sm:$0x3] %vm314_vm2, %v10369_v1  ;;  %3974 = vst.msk [vmem:[#allocation3 + $0x88] sm:$0x3] %vm314_vm2, %v10369_v1 }
  0x3e   : > { %3977 = vst.msk [vmem:[#allocation3 + $0xa0] sm:$0x3] %vm314_vm2, %v10369_v1  ;;  %3980 = vst.msk [vmem:[#allocation3 + $0xb8] sm:$0x3] %vm314_vm2, %v10369_v1 }
  0x3f   : > { %3983 = vst.msk [vmem:[#allocation3 + $0xd0] sm:$0x3] %vm314_vm2, %v10369_v1  ;;  %3986 = vst.msk [vmem:[#allocation3 + $0xe8] sm:$0x3] %vm314_vm2, %v10369_v1 }
  0x40   : > { %3989 = vst.msk [vmem:[#allocation3 + $0x100] sm:$0x3] %vm314_vm2, %v10369_v1  ;;  %3992 = vst.msk [vmem:[#allocation3 + $0x118] sm:$0x3] %vm314_vm2, %v10369_v1 }
  0x41   : > { %3995 = vst.msk [vmem:[#allocation3 + $0x130] sm:$0x3] %vm314_vm2, %v10369_v1  ;;  %3998 = vst.msk [vmem:[#allocation3 + $0x148] sm:$0x3] %vm314_vm2, %v10369_v1 }
  0x42   : > { %4001 = vst.msk [vmem:[#allocation3 + $0x160] sm:$0x3] %vm314_vm2, %v10369_v1  ;;  %4004 = vst.msk [vmem:[#allocation3 + $0x178] sm:$0x3] %vm314_vm2, %v10369_v1 }
  0x43   : > { %4007 = vst.msk [vmem:[#allocation3 + $0x190] sm:$0x3] %vm314_vm2, %v10369_v1  ;;  %4010 = vst.msk [vmem:[#allocation3 + $0x1a8] sm:$0x3] %vm314_vm2, %v10369_v1 }
  0x44   : > { %12866 = vst [vmem:[#allocation4_spill] sm:$0xff] %v10665_v3  ;;  %12867 = vst [vmem:[#allocation5_spill] sm:$0xff] %v10668_v4 }
  0x45   : > { %12868 = vst [vmem:[#allocation6_spill] sm:$0xff] %v10671_v5  ;;  %368 = vst.msk [vmem:[#allocation2 + $0x19] sm:$0xff] %vm311_vm1, %v10665_v3  ;;  %v1116_v3 = vld [vmem:[#allocation2 + $0x2] sm:$0xff] }
  0x46   : > { %369 = vst.msk [vmem:[#allocation2 + $0x21] sm:$0xff] %vm311_vm1, %v10668_v4  ;;  %370 = vst.msk [vmem:[#allocation2 + $0x31] sm:$0xff] %vm311_vm1, %v10671_v5 }
  0x47   : > { %12869 = vst [vmem:[#allocation7_spill] sm:$0xff] %v10685_v9  ;;  %371 = vst.msk [vmem:[#allocation2 + $0x39] sm:$0xff] %vm311_vm1, %v10685_v9 }
  0x48   : > { %12870 = vst [vmem:[#allocation8_spill] sm:$0xff] %v10691_v10  ;;  %12871 = vst [vmem:[#allocation9_spill] sm:$0xff] %v10694_v11 }
  0x49   : > { %12872 = vst [vmem:[#allocation10_spill] sm:$0xff] %v10697_v12  ;;  %372 = vst.msk [vmem:[#allocation2 + $0x49] sm:$0xff] %vm311_vm1, %v10691_v10  ;;  %v11061_v10 = vld [vmem:[%s10662_s10 + $0xf0] sm:$0xff] }
  0x4a   : > { %373 = vst.msk [vmem:[#allocation2 + $0x51] sm:$0xff] %vm311_vm1, %v10694_v11  ;;  %374 = vst.msk [vmem:[#allocation2 + $0x61] sm:$0xff] %vm311_vm1, %v10697_v12  ;;  %v11066_v11 = vld [vmem:[%s10662_s10 + $0xf8] sm:$0xff] }
  0x4b   : > { %12873 = vst [vmem:[#allocation11_spill] sm:$0xff] %v10707_v13  ;;  %12874 = vst [vmem:[#allocation12_spill] sm:$0xff] %v10710_v14 }
  0x4c   : > { %12875 = vst [vmem:[#allocation13_spill] sm:$0xff] %v10713_v15  ;;  %375 = vst.msk [vmem:[#allocation2 + $0x69] sm:$0xff] %vm311_vm1, %v10707_v13  ;;  %v10779_v28 = vld [vmem:[#allocation2 + $0x19] sm:$0xff] }
  0x4d   : > { %376 = vst.msk [vmem:[#allocation2 + $0x79] sm:$0xff] %vm311_vm1, %v10710_v14  ;;  %377 = vst.msk [vmem:[#allocation2 + $0x81] sm:$0xff] %vm311_vm1, %v10713_v15  ;;  %v10781_v29 = vld [vmem:[#allocation2 + $0x21] sm:$0xff]  ;;  %v10783_v30 = vld [vmem:[#allocation2 + $0x31] sm:$0xff]  ;;  %8945 = vmatprep.mubr.msk.f32.mxu0 %vm311_vm1, %v10779_v28 }
  0x4e   : > { %12876 = vst [vmem:[#allocation14_spill] sm:$0xff] %v10724_v16  ;;  %12877 = vst [vmem:[#allocation15_spill] sm:$0xff] %v10727_v17  ;;  %8946 = vmatmul.mubr.msk.f32.gmra.mrb[2].mxu0 %vm311_vm1, %v10781_v29  ;;  %v10807_v33 = vld [vmem:[#allocation2 + $0x39] sm:$0xff] }
  0x4f   : > { %12878 = vst [vmem:[#allocation16_spill] sm:$0xff] %v10730_v18  ;;  %378 = vst.msk [vmem:[#allocation2 + $0x91] sm:$0xff] %vm311_vm1, %v10724_v16  ;;  %8948 = vmatprep.mubr.msk.f32.mxu0 %vm311_vm1, %v10783_v30  ;;  %v10946_v8 = vld [vmem:[#allocation2 + $0x18] sm:$0xff] }
  0x50   : > { %379 = vst.msk [vmem:[#allocation2 + $0x99] sm:$0xff] %vm311_vm1, %v10727_v17  ;;  %380 = vst.msk [vmem:[#allocation2 + $0xa9] sm:$0xff] %vm311_vm1, %v10730_v18  ;;  %v10809_v34 = vld [vmem:[#allocation2 + $0x49] sm:$0xff]  ;;  %v11087_v4 = vld [vmem:[#allocation2 + $0x1a] sm:$0xff] }
  0x51   : > { %12879 = vst [vmem:[#allocation17_spill] sm:$0xff] %v10739_v19  ;;  %12880 = vst [vmem:[#allocation18_spill] sm:$0xff] %v10742_v20  ;;  %v10815_v35 = vld [vmem:[#allocation2 + $0x51] sm:$0xff]  ;;  %v10817_v36 = vld [vmem:[#allocation2 + $0x61] sm:$0xff] }
  0x52   : > { %12881 = vst [vmem:[#allocation19_spill] sm:$0xff] %v10745_v21  ;;  %381 = vst.msk [vmem:[#allocation2 + $0xb1] sm:$0xff] %vm311_vm1, %v10739_v19  ;;  %8949 = vmatmul.mubr.msk.f32.gmra.mrb[4].mxu0 %vm311_vm1, %v10807_v33 }
  0x53   : > { %382 = vst.msk [vmem:[#allocation2 + $0xc1] sm:$0xff] %vm311_vm1, %v10742_v20  ;;  %383 = vst.msk [vmem:[#allocation2 + $0xc9] sm:$0xff] %vm311_vm1, %v10745_v21  ;;  %8951 = vmatprep.mubr.msk.f32.mxu0 %vm311_vm1, %v10809_v34  ;;  %v10849_v43 = vld [vmem:[#allocation2 + $0x69] sm:$0xff] }
  0x54   : > { %12882 = vst [vmem:[#allocation20_spill] sm:$0xff] %v10756_v22  ;;  %12883 = vst [vmem:[#allocation21_spill] sm:$0xff] %v10759_v23  ;;  %v10855_v44 = vld [vmem:[#allocation2 + $0x79] sm:$0xff]  ;;  %v10861_v45 = vld [vmem:[#allocation2 + $0x81] sm:$0xff] }
  0x55   : > { %12884 = vst [vmem:[#allocation22_spill] sm:$0xff] %v10762_v24  ;;  %384 = vst.msk [vmem:[#allocation2 + $0xd9] sm:$0xff] %vm311_vm1, %v10756_v22 }
  0x56   : > { %385 = vst.msk [vmem:[#allocation2 + $0xe1] sm:$0xff] %vm311_vm1, %v10759_v23  ;;  %386 = vst.msk [vmem:[#allocation2 + $0xf1] sm:$0xff] %vm311_vm1, %v10762_v24  ;;  %8952 = vmatmul.mubr.msk.f32.gmra.mrb[6].mxu0 %vm311_vm1, %v10815_v35  ;;  %v10863_v46 = vld [vmem:[#allocation2 + $0x91] sm:$0xff] }
  0x57   : > { %12885 = vst [vmem:[#allocation23_spill] sm:$0xff] %v10771_v25  ;;  %12886 = vst [vmem:[#allocation24_spill] sm:$0xff] %v10774_v26  ;;  %8954 = vmatprep.mubr.msk.f32.mxu0 %vm311_vm1, %v10817_v36  ;;  %v10869_v47 = vld [vmem:[#allocation2 + $0x99] sm:$0xff]  ;;  %v10871_v48 = vld [vmem:[#allocation2 + $0xa9] sm:$0xff] }
  0x58   : > { %12887 = vst [vmem:[#allocation25_spill] sm:$0xff] %v10777_v27  ;;  %387 = vst.msk [vmem:[#allocation2 + $0xf9] sm:$0xff] %vm311_vm1, %v10771_v25 }
  0x59   : > { %388 = vst.msk [vmem:[#allocation2 + $0x109] sm:$0xff] %vm311_vm1, %v10774_v26  ;;  %389 = vst.msk [vmem:[#allocation2 + $0x111] sm:$0xff] %vm311_vm1, %v10777_v27  ;;  %v10877_v49 = vld [vmem:[#allocation2 + $0xb1] sm:$0xff]  ;;  %v11002_v27 = vld [vmem:[#allocation2 + $0xa8] sm:$0xff] }
  0x5a   : > { %12888 = vst [vmem:[#allocation26_spill] sm:$0xff] %v10794_v31  ;;  %12889 = vst [vmem:[#allocation27_spill] sm:$0xff] %v10797_v32  ;;  %8955 = vmatmul.mubr.msk.f32.gmra.mrb[8].mxu0 %vm311_vm1, %v10849_v43  ;;  %v10879_v50 = vld [vmem:[#allocation2 + $0xc1] sm:$0xff]  ;;  %v10885_v51 = vld [vmem:[#allocation2 + $0xc9] sm:$0xff] }
  0x5b   : > { %390 = vst.msk [vmem:[#allocation2 + $0x121] sm:$0xff] %vm311_vm1, %v10794_v31  ;;  %391 = vst.msk [vmem:[#allocation2 + $0x129] sm:$0xff] %vm311_vm1, %v10797_v32  ;;  %8957 = vmatprep.mubr.msk.f32.mxu0 %vm311_vm1, %v10855_v44  ;;  %v10992_v31 = vld [vmem:[#allocation2 + $0x80] sm:$0xff]  ;;  %v10994_v32 = vld [vmem:[#allocation2 + $0x90] sm:$0xff] }
  0x5c   : > { %12890 = vst [vmem:[#allocation28_spill] sm:$0xff] %v10820_v37  ;;  %12891 = vst [vmem:[#allocation29_spill] sm:$0xff] %v10823_v38  ;;  %v10887_v52 = vld [vmem:[#allocation2 + $0xd9] sm:$0xff]  ;;  %v11008_v24 = vld [vmem:[#allocation2 + $0xb0] sm:$0xff] }
  0x5d   : > { %12892 = vst [vmem:[#allocation30_spill] sm:$0xff] %v10826_v39  ;;  %392 = vst.msk [vmem:[#allocation2 + $0x139] sm:$0xff] %vm311_vm1, %v10820_v37  ;;  %v10893_v53 = vld [vmem:[#allocation2 + $0xe1] sm:$0xff]  ;;  %v10895_v54 = vld [vmem:[#allocation2 + $0xf1] sm:$0xff] }
  0x5e   : > { %393 = vst.msk [vmem:[#allocation2 + $0x141] sm:$0xff] %vm311_vm1, %v10823_v38  ;;  %394 = vst.msk [vmem:[#allocation2 + $0x151] sm:$0xff] %vm311_vm1, %v10826_v39  ;;  %8958 = vmatmul.mubr.msk.f32.gmra.mrb[10].mxu0 %vm311_vm1, %v10861_v45  ;;  %v10960_v39 = vld [vmem:[#allocation2 + $0x30] sm:$0xff]  ;;  %v10984_v37 = vld [vmem:[#allocation2 + $0x68] sm:$0xff] }
  0x5f   : > { %12893 = vst [vmem:[#allocation31_spill] sm:$0xff] %v10835_v40  ;;  %395 = vst.msk [vmem:[#allocation2 + $0x159] sm:$0xff] %vm311_vm1, %v10835_v40  ;;  %8960 = vmatprep.mubr.msk.f32.mxu0 %vm311_vm1, %v10863_v46  ;;  %v10901_v55 = vld [vmem:[#allocation2 + $0xf9] sm:$0xff]  ;;  %v11016_v22 = vld [vmem:[#allocation2 + $0xc8] sm:$0xff] }
  0x60   : > { %12894 = vst [vmem:[#allocation32_spill] sm:$0xff] %v10842_v41  ;;  %12895 = vst [vmem:[#allocation33_spill] sm:$0xff] %v10845_v42  ;;  %v10903_v56 = vld [vmem:[#allocation2 + $0x109] sm:$0xff]  ;;  %v10909_v57 = vld [vmem:[#allocation2 + $0x111] sm:$0xff] }
  0x61   : > { %396 = vst.msk [vmem:[#allocation2 + $0x169] sm:$0xff] %vm311_vm1, %v10842_v41  ;;  %397 = vst.msk [vmem:[#allocation2 + $0x171] sm:$0xff] %vm311_vm1, %v10845_v42  ;;  %v10951_v41 = vld [vmem:[%s12714_s1 + $0xc] sm:$0xf]  ;;  %v10958_v42 = vld [vmem:[#allocation2 + $0x20] sm:$0xff] }
  0x62   : > { %8961 = vmatmul.mubr.msk.f32.gmra.mrb[12].mxu0 %vm311_vm1, %v10869_v47  ;;  %v10911_v58 = vld [vmem:[#allocation2 + $0x121] sm:$0xff]  ;;  %v10917_v59 = vld [vmem:[#allocation2 + $0x129] sm:$0xff]  ;;  %v10986_v38 = vld [vmem:[#allocation2 + $0x78] sm:$0xff]  ;;  %12900 = vst [vmem:[#allocation38_spill] sm:$0xff] %v11061_v10 }
  0x63   : > { %8963 = vmatprep.mubr.msk.f32.mxu0 %vm311_vm1, %v10871_v48  ;;  %v10978_v40 = vld [vmem:[#allocation2 + $0x60] sm:$0xff]  ;;  %v11000_v26 = vld [vmem:[#allocation2 + $0x98] sm:$0xff]  ;;  %v11026_v21 = vld [vmem:[#allocation2 + $0xf0] sm:$0xff]  ;;  %398 = vst.msk [vmem:[#allocation2 + $0x181] sm:$0xff] %vm311_vm1, %v11061_v10 }
  0x64   : > { %v10919_v60 = vld [vmem:[#allocation2 + $0x139] sm:$0xff]  ;;  %v11034_v19 = vld [vmem:[#allocation2 + $0x108] sm:$0xff]  ;;  %v11040_v16 = vld [vmem:[#allocation2 + $0x110] sm:$0xff]  ;;  %12901 = vst [vmem:[#allocation39_spill] sm:$0xff] %v11066_v11 }
  0x65   : > { %v10925_v61 = vld [vmem:[#allocation2 + $0x141] sm:$0xff]  ;;  %v10927_v62 = vld [vmem:[#allocation2 + $0x151] sm:$0xff]  ;;  %399 = vst.msk [vmem:[#allocation2 + $0x189] sm:$0xff] %vm311_vm1, %v11066_v11  ;;  %12902 = vst [vmem:[#allocation40_spill] sm:$0xff] %v11087_v4 }
  0x66   : > { %8964 = vmatmul.mubr.msk.f32.gmra.mrb[14].mxu0 %vm311_vm1, %v10877_v49  ;;  %12896 = vst [vmem:[#allocation34_spill] sm:$0xff] %v10927_v62  ;;  %v10933_v63 = vld [vmem:[#allocation2 + $0x159] sm:$0xff]  ;;  %v11048_v14 = vld [vmem:[#allocation2 + $0x128] sm:$0xff]  ;;  %v11058_v13 = vld [vmem:[#allocation2 + $0x150] sm:$0xff] }
  0x67   : > { %8966 = vmatprep.mubr.msk.f32.mxu0 %vm311_vm1, %v10879_v50  ;;  %12897 = vst [vmem:[#allocation35_spill] sm:$0xff] %v10933_v63  ;;  %v11010_v25 = vld [vmem:[#allocation2 + $0xc0] sm:$0xff]  ;;  %v11018_v23 = vld [vmem:[#allocation2 + $0xd8] sm:$0xff]  ;;  %v1117_v11 = vld [vmem:[#allocation2 + $0xa] sm:$0xff] }
  0x68   : > { %v10935_v0 = vld [vmem:[#allocation2 + $0x169] sm:$0xff]  ;;  %v10941_v1 = vld [vmem:[#allocation2 + $0x171] sm:$0xff]  ;;  %v11024_v20 = vld [vmem:[#allocation2 + $0xe0] sm:$0xff] }
  0x69   : > { %12898 = vst [vmem:[#allocation36_spill] sm:$0xff] %v10935_v0  ;;  %12899 = vst [vmem:[#allocation37_spill] sm:$0xff] %v10941_v1  ;;  %v11032_v18 = vld [vmem:[#allocation2 + $0xf8] sm:$0xff]  ;;  %v11042_v17 = vld [vmem:[#allocation2 + $0x120] sm:$0xff] }
  0x6a   : > { %8967 = vmatmul.mubr.msk.f32.gmra.mrb[16].mxu0 %vm311_vm1, %v10885_v51  ;;  %v11050_v15 = vld [vmem:[#allocation2 + $0x138] sm:$0xff]  ;;  %v11056_v12 = vld [vmem:[#allocation2 + $0x140] sm:$0xff]  ;;  %v11076_v9 = vld [vmem:[#allocation2 + $0x168] sm:$0xff] }
  0x6b   : > { %8969 = vmatprep.mubr.msk.f32.mxu0 %vm311_vm1, %v10887_v52  ;;  %v11074_v5 = vld [vmem:[#allocation2 + $0x158] sm:$0xff]  ;;  %v11082_v10 = vld [vmem:[#allocation2 + $0x170] sm:$0xff] }
  0x6e   : > { %8970 = vmatmul.mubr.msk.f32.gmra.mrb[18].mxu0 %vm311_vm1, %v10893_v53 }
  0x6f   : > { %8972 = vmatprep.mubr.msk.f32.mxu0 %vm311_vm1, %v10895_v54 }
  0x72   : > { %8973 = vmatmul.mubr.msk.f32.gmra.mrb[20].mxu0 %vm311_vm1, %v10901_v55 }
  0x73   : > { %8975 = vmatprep.mubr.msk.f32.mxu0 %vm311_vm1, %v10903_v56 }
  0x76   : > { %8976 = vmatmul.mubr.msk.f32.gmra.mrb[22].mxu0 %vm311_vm1, %v10909_v57 }
  0x77   : > { %8978 = vmatprep.mubr.msk.f32.mxu0 %vm311_vm1, %v10911_v58 }
  0x7a   : > { %8979 = vmatmul.mubr.msk.f32.gmra.mrb[24].mxu0 %vm311_vm1, %v10917_v59 }
  0x7b   : > { %8981 = vmatprep.mubr.msk.f32.mxu0 %vm311_vm1, %v10919_v60 }
  0x7e   : > { %8982 = vmatmul.mubr.msk.f32.gmra.mrb[26].mxu0 %vm311_vm1, %v10925_v61 }
  0x7f   : > { %8984 = vmatprep.mubr.msk.f32.mxu0 %vm311_vm1, %v10927_v62 }
  0x82   : > { %8985 = vmatmul.mubr.msk.f32.gmra.mrb[28].mxu0 %vm311_vm1, %v10933_v63  ;;  %v11101_v63 = vld [vmem:[#allocation2 + $0x32] sm:$0xff] }
  0x83   : > { %8987 = vmatprep.mubr.msk.f32.mxu0 %vm311_vm1, %v10935_v0  ;;  %v11099_v0 = vld [vmem:[#allocation2 + $0x22] sm:$0xff]  ;;  %12904 = vst [vmem:[#allocation42_spill] sm:$0xff] %v11101_v63 }
  0x84   : > { %12903 = vst [vmem:[#allocation41_spill] sm:$0xff] %v11099_v0 }
  0x86   : > { %8988 = vmatmul.mubr.msk.f32.gmra.mrb[30].mxu0 %vm311_vm1, %v10941_v1  ;;  %v11092_v1 = vld [vmem:[%s12714_s1 + $0x10] sm:$0xf] }
  0x87   : > { %8992 = vmatprep.mubr.msk.f32.mxu0 %vm311_vm1, %v400_v2  ;;  %v10968_v2 = vld [vmem:[#allocation2 + $0x38] sm:$0xff] }
  0x8a   : > { %8993 = vmatmul.mubr.msk.f32.vlgmr.msra.gmra.mrb[0].mxu0 %vm311_vm1, %v401_v7  ;;  %v10970_v7 = vld [vmem:[#allocation2 + $0x48] sm:$0xff] }
  0x8b   : > { %9041 = vmatpush3.msk.msra.mxu0 %vm563_vm0, %v10676_v6  ;;  %8995 = vmatprep.mubr.msk.f32.mxu0 %vm311_vm1, %v10946_v8  ;;  %v10976_v6 = vld [vmem:[#allocation2 + $0x50] sm:$0xff] }
  0x8c   : > { %9090 = vmatprep.subr.msk.mxu0 %vm563_vm0, %v10951_v41 }
  0x8e   : > { %8996 = vmatmul.mubr.msk.f32.gmra.mrb[2].mxu0 %vm311_vm1, %v10958_v42 }
  0x8f   : > { %8998 = vmatprep.mubr.msk.f32.mxu0 %vm311_vm1, %v10960_v39 }
  0x92   : > { %8999 = vmatmul.mubr.msk.f32.gmra.mrb[4].mxu0 %vm311_vm1, %v10968_v2 }
  0x93   : > { %9001 = vmatprep.mubr.msk.f32.mxu0 %vm311_vm1, %v10970_v7 }
  0x96   : > { %9002 = vmatmul.mubr.msk.f32.gmra.mrb[6].mxu0 %vm311_vm1, %v10976_v6 }
  0x97   : > { %9004 = vmatprep.mubr.msk.f32.mxu0 %vm311_vm1, %v10978_v40 }
  0x9a   : > { %9005 = vmatmul.mubr.msk.f32.gmra.mrb[8].mxu0 %vm311_vm1, %v10984_v37 }
  0x9b   : > { %9007 = vmatprep.mubr.msk.f32.mxu0 %vm311_vm1, %v10986_v38 }
  0x9e   : > { %9008 = vmatmul.mubr.msk.f32.gmra.mrb[10].mxu0 %vm311_vm1, %v10992_v31 }
  0x9f   : > { %9010 = vmatprep.mubr.msk.f32.mxu0 %vm311_vm1, %v10994_v32 }
  0xa2   : > { %9011 = vmatmul.mubr.msk.f32.gmra.mrb[12].mxu0 %vm311_vm1, %v11000_v26 }
  0xa3   : > { %9013 = vmatprep.mubr.msk.f32.mxu0 %vm311_vm1, %v11002_v27 }
  0xa6   : > { %9014 = vmatmul.mubr.msk.f32.gmra.mrb[14].mxu0 %vm311_vm1, %v11008_v24 }
  0xa7   : > { %9016 = vmatprep.mubr.msk.f32.mxu0 %vm311_vm1, %v11010_v25 }
  0xaa   : > { %9017 = vmatmul.mubr.msk.f32.gmra.mrb[16].mxu0 %vm311_vm1, %v11016_v22 }
  0xab   : > { %9019 = vmatprep.mubr.msk.f32.mxu0 %vm311_vm1, %v11018_v23 }
  0xae   : > { %9020 = vmatmul.mubr.msk.f32.gmra.mrb[18].mxu0 %vm311_vm1, %v11024_v20 }
  0xaf   : > { %9022 = vmatprep.mubr.msk.f32.mxu0 %vm311_vm1, %v11026_v21 }
  0xb2   : > { %9023 = vmatmul.mubr.msk.f32.gmra.mrb[20].mxu0 %vm311_vm1, %v11032_v18 }
  0xb3   : > { %9025 = vmatprep.mubr.msk.f32.mxu0 %vm311_vm1, %v11034_v19 }
  0xb6   : > { %9026 = vmatmul.mubr.msk.f32.gmra.mrb[22].mxu0 %vm311_vm1, %v11040_v16 }
  0xb7   : > { %9028 = vmatprep.mubr.msk.f32.mxu0 %vm311_vm1, %v11042_v17 }
  0xba   : > { %9029 = vmatmul.mubr.msk.f32.gmra.mrb[24].mxu0 %vm311_vm1, %v11048_v14 }
  0xbb   : > { %9031 = vmatprep.mubr.msk.f32.mxu0 %vm311_vm1, %v11050_v15 }
  0xbe   : > { %9032 = vmatmul.mubr.msk.f32.gmra.mrb[26].mxu0 %vm311_vm1, %v11056_v12 }
  0xbf   : > { %9034 = vmatprep.mubr.msk.f32.mxu0 %vm311_vm1, %v11058_v13 }
  0xc2   : > { %9035 = vmatmul.mubr.msk.f32.gmra.mrb[28].mxu0 %vm311_vm1, %v11074_v5 }
  0xc3   : > { %9037 = vmatprep.mubr.msk.f32.mxu0 %vm311_vm1, %v11076_v9 }
  0xc6   : > { %9038 = vmatmul.mubr.msk.f32.gmra.mrb[30].mxu0 %vm311_vm1, %v11082_v10 }
  0xc7   : > { %9042 = vmatprep.mubr.msk.f32.mxu0 %vm311_vm1, %v1116_v3  ;;  %v11109_v3 = vld [vmem:[#allocation2 + $0x3a] sm:$0xff] }
  0xc8   : > { %12905 = vst [vmem:[#allocation43_spill] sm:$0xff] %v11109_v3 }
  0xca   : > { %9043 = vmatmul.mubr.msk.f32.vlgmr.msra.gmra.mrb[0].mxu0 %vm311_vm1, %v1117_v11  ;;  %v11111_v11 = vld [vmem:[#allocation2 + $0x4a] sm:$0xff] }
  0xcb   : > { %9091 = vmatpush3.msk.msra.mxu0 %vm563_vm0, %v10951_v41  ;;  %9045 = vmatprep.mubr.msk.f32.mxu0 %vm311_vm1, %v11087_v4  ;;  %12906 = vst [vmem:[#allocation44_spill] sm:$0xff] %v11111_v11  ;;  %v11117_v41 = vld [vmem:[#allocation2 + $0x52] sm:$0xff]  ;;  %v11119_v4 = vld [vmem:[#allocation2 + $0x62] sm:$0xff] }
  0xcc   : > { %9140 = vmatprep.subr.msk.mxu0 %vm563_vm0, %v11092_v1  ;;  %12907 = vst [vmem:[#allocation45_spill] sm:$0xff] %v11117_v41  ;;  %12908 = vst [vmem:[#allocation46_spill] sm:$0xff] %v11119_v4 }
  0xce   : > { %9046 = vmatmul.mubr.msk.f32.gmra.mrb[2].mxu0 %vm311_vm1, %v11099_v0  ;;  %v11127_v0 = vld [vmem:[#allocation2 + $0x7a] sm:$0xff] }
  0xcf   : > { %9048 = vmatprep.mubr.msk.f32.mxu0 %vm311_vm1, %v11101_v63  ;;  %v11125_v63 = vld [vmem:[#allocation2 + $0x6a] sm:$0xff]  ;;  %12910 = vst [vmem:[#allocation48_spill] sm:$0xff] %v11127_v0 }
  0xd0   : > { %12909 = vst [vmem:[#allocation47_spill] sm:$0xff] %v11125_v63 }
  0xd2   : > { %9049 = vmatmul.mubr.msk.f32.gmra.mrb[4].mxu0 %vm311_vm1, %v11109_v3  ;;  %v11135_v3 = vld [vmem:[#allocation2 + $0x92] sm:$0xff] }
  0xd3   : > { %9051 = vmatprep.mubr.msk.f32.mxu0 %vm311_vm1, %v11111_v11  ;;  %v11133_v11 = vld [vmem:[#allocation2 + $0x82] sm:$0xff]  ;;  %12912 = vst [vmem:[#allocation50_spill] sm:$0xff] %v11135_v3 }
  0xd4   : > { %12911 = vst [vmem:[#allocation49_spill] sm:$0xff] %v11133_v11 }
  0xd6   : > { %9052 = vmatmul.mubr.msk.f32.gmra.mrb[6].mxu0 %vm311_vm1, %v11117_v41  ;;  %v11143_v41 = vld [vmem:[#allocation2 + $0xaa] sm:$0xff] }
  0xd7   : > { %9054 = vmatprep.mubr.msk.f32.mxu0 %vm311_vm1, %v11119_v4  ;;  %v11141_v4 = vld [vmem:[#allocation2 + $0x9a] sm:$0xff]  ;;  %12914 = vst [vmem:[#allocation52_spill] sm:$0xff] %v11143_v41 }
  0xd8   : > { %12913 = vst [vmem:[#allocation51_spill] sm:$0xff] %v11141_v4 }
  0xda   : > { %9055 = vmatmul.mubr.msk.f32.gmra.mrb[8].mxu0 %vm311_vm1, %v11125_v63  ;;  %v11151_v63 = vld [vmem:[#allocation2 + $0xc2] sm:$0xff] }
  0xdb   : > { %9057 = vmatprep.mubr.msk.f32.mxu0 %vm311_vm1, %v11127_v0  ;;  %v11149_v0 = vld [vmem:[#allocation2 + $0xb2] sm:$0xff]  ;;  %12916 = vst [vmem:[#allocation54_spill] sm:$0xff] %v11151_v63 }
  0xdc   : > { %12915 = vst [vmem:[#allocation53_spill] sm:$0xff] %v11149_v0 }
  0xde   : > { %9058 = vmatmul.mubr.msk.f32.gmra.mrb[10].mxu0 %vm311_vm1, %v11133_v11  ;;  %v11159_v11 = vld [vmem:[#allocation2 + $0xda] sm:$0xff] }
  0xdf   : > { %9060 = vmatprep.mubr.msk.f32.mxu0 %vm311_vm1, %v11135_v3  ;;  %v11157_v3 = vld [vmem:[#allocation2 + $0xca] sm:$0xff]  ;;  %12918 = vst [vmem:[#allocation56_spill] sm:$0xff] %v11159_v11 }
  0xe0   : > { %12917 = vst [vmem:[#allocation55_spill] sm:$0xff] %v11157_v3 }
  0xe2   : > { %9061 = vmatmul.mubr.msk.f32.gmra.mrb[12].mxu0 %vm311_vm1, %v11141_v4  ;;  %v11167_v4 = vld [vmem:[#allocation2 + $0xf2] sm:$0xff] }
  0xe3   : > { %9063 = vmatprep.mubr.msk.f32.mxu0 %vm311_vm1, %v11143_v41  ;;  %v11165_v41 = vld [vmem:[#allocation2 + $0xe2] sm:$0xff]  ;;  %12920 = vst [vmem:[#allocation58_spill] sm:$0xff] %v11167_v4 }
  0xe4   : > { %12919 = vst [vmem:[#allocation57_spill] sm:$0xff] %v11165_v41 }
  0xe6   : > { %9064 = vmatmul.mubr.msk.f32.gmra.mrb[14].mxu0 %vm311_vm1, %v11149_v0  ;;  %v11175_v0 = vld [vmem:[#allocation2 + $0x10a] sm:$0xff] }
  0xe7   : > { %9066 = vmatprep.mubr.msk.f32.mxu0 %vm311_vm1, %v11151_v63  ;;  %v11173_v63 = vld [vmem:[#allocation2 + $0xfa] sm:$0xff]  ;;  %12922 = vst [vmem:[#allocation60_spill] sm:$0xff] %v11175_v0 }
  0xe8   : > { %12921 = vst [vmem:[#allocation59_spill] sm:$0xff] %v11173_v63 }
  0xea   : > { %9067 = vmatmul.mubr.msk.f32.gmra.mrb[16].mxu0 %vm311_vm1, %v11157_v3  ;;  %v11183_v3 = vld [vmem:[#allocation2 + $0x122] sm:$0xff] }
  0xeb   : > { %9069 = vmatprep.mubr.msk.f32.mxu0 %vm311_vm1, %v11159_v11  ;;  %v11181_v11 = vld [vmem:[#allocation2 + $0x112] sm:$0xff]  ;;  %12924 = vst [vmem:[#allocation62_spill] sm:$0xff] %v11183_v3 }
  0xec   : > { %12923 = vst [vmem:[#allocation61_spill] sm:$0xff] %v11181_v11 }
  0xee   : > { %9070 = vmatmul.mubr.msk.f32.gmra.mrb[18].mxu0 %vm311_vm1, %v11165_v41  ;;  %v11191_v41 = vld [vmem:[#allocation2 + $0x13a] sm:$0xff] }
  0xef   : > { %9072 = vmatprep.mubr.msk.f32.mxu0 %vm311_vm1, %v11167_v4  ;;  %v11189_v4 = vld [vmem:[#allocation2 + $0x12a] sm:$0xff]  ;;  %12925 = vst [vmem:[#allocation63_spill] sm:$0xff] %v11191_v41 }
  0xf2   : > { %9073 = vmatmul.mubr.msk.f32.gmra.mrb[20].mxu0 %vm311_vm1, %v11173_v63  ;;  %v11199_v63 = vld [vmem:[#allocation2 + $0x152] sm:$0xff] }
  0xf3   : > { %9075 = vmatprep.mubr.msk.f32.mxu0 %vm311_vm1, %v11175_v0  ;;  %v11197_v0 = vld [vmem:[#allocation2 + $0x142] sm:$0xff]  ;;  %12926 = vst [vmem:[#allocation64_spill] sm:$0xff] %v11199_v63 }
  0xf6   : > { %9076 = vmatmul.mubr.msk.f32.gmra.mrb[22].mxu0 %vm311_vm1, %v11181_v11  ;;  %v11207_v11 = vld [vmem:[#allocation2 + $0x16a] sm:$0xff] }
  0xf7   : > { %9078 = vmatprep.mubr.msk.f32.mxu0 %vm311_vm1, %v11183_v3  ;;  %v11205_v3 = vld [vmem:[#allocation2 + $0x15a] sm:$0xff]  ;;  %12927 = vst [vmem:[#allocation65_spill] sm:$0xff] %v11207_v11 }
  0xfa   : > { %9079 = vmatmul.mubr.msk.f32.gmra.mrb[24].mxu0 %vm311_vm1, %v11189_v4 }
  0xfb   : > { %9081 = vmatprep.mubr.msk.f32.mxu0 %vm311_vm1, %v11191_v41  ;;  %v11213_v41 = vld [vmem:[#allocation2 + $0x172] sm:$0xff] }
  0xfe   : > { %9082 = vmatmul.mubr.msk.f32.gmra.mrb[26].mxu0 %vm311_vm1, %v11197_v0 }
  0xff   : > { %9084 = vmatprep.mubr.msk.f32.mxu0 %vm311_vm1, %v11199_v63  ;;  %v7897_v63 = vld [vmem:[%s12714_s1 + $0x14] sm:$0xf] }
 0x102   : > { %9085 = vmatmul.mubr.msk.f32.gmra.mrb[28].mxu0 %vm311_vm1, %v11205_v3 }
 0x103   : > { %9087 = vmatprep.mubr.msk.f32.mxu0 %vm311_vm1, %v11207_v11 }
 0x106   : > { %9088 = vmatmul.mubr.msk.f32.gmra.mrb[30].mxu0 %vm311_vm1, %v11213_v41 }
 0x107   : > { %9092 = vmatprep.mubr.msk.f32.mxu0 %vm311_vm1, %v10946_v8  ;;  %v7931_v8 = vld [vmem:[%s12714_s1 + $0x18] sm:$0xf] }
 0x10a   : > { %9093 = vmatmul.mubr.msk.f32.vlgmr.msra.gmra.mrb[0].mxu0 %vm311_vm1, %v10958_v42  ;;  %v11281_v42 = vld [vmem:[#allocation2 + $0x180] sm:$0xff] }
 0x10b   : > { %9141 = vmatpush3.msk.msra.mxu0 %vm563_vm0, %v11092_v1  ;;  %9095 = vmatprep.mubr.msk.f32.mxu0 %vm311_vm1, %v10960_v39  ;;  %v11287_v1 = vld [vmem:[#allocation2 + $0x188] sm:$0xff] }
 0x10c   : > { %9190 = vmatprep.subr.msk.mxu0 %vm563_vm0, %v7897_v63 }
 0x10e   : > { %9096 = vmatmul.mubr.msk.f32.gmra.mrb[2].mxu0 %vm311_vm1, %v10968_v2 }
 0x10f   : > { %9098 = vmatprep.mubr.msk.f32.mxu0 %vm311_vm1, %v10970_v7 }
 0x112   : > { %9099 = vmatmul.mubr.msk.f32.gmra.mrb[4].mxu0 %vm311_vm1, %v10976_v6 }
 0x113   : > { %9101 = vmatprep.mubr.msk.f32.mxu0 %vm311_vm1, %v10978_v40 }
 0x116   : > { %9102 = vmatmul.mubr.msk.f32.gmra.mrb[6].mxu0 %vm311_vm1, %v10984_v37 }
 0x117   : > { %9104 = vmatprep.mubr.msk.f32.mxu0 %vm311_vm1, %v10986_v38 }
 0x11a   : > { %9105 = vmatmul.mubr.msk.f32.gmra.mrb[8].mxu0 %vm311_vm1, %v10992_v31 }
 0x11b   : > { %9107 = vmatprep.mubr.msk.f32.mxu0 %vm311_vm1, %v10994_v32 }
 0x11e   : > { %9108 = vmatmul.mubr.msk.f32.gmra.mrb[10].mxu0 %vm311_vm1, %v11000_v26 }
 0x11f   : > { %9110 = vmatprep.mubr.msk.f32.mxu0 %vm311_vm1, %v11002_v27 }
 0x122   : > { %9111 = vmatmul.mubr.msk.f32.gmra.mrb[12].mxu0 %vm311_vm1, %v11008_v24 }
 0x123   : > { %9113 = vmatprep.mubr.msk.f32.mxu0 %vm311_vm1, %v11010_v25 }
 0x126   : > { %9114 = vmatmul.mubr.msk.f32.gmra.mrb[14].mxu0 %vm311_vm1, %v11016_v22 }
 0x127   : > { %9116 = vmatprep.mubr.msk.f32.mxu0 %vm311_vm1, %v11018_v23 }
 0x12a   : > { %9117 = vmatmul.mubr.msk.f32.gmra.mrb[16].mxu0 %vm311_vm1, %v11024_v20 }
 0x12b   : > { %9119 = vmatprep.mubr.msk.f32.mxu0 %vm311_vm1, %v11026_v21 }
 0x12e   : > { %9120 = vmatmul.mubr.msk.f32.gmra.mrb[18].mxu0 %vm311_vm1, %v11032_v18 }
 0x12f   : > { %9122 = vmatprep.mubr.msk.f32.mxu0 %vm311_vm1, %v11034_v19 }
 0x132   : > { %9123 = vmatmul.mubr.msk.f32.gmra.mrb[20].mxu0 %vm311_vm1, %v11040_v16 }
 0x133   : > { %9125 = vmatprep.mubr.msk.f32.mxu0 %vm311_vm1, %v11042_v17 }
 0x136   : > { %9126 = vmatmul.mubr.msk.f32.gmra.mrb[22].mxu0 %vm311_vm1, %v11048_v14 }
 0x137   : > { %9128 = vmatprep.mubr.msk.f32.mxu0 %vm311_vm1, %v11050_v15 }
 0x13a   : > { %9129 = vmatmul.mubr.msk.f32.gmra.mrb[24].mxu0 %vm311_vm1, %v11056_v12 }
 0x13b   : > { %9131 = vmatprep.mubr.msk.f32.mxu0 %vm311_vm1, %v11058_v13 }
 0x13e   : > { %9132 = vmatmul.mubr.msk.f32.gmra.mrb[26].mxu0 %vm311_vm1, %v11074_v5 }
 0x13f   : > { %9134 = vmatprep.mubr.msk.f32.mxu0 %vm311_vm1, %v11076_v9 }
 0x142   : > { %9135 = vmatmul.mubr.msk.f32.gmra.mrb[28].mxu0 %vm311_vm1, %v11082_v10 }
 0x143   : > { %9137 = vmatprep.mubr.msk.f32.mxu0 %vm311_vm1, %v11281_v42 }
 0x146   : > { %9138 = vmatmul.mubr.msk.f32.gmra.mrb[30].mxu0 %vm311_vm1, %v11287_v1 }
 0x147   : > { %9142 = vmatprep.mubr.msk.f32.mxu0 %vm311_vm1, %v10779_v28  ;;  %v12928_v28 = vld [vmem:[#allocation35_spill] sm:$0xff] }
 0x14a   : > { %9143 = vmatmul.mubr.msk.f32.vlgmr.msra.gmra.mrb[0].mxu0 %vm311_vm1, %v10781_v29  ;;  %v12929_v29 = vld [vmem:[#allocation36_spill] sm:$0xff] }
 0x14b   : > { %9191 = vmatpush3.msk.msra.mxu0 %vm563_vm0, %v7897_v63  ;;  %9145 = vmatprep.mubr.msk.f32.mxu0 %vm311_vm1, %v10783_v30  ;;  %v11354_v30 = vld [vmem:[#allocation2 + $0x181] sm:$0xff]  ;;  %v7965_v63 = vld [vmem:[%s12714_s1 + $0x1c] sm:$0xf] }
 0x14c   : > { %9240 = vmatprep.subr.msk.mxu0 %vm563_vm0, %v7931_v8  ;;  %12930 = vst [vmem:[#allocation66_spill] sm:$0xff] %v11354_v30 }
 0x14e   : > { %9146 = vmatmul.mubr.msk.f32.gmra.mrb[2].mxu0 %vm311_vm1, %v10807_v33  ;;  %v12931_v33 = vld [vmem:[#allocation37_spill] sm:$0xff] }
 0x14f   : > { %9148 = vmatprep.mubr.msk.f32.mxu0 %vm311_vm1, %v10809_v34  ;;  %v11360_v34 = vld [vmem:[#allocation2 + $0x189] sm:$0xff] }
 0x150   : > { %12932 = vst [vmem:[#allocation67_spill] sm:$0xff] %v11360_v34 }
 0x152   : > { %9149 = vmatmul.mubr.msk.f32.gmra.mrb[4].mxu0 %vm311_vm1, %v10815_v35  ;;  %v12933_v35 = vld [vmem:[#allocation40_spill] sm:$0xff] }
 0x153   : > { %9151 = vmatprep.mubr.msk.f32.mxu0 %vm311_vm1, %v10817_v36 }
 0x156   : > { %9152 = vmatmul.mubr.msk.f32.gmra.mrb[6].mxu0 %vm311_vm1, %v10849_v43 }
 0x157   : > { %9154 = vmatprep.mubr.msk.f32.mxu0 %vm311_vm1, %v10855_v44 }
 0x15a   : > { %9155 = vmatmul.mubr.msk.f32.gmra.mrb[8].mxu0 %vm311_vm1, %v10861_v45 }
 0x15b   : > { %9157 = vmatprep.mubr.msk.f32.mxu0 %vm311_vm1, %v10863_v46 }
 0x15e   : > { %9158 = vmatmul.mubr.msk.f32.gmra.mrb[10].mxu0 %vm311_vm1, %v10869_v47 }
 0x15f   : > { %9160 = vmatprep.mubr.msk.f32.mxu0 %vm311_vm1, %v10871_v48 }
 0x162   : > { %9161 = vmatmul.mubr.msk.f32.gmra.mrb[12].mxu0 %vm311_vm1, %v10877_v49 }
 0x163   : > { %9163 = vmatprep.mubr.msk.f32.mxu0 %vm311_vm1, %v10879_v50 }
 0x166   : > { %9164 = vmatmul.mubr.msk.f32.gmra.mrb[14].mxu0 %vm311_vm1, %v10885_v51 }
 0x167   : > { %9166 = vmatprep.mubr.msk.f32.mxu0 %vm311_vm1, %v10887_v52 }
 0x16a   : > { %9167 = vmatmul.mubr.msk.f32.gmra.mrb[16].mxu0 %vm311_vm1, %v10893_v53 }
 0x16b   : > { %9169 = vmatprep.mubr.msk.f32.mxu0 %vm311_vm1, %v10895_v54 }
 0x16e   : > { %9170 = vmatmul.mubr.msk.f32.gmra.mrb[18].mxu0 %vm311_vm1, %v10901_v55 }
 0x16f   : > { %9172 = vmatprep.mubr.msk.f32.mxu0 %vm311_vm1, %v10903_v56 }
 0x172   : > { %9173 = vmatmul.mubr.msk.f32.gmra.mrb[20].mxu0 %vm311_vm1, %v10909_v57 }
 0x173   : > { %9175 = vmatprep.mubr.msk.f32.mxu0 %vm311_vm1, %v10911_v58 }
 0x176   : > { %9176 = vmatmul.mubr.msk.f32.gmra.mrb[22].mxu0 %vm311_vm1, %v10917_v59 }
 0x177   : > { %9178 = vmatprep.mubr.msk.f32.mxu0 %vm311_vm1, %v10919_v60 }
 0x17a   : > { %9179 = vmatmul.mubr.msk.f32.gmra.mrb[24].mxu0 %vm311_vm1, %v10925_v61 }
 0x17b   : > { %9181 = vmatprep.mubr.msk.f32.mxu0 %vm311_vm1, %v10927_v62  ;;  %v12943_v62 = vld [vmem:[#allocation50_spill] sm:$0xff] }
 0x17e   : > { %9182 = vmatmul.mubr.msk.f32.gmra.mrb[26].mxu0 %vm311_vm1, %v12928_v28  ;;  %v12939_v28 = vld [vmem:[#allocation46_spill] sm:$0xff] }
 0x17f   : > { %9184 = vmatprep.mubr.msk.f32.mxu0 %vm311_vm1, %v12929_v29  ;;  %v12934_v29 = vld [vmem:[#allocation41_spill] sm:$0xff] }
 0x182   : > { %9185 = vmatmul.mubr.msk.f32.gmra.mrb[28].mxu0 %vm311_vm1, %v12931_v33  ;;  %v12935_v33 = vld [vmem:[#allocation42_spill] sm:$0xff] }
 0x183   : > { %9187 = vmatprep.mubr.msk.f32.mxu0 %vm311_vm1, %v11354_v30  ;;  %v12936_v30 = vld [vmem:[#allocation43_spill] sm:$0xff] }
 0x186   : > { %9188 = vmatmul.mubr.msk.f32.gmra.mrb[30].mxu0 %vm311_vm1, %v11360_v34  ;;  %v12937_v34 = vld [vmem:[#allocation44_spill] sm:$0xff] }
 0x187   : > { %9192 = vmatprep.mubr.msk.f32.mxu0 %vm311_vm1, %v12933_v35  ;;  %v12938_v35 = vld [vmem:[#allocation45_spill] sm:$0xff] }
 0x18a   : > { %9193 = vmatmul.mubr.msk.f32.vlgmr.msra.gmra.mrb[0].mxu0 %vm311_vm1, %v12934_v29  ;;  %v12940_v29 = vld [vmem:[#allocation47_spill] sm:$0xff] }
 0x18b   : > { %9241 = vmatpush3.msk.msra.mxu0 %vm563_vm0, %v7931_v8  ;;  %9195 = vmatprep.mubr.msk.f32.mxu0 %vm311_vm1, %v12935_v33  ;;  %v12941_v8 = vld [vmem:[#allocation48_spill] sm:$0xff]  ;;  %v12942_v33 = vld [vmem:[#allocation49_spill] sm:$0xff] }
 0x18c   : > { %9290 = vmatprep.subr.msk.mxu0 %vm563_vm0, %v7965_v63 }
 0x18e   : > { %9196 = vmatmul.mubr.msk.f32.gmra.mrb[2].mxu0 %vm311_vm1, %v12936_v30  ;;  %v12944_v30 = vld [vmem:[#allocation51_spill] sm:$0xff] }
 0x18f   : > { %9198 = vmatprep.mubr.msk.f32.mxu0 %vm311_vm1, %v12937_v34  ;;  %v12945_v34 = vld [vmem:[#allocation52_spill] sm:$0xff] }
 0x192   : > { %9199 = vmatmul.mubr.msk.f32.gmra.mrb[4].mxu0 %vm311_vm1, %v12938_v35  ;;  %v12946_v35 = vld [vmem:[#allocation53_spill] sm:$0xff] }
 0x193   : > { %9201 = vmatprep.mubr.msk.f32.mxu0 %vm311_vm1, %v12939_v28  ;;  %v12947_v28 = vld [vmem:[#allocation54_spill] sm:$0xff] }
 0x196   : > { %9202 = vmatmul.mubr.msk.f32.gmra.mrb[6].mxu0 %vm311_vm1, %v12940_v29  ;;  %v12948_v29 = vld [vmem:[#allocation55_spill] sm:$0xff] }
 0x197   : > { %9204 = vmatprep.mubr.msk.f32.mxu0 %vm311_vm1, %v12941_v8  ;;  %v12949_v8 = vld [vmem:[#allocation56_spill] sm:$0xff] }
 0x19a   : > { %9205 = vmatmul.mubr.msk.f32.gmra.mrb[8].mxu0 %vm311_vm1, %v12942_v33  ;;  %v12950_v33 = vld [vmem:[#allocation57_spill] sm:$0xff] }
 0x19b   : > { %9207 = vmatprep.mubr.msk.f32.mxu0 %vm311_vm1, %v12943_v62  ;;  %v12951_v62 = vld [vmem:[#allocation58_spill] sm:$0xff] }
 0x19e   : > { %9208 = vmatmul.mubr.msk.f32.gmra.mrb[10].mxu0 %vm311_vm1, %v12944_v30  ;;  %v12952_v30 = vld [vmem:[#allocation59_spill] sm:$0xff] }
 0x19f   : > { %9210 = vmatprep.mubr.msk.f32.mxu0 %vm311_vm1, %v12945_v34  ;;  %v12953_v34 = vld [vmem:[#allocation60_spill] sm:$0xff] }
 0x1a2   : > { %9211 = vmatmul.mubr.msk.f32.gmra.mrb[12].mxu0 %vm311_vm1, %v12946_v35  ;;  %v12954_v35 = vld [vmem:[#allocation61_spill] sm:$0xff] }
 0x1a3   : > { %9213 = vmatprep.mubr.msk.f32.mxu0 %vm311_vm1, %v12947_v28  ;;  %v12955_v28 = vld [vmem:[#allocation62_spill] sm:$0xff] }
 0x1a6   : > { %9214 = vmatmul.mubr.msk.f32.gmra.mrb[14].mxu0 %vm311_vm1, %v12948_v29 }
 0x1a7   : > { %9216 = vmatprep.mubr.msk.f32.mxu0 %vm311_vm1, %v12949_v8  ;;  %v12956_v8 = vld [vmem:[#allocation63_spill] sm:$0xff] }
 0x1aa   : > { %9217 = vmatmul.mubr.msk.f32.gmra.mrb[16].mxu0 %vm311_vm1, %v12950_v33 }
 0x1ab   : > { %9219 = vmatprep.mubr.msk.f32.mxu0 %vm311_vm1, %v12951_v62  ;;  %v12957_v62 = vld [vmem:[#allocation64_spill] sm:$0xff] }
 0x1ae   : > { %9220 = vmatmul.mubr.msk.f32.gmra.mrb[18].mxu0 %vm311_vm1, %v12952_v30 }
 0x1af   : > { %9222 = vmatprep.mubr.msk.f32.mxu0 %vm311_vm1, %v12953_v34 }
 0x1b2   : > { %9223 = vmatmul.mubr.msk.f32.gmra.mrb[20].mxu0 %vm311_vm1, %v12954_v35  ;;  %v11427_v35 = vld [vmem:[#allocation2 + $0x182] sm:$0xff] }
 0x1b3   : > { %9225 = vmatprep.mubr.msk.f32.mxu0 %vm311_vm1, %v12955_v28 }
 0x1b6   : > { %9226 = vmatmul.mubr.msk.f32.gmra.mrb[22].mxu0 %vm311_vm1, %v11189_v4 }
 0x1b7   : > { %9228 = vmatprep.mubr.msk.f32.mxu0 %vm311_vm1, %v12956_v8  ;;  %v11433_v8 = vld [vmem:[#allocation2 + $0x18a] sm:$0xff] }
 0x1ba   : > { %9229 = vmatmul.mubr.msk.f32.gmra.mrb[24].mxu0 %vm311_vm1, %v11197_v0 }
 0x1bb   : > { %9231 = vmatprep.mubr.msk.f32.mxu0 %vm311_vm1, %v12957_v62 }
 0x1be   : > { %9232 = vmatmul.mubr.msk.f32.gmra.mrb[26].mxu0 %vm311_vm1, %v11205_v3 }
 0x1bf   : > { %9234 = vmatprep.mubr.msk.f32.mxu0 %vm311_vm1, %v11207_v11  ;;  %v7999_v11 = vld [vmem:[%s12714_s1 + $0x20] sm:$0xf] }
 0x1c2   : > { %9235 = vmatmul.mubr.msk.f32.gmra.mrb[28].mxu0 %vm311_vm1, %v11213_v41 }
 0x1c3   : > { %9237 = vmatprep.mubr.msk.f32.mxu0 %vm311_vm1, %v11427_v35 }
 0x1c6   : > { %9238 = vmatmul.mubr.msk.f32.gmra.mrb[30].mxu0 %vm311_vm1, %v11433_v8 }
 0x1c7   : > { %9242 = vmatprep.mubr.msk.f32.mxu0 %vm311_vm1, %v10960_v39  ;;  %v12974_v39 = vld [vmem:[#allocation52_spill] sm:$0xff] }
 0x1ca   : > { %9243 = vmatmul.mubr.msk.f32.vlgmr.msra.gmra.mrb[0].mxu0 %vm311_vm1, %v10968_v2 }
 0x1cb   : > { %9291 = vmatpush3.msk.msra.mxu0 %vm563_vm0, %v7965_v63  ;;  %9245 = vmatprep.mubr.msk.f32.mxu0 %vm311_vm1, %v10970_v7 }
 0x1cc   : > { %9340 = vmatprep.subr.msk.mxu0 %vm563_vm0, %v7999_v11 }
 0x1ce   : > { %9246 = vmatmul.mubr.msk.f32.gmra.mrb[2].mxu0 %vm311_vm1, %v10976_v6 }
 0x1cf   : > { %9248 = vmatprep.mubr.msk.f32.mxu0 %vm311_vm1, %v10978_v40  ;;  %v12975_v40 = vld [vmem:[#allocation53_spill] sm:$0xff] }
 0x1d2   : > { %9249 = vmatmul.mubr.msk.f32.gmra.mrb[4].mxu0 %vm311_vm1, %v10984_v37  ;;  %v12972_v37 = vld [vmem:[#allocation50_spill] sm:$0xff] }
 0x1d3   : > { %9251 = vmatprep.mubr.msk.f32.mxu0 %vm311_vm1, %v10986_v38  ;;  %v12973_v38 = vld [vmem:[#allocation51_spill] sm:$0xff] }
 0x1d6   : > { %9252 = vmatmul.mubr.msk.f32.gmra.mrb[6].mxu0 %vm311_vm1, %v10992_v31  ;;  %v12969_v31 = vld [vmem:[#allocation47_spill] sm:$0xff] }
 0x1d7   : > { %9254 = vmatprep.mubr.msk.f32.mxu0 %vm311_vm1, %v10994_v32  ;;  %v12970_v32 = vld [vmem:[#allocation48_spill] sm:$0xff] }
 0x1da   : > { %9255 = vmatmul.mubr.msk.f32.gmra.mrb[8].mxu0 %vm311_vm1, %v11000_v26  ;;  %v12967_v26 = vld [vmem:[#allocation45_spill] sm:$0xff] }
 0x1db   : > { %9257 = vmatprep.mubr.msk.f32.mxu0 %vm311_vm1, %v11002_v27  ;;  %v12968_v27 = vld [vmem:[#allocation46_spill] sm:$0xff] }
 0x1de   : > { %9258 = vmatmul.mubr.msk.f32.gmra.mrb[10].mxu0 %vm311_vm1, %v11008_v24  ;;  %v12965_v24 = vld [vmem:[#allocation43_spill] sm:$0xff] }
 0x1df   : > { %9260 = vmatprep.mubr.msk.f32.mxu0 %vm311_vm1, %v11010_v25  ;;  %v12966_v25 = vld [vmem:[#allocation44_spill] sm:$0xff] }
 0x1e2   : > { %9261 = vmatmul.mubr.msk.f32.gmra.mrb[12].mxu0 %vm311_vm1, %v11016_v22  ;;  %v3098_v22 = vld [vmem:[#allocation2 + $0x1a1] sm:$0xff] }
 0x1e3   : > { %9263 = vmatprep.mubr.msk.f32.mxu0 %vm311_vm1, %v11018_v23  ;;  %v12964_v23 = vld [vmem:[#allocation42_spill] sm:$0xff] }
 0x1e6   : > { %9264 = vmatmul.mubr.msk.f32.gmra.mrb[14].mxu0 %vm311_vm1, %v11024_v20  ;;  %v3097_v20 = vld [vmem:[#allocation2 + $0x199] sm:$0xff] }
 0x1e7   : > { %9266 = vmatprep.mubr.msk.f32.mxu0 %vm311_vm1, %v11026_v21  ;;  %v12963_v21 = vld [vmem:[#allocation67_spill] sm:$0xff] }
 0x1ea   : > { %9267 = vmatmul.mubr.msk.f32.gmra.mrb[16].mxu0 %vm311_vm1, %v11032_v18  ;;  %v12961_v18 = vld [vmem:[#allocation37_spill] sm:$0xff] }
 0x1eb   : > { %9269 = vmatprep.mubr.msk.f32.mxu0 %vm311_vm1, %v11034_v19  ;;  %v12962_v19 = vld [vmem:[#allocation66_spill] sm:$0xff] }
 0x1ee   : > { %9270 = vmatmul.mubr.msk.f32.gmra.mrb[18].mxu0 %vm311_vm1, %v11040_v16  ;;  %v12959_v16 = vld [vmem:[#allocation35_spill] sm:$0xff] }
 0x1ef   : > { %9272 = vmatprep.mubr.msk.f32.mxu0 %vm311_vm1, %v11042_v17  ;;  %v12960_v17 = vld [vmem:[#allocation36_spill] sm:$0xff] }
 0x1f2   : > { %9273 = vmatmul.mubr.msk.f32.gmra.mrb[20].mxu0 %vm311_vm1, %v11048_v14  ;;  %v2707_v14 = vld [vmem:[#allocation2 + $0x198] sm:$0xff] }
 0x1f3   : > { %9275 = vmatprep.mubr.msk.f32.mxu0 %vm311_vm1, %v11050_v15  ;;  %v12958_v15 = vld [vmem:[#allocation34_spill] sm:$0xff] }
 0x1f6   : > { %9276 = vmatmul.mubr.msk.f32.gmra.mrb[22].mxu0 %vm311_vm1, %v11056_v12  ;;  %v2708_v12 = vld [vmem:[#allocation2 + $0x1a0] sm:$0xff] }
 0x1f7   : > { %9278 = vmatprep.mubr.msk.f32.mxu0 %vm311_vm1, %v11058_v13  ;;  %v3067_v13 = vld [vmem:[#allocation2 + $0x31] sm:$0xff] }
 0x1fa   : > { %9279 = vmatmul.mubr.msk.f32.gmra.mrb[24].mxu0 %vm311_vm1, %v11074_v5  ;;  %v3068_v5 = vld [vmem:[#allocation2 + $0x39] sm:$0xff] }
 0x1fb   : > { %9281 = vmatprep.mubr.msk.f32.mxu0 %vm311_vm1, %v11076_v9  ;;  %v3069_v9 = vld [vmem:[#allocation2 + $0x49] sm:$0xff] }
 0x1fe   : > { %9282 = vmatmul.mubr.msk.f32.gmra.mrb[26].mxu0 %vm311_vm1, %v11082_v10  ;;  %v3070_v10 = vld [vmem:[#allocation2 + $0x51] sm:$0xff] }
 0x1ff   : > { %9284 = vmatprep.mubr.msk.f32.mxu0 %vm311_vm1, %v11281_v42 }
 0x202   : > { %9285 = vmatmul.mubr.msk.f32.gmra.mrb[28].mxu0 %vm311_vm1, %v11287_v1 }
 0x203   : > { %9287 = vmatprep.mubr.msk.f32.mxu0 %vm311_vm1, %v2707_v14 }
 0x206   : > { %9288 = vmatmul.mubr.msk.f32.gmra.mrb[30].mxu0 %vm311_vm1, %v2708_v12 }
 0x207   : > { %9292 = vmatprep.mubr.msk.f32.mxu0 %vm311_vm1, %v3067_v13 }
 0x20a   : > { %9293 = vmatmul.mubr.msk.f32.vlgmr.msra.gmra.mrb[0].mxu0 %vm311_vm1, %v3068_v5 }
 0x20b   : > { %9341 = vmatpush3.msk.msra.mxu0 %vm563_vm0, %v7999_v11  ;;  %9295 = vmatprep.mubr.msk.f32.mxu0 %vm311_vm1, %v3069_v9 }
 0x20e   : > { %9296 = vmatmul.mubr.msk.f32.gmra.mrb[2].mxu0 %vm311_vm1, %v3070_v10 }
 0x20f   : > { %9298 = vmatprep.mubr.msk.f32.mxu0 %vm311_vm1, %v10817_v36  ;;  %v12971_v36 = vld [vmem:[#allocation49_spill] sm:$0xff] }
 0x212   : > { %9299 = vmatmul.mubr.msk.f32.gmra.mrb[4].mxu0 %vm311_vm1, %v10849_v43  ;;  %v12976_v43 = vld [vmem:[#allocation54_spill] sm:$0xff] }
 0x213   : > { %9301 = vmatprep.mubr.msk.f32.mxu0 %vm311_vm1, %v10855_v44  ;;  %v12977_v44 = vld [vmem:[#allocation56_spill] sm:$0xff] }
 0x216   : > { %9302 = vmatmul.mubr.msk.f32.gmra.mrb[6].mxu0 %vm311_vm1, %v10861_v45  ;;  %v12978_v45 = vld [vmem:[#allocation58_spill] sm:$0xff] }
 0x217   : > { %9304 = vmatprep.mubr.msk.f32.mxu0 %vm311_vm1, %v10863_v46  ;;  %v12979_v46 = vld [vmem:[#allocation61_spill] sm:$0xff] }
 0x21a   : > { %9305 = vmatmul.mubr.msk.f32.gmra.mrb[8].mxu0 %vm311_vm1, %v10869_v47  ;;  %v12980_v47 = vld [vmem:[#allocation63_spill] sm:$0xff] }
 0x21b   : > { %9307 = vmatprep.mubr.msk.f32.mxu0 %vm311_vm1, %v10871_v48  ;;  %v12981_v48 = vld [vmem:[#allocation65_spill] sm:$0xff] }
 0x21e   : > { %9308 = vmatmul.mubr.msk.f32.gmra.mrb[10].mxu0 %vm311_vm1, %v10877_v49  ;;  %v3488_v49 = vld [vmem:[#allocation2 + $0x1a2] sm:$0xff] }
 0x21f   : > { %9310 = vmatprep.mubr.msk.f32.mxu0 %vm311_vm1, %v10879_v50  ;;  %v8035_v50 = vld [vmem:[%s12715_s2 + $0x4] sm:$0xf] }
 0x220   : > { %9390 = vmatprep.subr.msk.mxu1 %vm563_vm0, %v8035_v50 }
 0x221   : > { %9391 = vmatpush3.msk.msra.mxu1 %vm563_vm0, %v8035_v50 }
 0x222   : > { %9311 = vmatmul.mubr.msk.f32.gmra.mrb[12].mxu0 %vm311_vm1, %v10885_v51  ;;  %v4077_v51 = vld [vmem:[#allocation3 + $0x1] sm:$0xff] }
 0x223   : > { %9313 = vmatprep.mubr.msk.f32.mxu0 %vm311_vm1, %v10887_v52  ;;  %9392 = vmatprep.mubr.msk.f32.mxu1 %vm311_vm1, %v4077_v51  ;;  %v4078_v52 = vld [vmem:[#allocation3 + $0x9] sm:$0xff] }
 0x224   : > { %9393 = vmatmul.mubr.msk.f32.vlgmr.msra.gmra.mrb[0].mxu1 %vm311_vm1, %v4078_v52 }
 0x226   : > { %9314 = vmatmul.mubr.msk.f32.gmra.mrb[14].mxu0 %vm311_vm1, %v10893_v53  ;;  %v4076_v53 = vld [vmem:[%s12715_s2] sm:$0xf] }
 0x227   : > { %9316 = vmatprep.mubr.msk.f32.mxu0 %vm311_vm1, %v10895_v54  ;;  %9440 = vmatprep.subr.msk.mxu1 %vm563_vm0, %v4076_v53  ;;  %v11640_v54 = vld [vmem:[%s12715_s2 + $0x8] sm:$0xf] }
 0x228   : > { %9441 = vmatpush3.msk.msra.mxu1 %vm563_vm0, %v4076_v53 }
 0x229   : > { %9490 = vmatprep.subr.msk.mxu1 %vm563_vm0, %v11640_v54 }
 0x22a   : > { %9317 = vmatmul.mubr.msk.f32.gmra.mrb[16].mxu0 %vm311_vm1, %v10901_v55  ;;  %v11647_v55 = vld [vmem:[%s12716_s3] ss:$0 sm:$0xff] }
 0x22b   : > { %9319 = vmatprep.mubr.msk.f32.mxu0 %vm311_vm1, %v10903_v56 }
 0x22e   : > { %9320 = vmatmul.mubr.msk.f32.gmra.mrb[18].mxu0 %vm311_vm1, %v10909_v57  ;;  %v11652_v57 = vld [vmem:[%s12717_s4] ss:$0 sm:$0xff] }
 0x22f   : > { %9322 = vmatprep.mubr.msk.f32.mxu0 %vm311_vm1, %v10911_v58 }
 0x232   : > { %9323 = vmatmul.mubr.msk.f32.gmra.mrb[20].mxu0 %vm311_vm1, %v10917_v59 }
 0x233   : > { %9325 = vmatprep.mubr.msk.f32.mxu0 %vm311_vm1, %v10919_v60 }
 0x236   : > { %9326 = vmatmul.mubr.msk.f32.gmra.mrb[22].mxu0 %vm311_vm1, %v10925_v61 }
 0x237   : > { %9328 = vmatprep.mubr.msk.f32.mxu0 %vm311_vm1, %v12958_v15 }
 0x23a   : > { %9329 = vmatmul.mubr.msk.f32.gmra.mrb[24].mxu0 %vm311_vm1, %v12959_v16 }
 0x23b   : > { %9331 = vmatprep.mubr.msk.f32.mxu0 %vm311_vm1, %v12960_v17 }
 0x23e   : > { %9332 = vmatmul.mubr.msk.f32.gmra.mrb[26].mxu0 %vm311_vm1, %v12961_v18 }
 0x23f   : > { %9334 = vmatprep.mubr.msk.f32.mxu0 %vm311_vm1, %v12962_v19 }
 0x242   : > { %9335 = vmatmul.mubr.msk.f32.gmra.mrb[28].mxu0 %vm311_vm1, %v12963_v21 }
 0x243   : > { %9337 = vmatprep.mubr.msk.f32.mxu0 %vm311_vm1, %v3097_v20 }
 0x246   : > { %9338 = vmatmul.mubr.msk.f32.gmra.mrb[30].mxu0 %vm311_vm1, %v3098_v22 }
 0x247   : > { %9342 = vmatprep.mubr.msk.f32.mxu0 %vm311_vm1, %v12964_v23 }
 0x24a   : > { %9343 = vmatmul.mubr.msk.f32.vlgmr.msra.gmra.mrb[0].mxu0 %vm311_vm1, %v12965_v24 }
 0x24b   : > { %9345 = vmatprep.mubr.msk.f32.mxu0 %vm311_vm1, %v12966_v25 }
 0x24e   : > { %9346 = vmatmul.mubr.msk.f32.gmra.mrb[2].mxu0 %vm311_vm1, %v12967_v26 }
 0x24f   : > { %9348 = vmatprep.mubr.msk.f32.mxu0 %vm311_vm1, %v12968_v27 }
 0x252   : > { %9349 = vmatmul.mubr.msk.f32.gmra.mrb[4].mxu0 %vm311_vm1, %v12969_v31 }
 0x253   : > { %9351 = vmatprep.mubr.msk.f32.mxu0 %vm311_vm1, %v12970_v32 }
 0x256   : > { %9352 = vmatmul.mubr.msk.f32.gmra.mrb[6].mxu0 %vm311_vm1, %v12971_v36 }
 0x257   : > { %9354 = vmatprep.mubr.msk.f32.mxu0 %vm311_vm1, %v12972_v37 }
 0x25a   : > { %9355 = vmatmul.mubr.msk.f32.gmra.mrb[8].mxu0 %vm311_vm1, %v12973_v38 }
 0x25b   : > { %9357 = vmatprep.mubr.msk.f32.mxu0 %vm311_vm1, %v12974_v39 }
 0x25e   : > { %9358 = vmatmul.mubr.msk.f32.gmra.mrb[10].mxu0 %vm311_vm1, %v12975_v40 }
 0x25f   : > { %9360 = vmatprep.mubr.msk.f32.mxu0 %vm311_vm1, %v12976_v43 }
 0x262   : > { %9361 = vmatmul.mubr.msk.f32.gmra.mrb[12].mxu0 %vm311_vm1, %v12948_v29 }
 0x263   : > { %9363 = vmatprep.mubr.msk.f32.mxu0 %vm311_vm1, %v12977_v44 }
 0x266   : > { %9364 = vmatmul.mubr.msk.f32.gmra.mrb[14].mxu0 %vm311_vm1, %v12950_v33 }
 0x267   : > { %9366 = vmatprep.mubr.msk.f32.mxu0 %vm311_vm1, %v12978_v45 }
 0x26a   : > { %9367 = vmatmul.mubr.msk.f32.gmra.mrb[16].mxu0 %vm311_vm1, %v12952_v30 }
 0x26b   : > { %9369 = vmatprep.mubr.msk.f32.mxu0 %vm311_vm1, %v12953_v34 }
 0x26e   : > { %9370 = vmatmul.mubr.msk.f32.gmra.mrb[18].mxu0 %vm311_vm1, %v12979_v46 }
 0x26f   : > { %9372 = vmatprep.mubr.msk.f32.mxu0 %vm311_vm1, %v12955_v28 }
 0x272   : > { %9373 = vmatmul.mubr.msk.f32.gmra.mrb[20].mxu0 %vm311_vm1, %v11189_v4  ;;  %v3487_v4 = vld [vmem:[#allocation2 + $0x19a] sm:$0xff] }
 0x273   : > { %9375 = vmatprep.mubr.msk.f32.mxu0 %vm311_vm1, %v12980_v47 }
 0x276   : > { %9376 = vmatmul.mubr.msk.f32.gmra.mrb[22].mxu0 %vm311_vm1, %v11197_v0 }
 0x277   : > { %9378 = vmatprep.mubr.msk.f32.mxu0 %vm311_vm1, %v12957_v62 }
 0x27a   : > { %9379 = vmatmul.mubr.msk.f32.gmra.mrb[24].mxu0 %vm311_vm1, %v11205_v3 }
 0x27b   : > { %9381 = vmatprep.mubr.msk.f32.mxu0 %vm311_vm1, %v12981_v48 }
 0x27e   : > { %9382 = vmatmul.mubr.msk.f32.gmra.mrb[26].mxu0 %vm311_vm1, %v11213_v41 }
 0x27f   : > { %9384 = vmatprep.mubr.msk.f32.mxu0 %vm311_vm1, %v11427_v35 }
 0x282   : > { %9385 = vmatmul.mubr.msk.f32.gmra.mrb[28].mxu0 %vm311_vm1, %v11433_v8 }
 0x283   : > { %9387 = vmatprep.mubr.msk.f32.mxu0 %vm311_vm1, %v3487_v4 }
 0x286   : > { %9388 = vmatmul.mubr.msk.f32.gmra.mrb[30].mxu0 %vm311_vm1, %v3488_v49 }
 0x31d   : > { %v9344_v56 = vpop.f32.mrb[0].mxu0 }
 0x31e   : > { %v3855_v58 = vmul.f32 %v9344_v56, %v11647_v55  ;;  %v3656_v59 = vpop.f32.mrb[1].mxu0 }
 0x31f   : > { %v3854_v60 = vmul.f32 %v11647_v55, %v3656_v59 }
 0x320   : > { %v3894_v61 = vadd.f32 %v11652_v57, %v3855_v58 }
 0x321   : > { %v3893_v62 = vadd.f32 %v11652_v57, %v3854_v60  ;;  %v9347_v0 = vpop.f32.mrb[2].mxu0 }
 0x322   : > { %v3926_v2 = vmax.f32 %v3894_v61, 0.0  ;;  %v3857_v7 = vmul.f32 %v9347_v0, %v11647_v55  ;;  %v3666_v6 = vpop.f32.mrb[3].mxu0 }
 0x323   : > { %v3925_v3 = vmax.f32 %v3893_v62, 0.0  ;;  %v3856_v11 = vmul.f32 %v11647_v55, %v3666_v6 }
 0x324   : > { %4013 = vst.msk [vmem:[#allocation3 + $0x21] sm:$0xff] %vm311_vm1, %v3926_v2  ;;  %v3896_v41 = vadd.f32 %v11652_v57, %v3857_v7 }
 0x325   : > { %4012 = vst.msk [vmem:[#allocation3 + $0x19] sm:$0xff] %vm311_vm1, %v3925_v3  ;;  %v3895_v42 = vadd.f32 %v11652_v57, %v3856_v11  ;;  %v9350_v1 = vpop.f32.mrb[4].mxu0 }
 0x326   : > { %v3928_v28 = vmax.f32 %v3896_v41, 0.0  ;;  %v3859_v30 = vmul.f32 %v9350_v1, %v11647_v55  ;;  %v3676_v33 = vpop.f32.mrb[5].mxu0 }
 0x327   : > { %v3927_v34 = vmax.f32 %v3895_v42, 0.0  ;;  %v3858_v63 = vmul.f32 %v11647_v55, %v3676_v33 }
 0x328   : > { %4015 = vst.msk [vmem:[#allocation3 + $0x39] sm:$0xff] %vm311_vm1, %v3928_v28  ;;  %v3898_v35 = vadd.f32 %v11652_v57, %v3859_v30 }
 0x329   : > { %4014 = vst.msk [vmem:[#allocation3 + $0x31] sm:$0xff] %vm311_vm1, %v3927_v34  ;;  %v3897_v29 = vadd.f32 %v11652_v57, %v3858_v63  ;;  %v9353_v8 = vpop.f32.mrb[6].mxu0 }
 0x32a   : > { %v3930_v14 = vmax.f32 %v3898_v35, 0.0  ;;  %v3861_v12 = vmul.f32 %v9353_v8, %v11647_v55  ;;  %v3686_v13 = vpop.f32.mrb[7].mxu0 }
 0x32b   : > { %v3929_v5 = vmax.f32 %v3897_v29, 0.0  ;;  %v3860_v9 = vmul.f32 %v11647_v55, %v3686_v13  ;;  %v11680_v18 = vld [vmem:[#allocation3 + $0x21] sm:$0xff] }
 0x32c   : > { %4017 = vst.msk [vmem:[#allocation3 + $0x51] sm:$0xff] %vm311_vm1, %v3930_v14  ;;  %v3900_v10 = vadd.f32 %v11652_v57, %v3861_v12  ;;  %v11674_v15 = vld [vmem:[#allocation3 + $0x19] sm:$0xff] }
 0x32d   : > { %4016 = vst.msk [vmem:[#allocation3 + $0x49] sm:$0xff] %vm311_vm1, %v3929_v5  ;;  %v3899_v16 = vadd.f32 %v11652_v57, %v3860_v9  ;;  %v9356_v17 = vpop.f32.mrb[8].mxu0  ;;  %9395 = vmatprep.mubr.msk.f32.mxu1 %vm311_vm1, %v11674_v15 }
 0x32e   : > { %v3932_v19 = vmax.f32 %v3900_v10, 0.0  ;;  %v3863_v20 = vmul.f32 %v9356_v17, %v11647_v55  ;;  %v3696_v21 = vpop.f32.mrb[9].mxu0  ;;  %9396 = vmatmul.mubr.msk.f32.gmra.mrb[2].mxu1 %vm311_vm1, %v11680_v18 }
 0x32f   : > { %v3931_v22 = vmax.f32 %v3899_v16, 0.0  ;;  %v3862_v23 = vmul.f32 %v11647_v55, %v3696_v21  ;;  %v11694_v31 = vld [vmem:[#allocation3 + $0x39] sm:$0xff] }
 0x330   : > { %4019 = vst.msk [vmem:[#allocation3 + $0x69] sm:$0xff] %vm311_vm1, %v3932_v19  ;;  %v3902_v24 = vadd.f32 %v11652_v57, %v3863_v20  ;;  %v11688_v25 = vld [vmem:[#allocation3 + $0x31] sm:$0xff] }
 0x331   : > { %4018 = vst.msk [vmem:[#allocation3 + $0x61] sm:$0xff] %vm311_vm1, %v3931_v22  ;;  %v3901_v26 = vadd.f32 %v11652_v57, %v3862_v23  ;;  %v9359_v27 = vpop.f32.mrb[10].mxu0  ;;  %9398 = vmatprep.mubr.msk.f32.mxu1 %vm311_vm1, %v11688_v25 }
 0x332   : > { %v3934_v32 = vmax.f32 %v3902_v24, 0.0  ;;  %v3865_v36 = vmul.f32 %v9359_v27, %v11647_v55  ;;  %v3706_v37 = vpop.f32.mrb[11].mxu0  ;;  %9399 = vmatmul.mubr.msk.f32.gmra.mrb[4].mxu1 %vm311_vm1, %v11694_v31 }
 0x333   : > { %v3933_v38 = vmax.f32 %v3901_v26, 0.0  ;;  %v3864_v39 = vmul.f32 %v11647_v55, %v3706_v37  ;;  %v11708_v46 = vld [vmem:[#allocation3 + $0x51] sm:$0xff] }
 0x334   : > { %4021 = vst.msk [vmem:[#allocation3 + $0x81] sm:$0xff] %vm311_vm1, %v3934_v32  ;;  %v3904_v40 = vadd.f32 %v11652_v57, %v3865_v36  ;;  %v11702_v43 = vld [vmem:[#allocation3 + $0x49] sm:$0xff] }
 0x335   : > { %4020 = vst.msk [vmem:[#allocation3 + $0x79] sm:$0xff] %vm311_vm1, %v3933_v38  ;;  %v3903_v44 = vadd.f32 %v11652_v57, %v3864_v39  ;;  %v9362_v45 = vpop.f32.mrb[12].mxu0  ;;  %9401 = vmatprep.mubr.msk.f32.mxu1 %vm311_vm1, %v11702_v43 }
 0x336   : > { %v3936_v47 = vmax.f32 %v3904_v40, 0.0  ;;  %v3867_v48 = vmul.f32 %v9362_v45, %v11647_v55  ;;  %v3716_v4 = vpop.f32.mrb[13].mxu0  ;;  %9402 = vmatmul.mubr.msk.f32.gmra.mrb[6].mxu1 %vm311_vm1, %v11708_v46 }
 0x337   : > { %v3935_v49 = vmax.f32 %v3903_v44, 0.0  ;;  %v3866_v50 = vmul.f32 %v11647_v55, %v3716_v4  ;;  %v11722_v58 = vld [vmem:[#allocation3 + $0x69] sm:$0xff] }
 0x338   : > { %4023 = vst.msk [vmem:[#allocation3 + $0x99] sm:$0xff] %vm311_vm1, %v3936_v47  ;;  %v3906_v51 = vadd.f32 %v11652_v57, %v3867_v48  ;;  %v11716_v52 = vld [vmem:[#allocation3 + $0x61] sm:$0xff] }
 0x339   : > { %4022 = vst.msk [vmem:[#allocation3 + $0x91] sm:$0xff] %vm311_vm1, %v3935_v49  ;;  %v3905_v53 = vadd.f32 %v11652_v57, %v3866_v50  ;;  %v9365_v56 = vpop.f32.mrb[14].mxu0  ;;  %9404 = vmatprep.mubr.msk.f32.mxu1 %vm311_vm1, %v11716_v52 }
 0x33a   : > { %v3938_v59 = vmax.f32 %v3906_v51, 0.0  ;;  %v3869_v60 = vmul.f32 %v9365_v56, %v11647_v55  ;;  %v3726_v61 = vpop.f32.mrb[15].mxu0  ;;  %9405 = vmatmul.mubr.msk.f32.gmra.mrb[8].mxu1 %vm311_vm1, %v11722_v58 }
 0x33b   : > { %v3937_v62 = vmax.f32 %v3905_v53, 0.0  ;;  %v3868_v0 = vmul.f32 %v11647_v55, %v3726_v61  ;;  %v11736_v11 = vld [vmem:[#allocation3 + $0x81] sm:$0xff] }
 0x33c   : > { %4025 = vst.msk [vmem:[#allocation3 + $0xb1] sm:$0xff] %vm311_vm1, %v3938_v59  ;;  %v3908_v2 = vadd.f32 %v11652_v57, %v3869_v60  ;;  %v11730_v7 = vld [vmem:[#allocation3 + $0x79] sm:$0xff] }
 0x33d   : > { %4024 = vst.msk [vmem:[#allocation3 + $0xa9] sm:$0xff] %vm311_vm1, %v3937_v62  ;;  %v3907_v6 = vadd.f32 %v11652_v57, %v3868_v0  ;;  %v9368_v3 = vpop.f32.mrb[16].mxu0  ;;  %9407 = vmatprep.mubr.msk.f32.mxu1 %vm311_vm1, %v11730_v7 }
 0x33e   : > { %v3940_v41 = vmax.f32 %v3908_v2, 0.0  ;;  %v3871_v42 = vmul.f32 %v9368_v3, %v11647_v55  ;;  %v3736_v1 = vpop.f32.mrb[17].mxu0  ;;  %9408 = vmatmul.mubr.msk.f32.gmra.mrb[10].mxu1 %vm311_vm1, %v11736_v11 }
 0x33f   : > { %v3939_v28 = vmax.f32 %v3907_v6, 0.0  ;;  %v3870_v30 = vmul.f32 %v11647_v55, %v3736_v1  ;;  %v11750_v29 = vld [vmem:[#allocation3 + $0x99] sm:$0xff] }
 0x340   : > { %4027 = vst.msk [vmem:[#allocation3 + $0xc9] sm:$0xff] %vm311_vm1, %v3940_v41  ;;  %v3910_v33 = vadd.f32 %v11652_v57, %v3871_v42  ;;  %v11744_v34 = vld [vmem:[#allocation3 + $0x91] sm:$0xff] }
 0x341   : > { %4026 = vst.msk [vmem:[#allocation3 + $0xc1] sm:$0xff] %vm311_vm1, %v3939_v28  ;;  %v3909_v63 = vadd.f32 %v11652_v57, %v3870_v30  ;;  %v9371_v35 = vpop.f32.mrb[18].mxu0  ;;  %9410 = vmatprep.mubr.msk.f32.mxu1 %vm311_vm1, %v11744_v34 }
 0x342   : > { %v3942_v8 = vmax.f32 %v3910_v33, 0.0  ;;  %v3873_v14 = vmul.f32 %v9371_v35, %v11647_v55  ;;  %v3746_v12 = vpop.f32.mrb[19].mxu0  ;;  %9411 = vmatmul.mubr.msk.f32.gmra.mrb[12].mxu1 %vm311_vm1, %v11750_v29 }
 0x343   : > { %v3941_v13 = vmax.f32 %v3909_v63, 0.0  ;;  %v3872_v5 = vmul.f32 %v11647_v55, %v3746_v12  ;;  %v11764_v19 = vld [vmem:[#allocation3 + $0xb1] sm:$0xff] }
 0x344   : > { %4029 = vst.msk [vmem:[#allocation3 + $0xe1] sm:$0xff] %vm311_vm1, %v3942_v8  ;;  %v3912_v9 = vadd.f32 %v11652_v57, %v3873_v14  ;;  %v11758_v10 = vld [vmem:[#allocation3 + $0xa9] sm:$0xff] }
 0x345   : > { %4028 = vst.msk [vmem:[#allocation3 + $0xd9] sm:$0xff] %vm311_vm1, %v3941_v13  ;;  %v3911_v16 = vadd.f32 %v11652_v57, %v3872_v5  ;;  %v9374_v17 = vpop.f32.mrb[20].mxu0  ;;  %9413 = vmatprep.mubr.msk.f32.mxu1 %vm311_vm1, %v11758_v10 }
 0x346   : > { %v3944_v20 = vmax.f32 %v3912_v9, 0.0  ;;  %v3875_v21 = vmul.f32 %v9374_v17, %v11647_v55  ;;  %v3756_v22 = vpop.f32.mrb[21].mxu0  ;;  %9414 = vmatmul.mubr.msk.f32.gmra.mrb[14].mxu1 %vm311_vm1, %v11764_v19 }
 0x347   : > { %v3943_v23 = vmax.f32 %v3911_v16, 0.0  ;;  %v3874_v24 = vmul.f32 %v11647_v55, %v3756_v22  ;;  %v11778_v37 = vld [vmem:[#allocation3 + $0xc9] sm:$0xff] }
 0x348   : > { %4031 = vst.msk [vmem:[#allocation3 + $0xf9] sm:$0xff] %vm311_vm1, %v3944_v20  ;;  %v3914_v26 = vadd.f32 %v11652_v57, %v3875_v21  ;;  %v11772_v27 = vld [vmem:[#allocation3 + $0xc1] sm:$0xff] }
 0x349   : > { %4030 = vst.msk [vmem:[#allocation3 + $0xf1] sm:$0xff] %vm311_vm1, %v3943_v23  ;;  %v3913_v32 = vadd.f32 %v11652_v57, %v3874_v24  ;;  %v9377_v36 = vpop.f32.mrb[22].mxu0  ;;  %9416 = vmatprep.mubr.msk.f32.mxu1 %vm311_vm1, %v11772_v27 }
 0x34a   : > { %v3946_v38 = vmax.f32 %v3914_v26, 0.0  ;;  %v3877_v39 = vmul.f32 %v9377_v36, %v11647_v55  ;;  %v3766_v40 = vpop.f32.mrb[23].mxu0  ;;  %9417 = vmatmul.mubr.msk.f32.gmra.mrb[16].mxu1 %vm311_vm1, %v11778_v37 }
 0x34b   : > { %v3945_v44 = vmax.f32 %v3913_v32, 0.0  ;;  %v3876_v45 = vmul.f32 %v11647_v55, %v3766_v40  ;;  %v11792_v50 = vld [vmem:[#allocation3 + $0xe1] sm:$0xff] }
 0x34c   : > { %4033 = vst.msk [vmem:[#allocation3 + $0x111] sm:$0xff] %vm311_vm1, %v3946_v38  ;;  %v3916_v47 = vadd.f32 %v11652_v57, %v3877_v39  ;;  %v11786_v48 = vld [vmem:[#allocation3 + $0xd9] sm:$0xff] }
 0x34d   : > { %4032 = vst.msk [vmem:[#allocation3 + $0x109] sm:$0xff] %vm311_vm1, %v3945_v44  ;;  %v3915_v4 = vadd.f32 %v11652_v57, %v3876_v45  ;;  %v9380_v49 = vpop.f32.mrb[24].mxu0  ;;  %9419 = vmatprep.mubr.msk.f32.mxu1 %vm311_vm1, %v11786_v48 }
 0x34e   : > { %v3948_v51 = vmax.f32 %v3916_v47, 0.0  ;;  %v3879_v53 = vmul.f32 %v9380_v49, %v11647_v55  ;;  %v3776_v56 = vpop.f32.mrb[25].mxu0  ;;  %9420 = vmatmul.mubr.msk.f32.gmra.mrb[18].mxu1 %vm311_vm1, %v11792_v50  ;;  %v4044_v49 = vld [vmem:[#allocation3] sm:$0xff] }
 0x34f   : > { %v3947_v59 = vmax.f32 %v3915_v4, 0.0  ;;  %v3878_v60 = vmul.f32 %v11647_v55, %v3776_v56  ;;  %v11806_v6 = vld [vmem:[#allocation3 + $0xf9] sm:$0xff] }
 0x350   : > { %4035 = vst.msk [vmem:[#allocation3 + $0x129] sm:$0xff] %vm311_vm1, %v3948_v51  ;;  %v3918_v61 = vadd.f32 %v11652_v57, %v3879_v53  ;;  %v11800_v62 = vld [vmem:[#allocation3 + $0xf1] sm:$0xff]  ;;  %v4045_v53 = vld [vmem:[#allocation3 + $0x8] sm:$0xff]  ;;  %v11874_v56 = vld [vmem:[%s12715_s2 + $0xc] sm:$0xf] }
 0x351   : > { %4034 = vst.msk [vmem:[#allocation3 + $0x121] sm:$0xff] %vm311_vm1, %v3947_v59  ;;  %v3917_v0 = vadd.f32 %v11652_v57, %v3878_v60  ;;  %v9383_v2 = vpop.f32.mrb[26].mxu0  ;;  %9422 = vmatprep.mubr.msk.f32.mxu1 %vm311_vm1, %v11800_v62  ;;  %v11877_v59 = vld [vmem:[#allocation3 + $0x18] sm:$0xff]  ;;  %v11885_v60 = vld [vmem:[#allocation3 + $0x20] sm:$0xff] }
 0x352   : > { %v3950_v3 = vmax.f32 %v3918_v61, 0.0  ;;  %v3881_v41 = vmul.f32 %v9383_v2, %v11647_v55  ;;  %v3786_v42 = vpop.f32.mrb[27].mxu0  ;;  %9423 = vmatmul.mubr.msk.f32.gmra.mrb[20].mxu1 %vm311_vm1, %v11806_v6  ;;  %v11889_v61 = vld [vmem:[#allocation3 + $0x30] sm:$0xff] }
 0x353   : > { %v3949_v1 = vmax.f32 %v3917_v0, 0.0  ;;  %v3880_v28 = vmul.f32 %v11647_v55, %v3786_v42  ;;  %v11820_v8 = vld [vmem:[#allocation3 + $0x111] sm:$0xff] }
 0x354   : > { %4037 = vst.msk [vmem:[#allocation3 + $0x141] sm:$0xff] %vm311_vm1, %v3950_v3  ;;  %v3920_v30 = vadd.f32 %v11652_v57, %v3881_v41  ;;  %v11814_v33 = vld [vmem:[#allocation3 + $0x109] sm:$0xff]  ;;  %v11893_v0 = vld [vmem:[#allocation3 + $0x38] sm:$0xff]  ;;  %v11905_v3 = vld [vmem:[#allocation3 + $0x60] sm:$0xff] }
 0x355   : > { %4036 = vst.msk [vmem:[#allocation3 + $0x139] sm:$0xff] %vm311_vm1, %v3949_v1  ;;  %v3919_v63 = vadd.f32 %v11652_v57, %v3880_v28  ;;  %v9386_v35 = vpop.f32.mrb[28].mxu0  ;;  %9425 = vmatprep.mubr.msk.f32.mxu1 %vm311_vm1, %v11814_v33  ;;  %v11901_v2 = vld [vmem:[#allocation3 + $0x50] sm:$0xff]  ;;  %v11909_v41 = vld [vmem:[#allocation3 + $0x68] sm:$0xff]  ;;  %v11913_v42 = vld [vmem:[#allocation3 + $0x78] sm:$0xff] }
 0x356   : > { %v3952_v14 = vmax.f32 %v3920_v30, 0.0  ;;  %v3883_v12 = vmul.f32 %v9386_v35, %v11647_v55  ;;  %v3796_v13 = vpop.f32.mrb[29].mxu0  ;;  %9426 = vmatmul.mubr.msk.f32.gmra.mrb[22].mxu1 %vm311_vm1, %v11820_v8  ;;  %v11917_v1 = vld [vmem:[#allocation3 + $0x80] sm:$0xff]  ;;  %v11921_v28 = vld [vmem:[#allocation3 + $0x90] sm:$0xff]  ;;  %v11925_v30 = vld [vmem:[#allocation3 + $0x98] sm:$0xff] }
 0x357   : > { %v3951_v5 = vmax.f32 %v3919_v63, 0.0  ;;  %v3882_v9 = vmul.f32 %v11647_v55, %v3796_v13  ;;  %v11834_v22 = vld [vmem:[#allocation3 + $0x129] sm:$0xff]  ;;  %v11945_v13 = vld [vmem:[#allocation3 + $0xd8] sm:$0xff] }
 0x358   : > { %4039 = vst.msk [vmem:[#allocation3 + $0x159] sm:$0xff] %vm311_vm1, %v3952_v14  ;;  %v3922_v16 = vadd.f32 %v11652_v57, %v3883_v12  ;;  %v11828_v17 = vld [vmem:[#allocation3 + $0x121] sm:$0xff]  ;;  %v11933_v35 = vld [vmem:[#allocation3 + $0xb0] sm:$0xff] }
 0x359   : > { %4038 = vst.msk [vmem:[#allocation3 + $0x151] sm:$0xff] %vm311_vm1, %v3951_v5  ;;  %v3921_v20 = vadd.f32 %v11652_v57, %v3882_v9  ;;  %v9389_v21 = vpop.f32.mrb[30].mxu0  ;;  %9428 = vmatprep.mubr.msk.f32.mxu1 %vm311_vm1, %v11828_v17  ;;  %v11929_v63 = vld [vmem:[#allocation3 + $0xa8] sm:$0xff]  ;;  %v11937_v14 = vld [vmem:[#allocation3 + $0xc0] sm:$0xff]  ;;  %v11953_v9 = vld [vmem:[#allocation3 + $0xf0] sm:$0xff] }
 0x35a   : > { %v3954_v23 = vmax.f32 %v3922_v16, 0.0  ;;  %v3885_v24 = vmul.f32 %v9389_v21, %v11647_v55  ;;  %v3806_v26 = vpop.f32.mrb[31].mxu0  ;;  %9429 = vmatmul.mubr.msk.f32.gmra.mrb[24].mxu1 %vm311_vm1, %v11834_v22  ;;  %v11941_v12 = vld [vmem:[#allocation3 + $0xc8] sm:$0xff]  ;;  %v11949_v5 = vld [vmem:[#allocation3 + $0xe0] sm:$0xff]  ;;  %v11957_v16 = vld [vmem:[#allocation3 + $0xf8] sm:$0xff] }
 0x35b   : > { %v3953_v32 = vmax.f32 %v3921_v20, 0.0  ;;  %v3884_v36 = vmul.f32 %v11647_v55, %v3806_v26  ;;  %v11848_v44 = vld [vmem:[#allocation3 + $0x141] sm:$0xff]  ;;  %v11965_v21 = vld [vmem:[#allocation3 + $0x110] sm:$0xff] }
 0x35c   : > { %4041 = vst.msk [vmem:[#allocation3 + $0x171] sm:$0xff] %vm311_vm1, %v3954_v23  ;;  %v3924_v38 = vadd.f32 %v11652_v57, %v3885_v24  ;;  %v11842_v39 = vld [vmem:[#allocation3 + $0x139] sm:$0xff]  ;;  %v11961_v20 = vld [vmem:[#allocation3 + $0x108] sm:$0xff] }
 0x35d   : > { %4040 = vst.msk [vmem:[#allocation3 + $0x169] sm:$0xff] %vm311_vm1, %v3953_v32  ;;  %v3923_v40 = vadd.f32 %v11652_v57, %v3884_v36  ;;  %9431 = vmatprep.mubr.msk.f32.mxu1 %vm311_vm1, %v11842_v39  ;;  %v11969_v23 = vld [vmem:[#allocation3 + $0x120] sm:$0xff]  ;;  %v11973_v24 = vld [vmem:[#allocation3 + $0x128] sm:$0xff]  ;;  %v11977_v26 = vld [vmem:[#allocation3 + $0x138] sm:$0xff] }
 0x35e   : > { %v3956_v45 = vmax.f32 %v3924_v38, 0.0  ;;  %9432 = vmatmul.mubr.msk.f32.gmra.mrb[26].mxu1 %vm311_vm1, %v11848_v44  ;;  %v11981_v32 = vld [vmem:[#allocation3 + $0x140] sm:$0xff] }
 0x35f   : > { %v3955_v55 = vmax.f32 %v3923_v40, 0.0  ;;  %v11858_v57 = vld [vmem:[#allocation3 + $0x159] sm:$0xff] }
 0x360   : > { %4043 = vst.msk [vmem:[#allocation3 + $0x189] sm:$0xff] %vm311_vm1, %v3956_v45  ;;  %v11853_v47 = vld [vmem:[#allocation3 + $0x151] sm:$0xff]  ;;  %v4759_v45 = vld [vmem:[#allocation3 + $0x2] sm:$0xff] }
 0x361   : > { %4042 = vst.msk [vmem:[#allocation3 + $0x181] sm:$0xff] %vm311_vm1, %v3955_v55  ;;  %9434 = vmatprep.mubr.msk.f32.mxu1 %vm311_vm1, %v11853_v47  ;;  %v11985_v36 = vld [vmem:[#allocation3 + $0x150] sm:$0xff]  ;;  %v11989_v38 = vld [vmem:[#allocation3 + $0x158] sm:$0xff] }
 0x362   : > { %9435 = vmatmul.mubr.msk.f32.gmra.mrb[28].mxu1 %vm311_vm1, %v11858_v57 }
 0x363   : > { %v11866_v51 = vld [vmem:[#allocation3 + $0x171] sm:$0xff] }
 0x364   : > { %v11862_v4 = vld [vmem:[#allocation3 + $0x169] sm:$0xff]  ;;  %12983 = vst [vmem:[#allocation41_spill] sm:$0xff] %v11866_v51 }
 0x365   : > { %12982 = vst [vmem:[#allocation40_spill] sm:$0xff] %v11862_v4  ;;  %9437 = vmatprep.mubr.msk.f32.mxu1 %vm311_vm1, %v11862_v4  ;;  %v11993_v40 = vld [vmem:[#allocation3 + $0x168] sm:$0xff]  ;;  %v11997_v55 = vld [vmem:[#allocation3 + $0x170] sm:$0xff] }
 0x366   : > { %9438 = vmatmul.mubr.msk.f32.gmra.mrb[30].mxu1 %vm311_vm1, %v11866_v51  ;;  %v12008_v51 = vld [vmem:[#allocation3 + $0x1a] sm:$0xff]  ;;  %v12020_v4 = vld [vmem:[#allocation3 + $0x32] sm:$0xff] }
 0x367   : > { %9442 = vmatprep.mubr.msk.f32.mxu1 %vm311_vm1, %v4044_v49  ;;  %v4760_v49 = vld [vmem:[#allocation3 + $0xa] sm:$0xff]  ;;  %12984 = vst [vmem:[#allocation55_spill] sm:$0xff] %v12008_v51  ;;  %12986 = vst [vmem:[#allocation59_spill] sm:$0xff] %v12020_v4 }
 0x36a   : > { %9443 = vmatmul.mubr.msk.f32.vlgmr.msra.gmra.mrb[0].mxu1 %vm311_vm1, %v4045_v53  ;;  %v12005_v53 = vld [vmem:[%s12715_s2 + $0x10] sm:$0xf] }
 0x36b   : > { %9491 = vmatpush3.msk.msra.mxu1 %vm563_vm0, %v11640_v54  ;;  %9445 = vmatprep.mubr.msk.f32.mxu1 %vm311_vm1, %v11877_v59  ;;  %v11897_v54 = vld [vmem:[#allocation3 + $0x48] sm:$0xff] }
 0x36c   : > { %9540 = vmatprep.subr.msk.mxu1 %vm563_vm0, %v11874_v56 }
 0x36e   : > { %9446 = vmatmul.mubr.msk.f32.gmra.mrb[2].mxu1 %vm311_vm1, %v11885_v60 }
 0x36f   : > { %9448 = vmatprep.mubr.msk.f32.mxu1 %vm311_vm1, %v11889_v61 }
 0x372   : > { %9449 = vmatmul.mubr.msk.f32.gmra.mrb[4].mxu1 %vm311_vm1, %v11893_v0 }
 0x373   : > { %9451 = vmatprep.mubr.msk.f32.mxu1 %vm311_vm1, %v11897_v54 }
 0x376   : > { %9452 = vmatmul.mubr.msk.f32.gmra.mrb[6].mxu1 %vm311_vm1, %v11901_v2 }
 0x377   : > { %9454 = vmatprep.mubr.msk.f32.mxu1 %vm311_vm1, %v11905_v3 }
 0x37a   : > { %9455 = vmatmul.mubr.msk.f32.gmra.mrb[8].mxu1 %vm311_vm1, %v11909_v41 }
 0x37b   : > { %9457 = vmatprep.mubr.msk.f32.mxu1 %vm311_vm1, %v11913_v42 }
 0x37e   : > { %9458 = vmatmul.mubr.msk.f32.gmra.mrb[10].mxu1 %vm311_vm1, %v11917_v1 }
 0x37f   : > { %9460 = vmatprep.mubr.msk.f32.mxu1 %vm311_vm1, %v11921_v28 }
 0x382   : > { %9461 = vmatmul.mubr.msk.f32.gmra.mrb[12].mxu1 %vm311_vm1, %v11925_v30 }
 0x383   : > { %9463 = vmatprep.mubr.msk.f32.mxu1 %vm311_vm1, %v11929_v63 }
 0x386   : > { %9464 = vmatmul.mubr.msk.f32.gmra.mrb[14].mxu1 %vm311_vm1, %v11933_v35 }
 0x387   : > { %9466 = vmatprep.mubr.msk.f32.mxu1 %vm311_vm1, %v11937_v14 }
 0x38a   : > { %9467 = vmatmul.mubr.msk.f32.gmra.mrb[16].mxu1 %vm311_vm1, %v11941_v12 }
 0x38b   : > { %9469 = vmatprep.mubr.msk.f32.mxu1 %vm311_vm1, %v11945_v13 }
 0x38e   : > { %9470 = vmatmul.mubr.msk.f32.gmra.mrb[18].mxu1 %vm311_vm1, %v11949_v5 }
 0x38f   : > { %9472 = vmatprep.mubr.msk.f32.mxu1 %vm311_vm1, %v11953_v9 }
 0x392   : > { %9473 = vmatmul.mubr.msk.f32.gmra.mrb[20].mxu1 %vm311_vm1, %v11957_v16 }
 0x393   : > { %9475 = vmatprep.mubr.msk.f32.mxu1 %vm311_vm1, %v11961_v20 }
 0x396   : > { %9476 = vmatmul.mubr.msk.f32.gmra.mrb[22].mxu1 %vm311_vm1, %v11965_v21 }
 0x397   : > { %9478 = vmatprep.mubr.msk.f32.mxu1 %vm311_vm1, %v11969_v23 }
 0x39a   : > { %9479 = vmatmul.mubr.msk.f32.gmra.mrb[24].mxu1 %vm311_vm1, %v11973_v24 }
 0x39b   : > { %9481 = vmatprep.mubr.msk.f32.mxu1 %vm311_vm1, %v11977_v26 }
 0x39e   : > { %9482 = vmatmul.mubr.msk.f32.gmra.mrb[26].mxu1 %vm311_vm1, %v11981_v32 }
 0x39f   : > { %9484 = vmatprep.mubr.msk.f32.mxu1 %vm311_vm1, %v11985_v36 }
 0x3a2   : > { %9485 = vmatmul.mubr.msk.f32.gmra.mrb[28].mxu1 %vm311_vm1, %v11989_v38 }
 0x3a3   : > { %9487 = vmatprep.mubr.msk.f32.mxu1 %vm311_vm1, %v11993_v40 }
 0x3a6   : > { %9488 = vmatmul.mubr.msk.f32.gmra.mrb[30].mxu1 %vm311_vm1, %v11997_v55 }
 0x3a7   : > { %9492 = vmatprep.mubr.msk.f32.mxu1 %vm311_vm1, %v4759_v45  ;;  %v12016_v45 = vld [vmem:[#allocation3 + $0x22] sm:$0xff] }
 0x3a8   : > { %12985 = vst [vmem:[#allocation57_spill] sm:$0xff] %v12016_v45 }
 0x3aa   : > { %9493 = vmatmul.mubr.msk.f32.vlgmr.msra.gmra.mrb[0].mxu1 %vm311_vm1, %v4760_v49  ;;  %v12024_v49 = vld [vmem:[#allocation3 + $0x3a] sm:$0xff] }
 0x3ab   : > { %9541 = vmatpush3.msk.msra.mxu1 %vm563_vm0, %v11874_v56  ;;  %9495 = vmatprep.mubr.msk.f32.mxu1 %vm311_vm1, %v12008_v51  ;;  %12987 = vst [vmem:[#allocation60_spill] sm:$0xff] %v12024_v49  ;;  %v12028_v56 = vld [vmem:[#allocation3 + $0x4a] sm:$0xff]  ;;  %v12032_v51 = vld [vmem:[#allocation3 + $0x52] sm:$0xff] }
 0x3ac   : > { %9590 = vmatprep.subr.msk.mxu1 %vm563_vm0, %v12005_v53  ;;  %12988 = vst [vmem:[#allocation62_spill] sm:$0xff] %v12028_v56  ;;  %12989 = vst [vmem:[#allocation64_spill] sm:$0xff] %v12032_v51 }
 0x3ae   : > { %9496 = vmatmul.mubr.msk.f32.gmra.mrb[2].mxu1 %vm311_vm1, %v12016_v45  ;;  %v12036_v45 = vld [vmem:[#allocation3 + $0x62] sm:$0xff] }
 0x3af   : > { %9498 = vmatprep.mubr.msk.f32.mxu1 %vm311_vm1, %v12020_v4  ;;  %12990 = vst [vmem:[#allocation34_spill] sm:$0xff] %v12036_v45  ;;  %v12040_v4 = vld [vmem:[#allocation3 + $0x6a] sm:$0xff] }
 0x3b0   : > { %12991 = vst [vmem:[#allocation35_spill] sm:$0xff] %v12040_v4 }
 0x3b2   : > { %9499 = vmatmul.mubr.msk.f32.gmra.mrb[4].mxu1 %vm311_vm1, %v12024_v49  ;;  %v12044_v49 = vld [vmem:[#allocation3 + $0x7a] sm:$0xff] }
 0x3b3   : > { %9501 = vmatprep.mubr.msk.f32.mxu1 %vm311_vm1, %v12028_v56  ;;  %12992 = vst [vmem:[#allocation36_spill] sm:$0xff] %v12044_v49  ;;  %v12048_v56 = vld [vmem:[#allocation3 + $0x82] sm:$0xff] }
 0x3b4   : > { %12993 = vst [vmem:[#allocation37_spill] sm:$0xff] %v12048_v56 }
 0x3b6   : > { %9502 = vmatmul.mubr.msk.f32.gmra.mrb[6].mxu1 %vm311_vm1, %v12032_v51  ;;  %v12052_v51 = vld [vmem:[#allocation3 + $0x92] sm:$0xff] }
 0x3b7   : > { %9504 = vmatprep.mubr.msk.f32.mxu1 %vm311_vm1, %v12036_v45  ;;  %12994 = vst [vmem:[#allocation66_spill] sm:$0xff] %v12052_v51  ;;  %v12056_v45 = vld [vmem:[#allocation3 + $0x9a] sm:$0xff] }
 0x3b8   : > { %12995 = vst [vmem:[#allocation67_spill] sm:$0xff] %v12056_v45 }
 0x3ba   : > { %9505 = vmatmul.mubr.msk.f32.gmra.mrb[8].mxu1 %vm311_vm1, %v12040_v4  ;;  %v12060_v4 = vld [vmem:[#allocation3 + $0xaa] sm:$0xff] }
 0x3bb   : > { %9507 = vmatprep.mubr.msk.f32.mxu1 %vm311_vm1, %v12044_v49  ;;  %12996 = vst [vmem:[#allocation42_spill] sm:$0xff] %v12060_v4  ;;  %v12064_v49 = vld [vmem:[#allocation3 + $0xb2] sm:$0xff] }
 0x3bc   : > { %12997 = vst [vmem:[#allocation43_spill] sm:$0xff] %v12064_v49 }
 0x3be   : > { %9508 = vmatmul.mubr.msk.f32.gmra.mrb[10].mxu1 %vm311_vm1, %v12048_v56  ;;  %v12068_v56 = vld [vmem:[#allocation3 + $0xc2] sm:$0xff] }
 0x3bf   : > { %9510 = vmatprep.mubr.msk.f32.mxu1 %vm311_vm1, %v12052_v51  ;;  %12998 = vst [vmem:[#allocation44_spill] sm:$0xff] %v12068_v56  ;;  %v12072_v51 = vld [vmem:[#allocation3 + $0xca] sm:$0xff] }
 0x3c0   : > { %12999 = vst [vmem:[#allocation45_spill] sm:$0xff] %v12072_v51 }
 0x3c2   : > { %9511 = vmatmul.mubr.msk.f32.gmra.mrb[12].mxu1 %vm311_vm1, %v12056_v45  ;;  %v12076_v45 = vld [vmem:[#allocation3 + $0xda] sm:$0xff] }
 0x3c3   : > { %9513 = vmatprep.mubr.msk.f32.mxu1 %vm311_vm1, %v12060_v4  ;;  %13000 = vst [vmem:[#allocation46_spill] sm:$0xff] %v12076_v45  ;;  %v12080_v4 = vld [vmem:[#allocation3 + $0xe2] sm:$0xff] }
 0x3c4   : > { %13001 = vst [vmem:[#allocation47_spill] sm:$0xff] %v12080_v4 }
 0x3c6   : > { %9514 = vmatmul.mubr.msk.f32.gmra.mrb[14].mxu1 %vm311_vm1, %v12064_v49  ;;  %v12084_v49 = vld [vmem:[#allocation3 + $0xf2] sm:$0xff] }
 0x3c7   : > { %9516 = vmatprep.mubr.msk.f32.mxu1 %vm311_vm1, %v12068_v56  ;;  %13002 = vst [vmem:[#allocation48_spill] sm:$0xff] %v12084_v49  ;;  %v12088_v56 = vld [vmem:[#allocation3 + $0xfa] sm:$0xff] }
 0x3c8   : > { %13003 = vst [vmem:[#allocation49_spill] sm:$0xff] %v12088_v56 }
 0x3ca   : > { %9517 = vmatmul.mubr.msk.f32.gmra.mrb[16].mxu1 %vm311_vm1, %v12072_v51  ;;  %v12092_v51 = vld [vmem:[#allocation3 + $0x10a] sm:$0xff] }
 0x3cb   : > { %9519 = vmatprep.mubr.msk.f32.mxu1 %vm311_vm1, %v12076_v45  ;;  %13004 = vst [vmem:[#allocation50_spill] sm:$0xff] %v12092_v51  ;;  %v12096_v45 = vld [vmem:[#allocation3 + $0x112] sm:$0xff] }
 0x3cc   : > { %13005 = vst [vmem:[#allocation51_spill] sm:$0xff] %v12096_v45 }
 0x3ce   : > { %9520 = vmatmul.mubr.msk.f32.gmra.mrb[18].mxu1 %vm311_vm1, %v12080_v4  ;;  %v12100_v4 = vld [vmem:[#allocation3 + $0x122] sm:$0xff] }
 0x3cf   : > { %9522 = vmatprep.mubr.msk.f32.mxu1 %vm311_vm1, %v12084_v49  ;;  %13006 = vst [vmem:[#allocation52_spill] sm:$0xff] %v12100_v4  ;;  %v12104_v49 = vld [vmem:[#allocation3 + $0x12a] sm:$0xff] }
 0x3d0   : > { %13007 = vst [vmem:[#allocation53_spill] sm:$0xff] %v12104_v49 }
 0x3d2   : > { %9523 = vmatmul.mubr.msk.f32.gmra.mrb[20].mxu1 %vm311_vm1, %v12088_v56  ;;  %v12108_v56 = vld [vmem:[#allocation3 + $0x13a] sm:$0xff] }
 0x3d3   : > { %9525 = vmatprep.mubr.msk.f32.mxu1 %vm311_vm1, %v12092_v51  ;;  %13008 = vst [vmem:[#allocation54_spill] sm:$0xff] %v12108_v56  ;;  %v12112_v51 = vld [vmem:[#allocation3 + $0x142] sm:$0xff] }
 0x3d6   : > { %9526 = vmatmul.mubr.msk.f32.gmra.mrb[22].mxu1 %vm311_vm1, %v12096_v45  ;;  %v12116_v45 = vld [vmem:[#allocation3 + $0x152] sm:$0xff] }
 0x3d7   : > { %9528 = vmatprep.mubr.msk.f32.mxu1 %vm311_vm1, %v12100_v4  ;;  %13009 = vst [vmem:[#allocation56_spill] sm:$0xff] %v12116_v45  ;;  %v12120_v4 = vld [vmem:[#allocation3 + $0x15a] sm:$0xff] }
 0x3da   : > { %9529 = vmatmul.mubr.msk.f32.gmra.mrb[24].mxu1 %vm311_vm1, %v12104_v49  ;;  %v12124_v49 = vld [vmem:[#allocation3 + $0x16a] sm:$0xff] }
 0x3db   : > { %9531 = vmatprep.mubr.msk.f32.mxu1 %vm311_vm1, %v12108_v56  ;;  %13010 = vst [vmem:[#allocation58_spill] sm:$0xff] %v12124_v49  ;;  %v12128_v56 = vld [vmem:[#allocation3 + $0x172] sm:$0xff] }
 0x3de   : > { %9532 = vmatmul.mubr.msk.f32.gmra.mrb[26].mxu1 %vm311_vm1, %v12112_v51 }
 0x3df   : > { %9534 = vmatprep.mubr.msk.f32.mxu1 %vm311_vm1, %v12116_v45  ;;  %v8204_v45 = vld [vmem:[%s12715_s2 + $0x14] sm:$0xf] }
 0x3e2   : > { %9535 = vmatmul.mubr.msk.f32.gmra.mrb[28].mxu1 %vm311_vm1, %v12120_v4 }
 0x3e3   : > { %9537 = vmatprep.mubr.msk.f32.mxu1 %vm311_vm1, %v12124_v49 }
 0x3e6   : > { %9538 = vmatmul.mubr.msk.f32.gmra.mrb[30].mxu1 %vm311_vm1, %v12128_v56 }
 0x3e7   : > { %9542 = vmatprep.mubr.msk.f32.mxu1 %vm311_vm1, %v11877_v59  ;;  %v12198_v59 = vld [vmem:[#allocation3 + $0x180] sm:$0xff] }
 0x3ea   : > { %9543 = vmatmul.mubr.msk.f32.vlgmr.msra.gmra.mrb[0].mxu1 %vm311_vm1, %v11885_v60  ;;  %v12202_v60 = vld [vmem:[#allocation3 + $0x188] sm:$0xff] }
 0x3eb   : > { %9591 = vmatpush3.msk.msra.mxu1 %vm563_vm0, %v12005_v53  ;;  %9545 = vmatprep.mubr.msk.f32.mxu1 %vm311_vm1, %v11889_v61  ;;  %v8238_v53 = vld [vmem:[%s12715_s2 + $0x18] sm:$0xf] }
 0x3ec   : > { %9640 = vmatprep.subr.msk.mxu1 %vm563_vm0, %v8204_v45 }
 0x3ee   : > { %9546 = vmatmul.mubr.msk.f32.gmra.mrb[2].mxu1 %vm311_vm1, %v11893_v0 }
 0x3ef   : > { %9548 = vmatprep.mubr.msk.f32.mxu1 %vm311_vm1, %v11897_v54 }
 0x3f2   : > { %9549 = vmatmul.mubr.msk.f32.gmra.mrb[4].mxu1 %vm311_vm1, %v11901_v2 }
 0x3f3   : > { %9551 = vmatprep.mubr.msk.f32.mxu1 %vm311_vm1, %v11905_v3 }
 0x3f6   : > { %9552 = vmatmul.mubr.msk.f32.gmra.mrb[6].mxu1 %vm311_vm1, %v11909_v41 }
 0x3f7   : > { %9554 = vmatprep.mubr.msk.f32.mxu1 %vm311_vm1, %v11913_v42 }
 0x3fa   : > { %9555 = vmatmul.mubr.msk.f32.gmra.mrb[8].mxu1 %vm311_vm1, %v11917_v1 }
 0x3fb   : > { %9557 = vmatprep.mubr.msk.f32.mxu1 %vm311_vm1, %v11921_v28 }
 0x3fe   : > { %9558 = vmatmul.mubr.msk.f32.gmra.mrb[10].mxu1 %vm311_vm1, %v11925_v30 }
 0x3ff   : > { %9560 = vmatprep.mubr.msk.f32.mxu1 %vm311_vm1, %v11929_v63 }
 0x402   : > { %9561 = vmatmul.mubr.msk.f32.gmra.mrb[12].mxu1 %vm311_vm1, %v11933_v35 }
 0x403   : > { %9563 = vmatprep.mubr.msk.f32.mxu1 %vm311_vm1, %v11937_v14 }
 0x406   : > { %9564 = vmatmul.mubr.msk.f32.gmra.mrb[14].mxu1 %vm311_vm1, %v11941_v12 }
 0x407   : > { %9566 = vmatprep.mubr.msk.f32.mxu1 %vm311_vm1, %v11945_v13 }
 0x40a   : > { %9567 = vmatmul.mubr.msk.f32.gmra.mrb[16].mxu1 %vm311_vm1, %v11949_v5 }
 0x40b   : > { %9569 = vmatprep.mubr.msk.f32.mxu1 %vm311_vm1, %v11953_v9 }
 0x40e   : > { %9570 = vmatmul.mubr.msk.f32.gmra.mrb[18].mxu1 %vm311_vm1, %v11957_v16 }
 0x40f   : > { %9572 = vmatprep.mubr.msk.f32.mxu1 %vm311_vm1, %v11961_v20 }
 0x412   : > { %9573 = vmatmul.mubr.msk.f32.gmra.mrb[20].mxu1 %vm311_vm1, %v11965_v21 }
 0x413   : > { %9575 = vmatprep.mubr.msk.f32.mxu1 %vm311_vm1, %v11969_v23 }
 0x416   : > { %9576 = vmatmul.mubr.msk.f32.gmra.mrb[22].mxu1 %vm311_vm1, %v11973_v24 }
 0x417   : > { %9578 = vmatprep.mubr.msk.f32.mxu1 %vm311_vm1, %v11977_v26 }
 0x41a   : > { %9579 = vmatmul.mubr.msk.f32.gmra.mrb[24].mxu1 %vm311_vm1, %v11981_v32 }
 0x41b   : > { %9581 = vmatprep.mubr.msk.f32.mxu1 %vm311_vm1, %v11985_v36 }
 0x41e   : > { %9582 = vmatmul.mubr.msk.f32.gmra.mrb[26].mxu1 %vm311_vm1, %v11989_v38 }
 0x41f   : > { %9584 = vmatprep.mubr.msk.f32.mxu1 %vm311_vm1, %v11993_v40 }
 0x422   : > { %9585 = vmatmul.mubr.msk.f32.gmra.mrb[28].mxu1 %vm311_vm1, %v11997_v55 }
 0x423   : > { %9587 = vmatprep.mubr.msk.f32.mxu1 %vm311_vm1, %v12198_v59 }
 0x426   : > { %9588 = vmatmul.mubr.msk.f32.gmra.mrb[30].mxu1 %vm311_vm1, %v12202_v60 }
 0x427   : > { %9592 = vmatprep.mubr.msk.f32.mxu1 %vm311_vm1, %v11674_v15  ;;  %v13011_v15 = vld [vmem:[#allocation40_spill] sm:$0xff] }
 0x42a   : > { %9593 = vmatmul.mubr.msk.f32.vlgmr.msra.gmra.mrb[0].mxu1 %vm311_vm1, %v11680_v18  ;;  %v13012_v18 = vld [vmem:[#allocation41_spill] sm:$0xff] }
 0x42b   : > { %9641 = vmatpush3.msk.msra.mxu1 %vm563_vm0, %v8204_v45  ;;  %9595 = vmatprep.mubr.msk.f32.mxu1 %vm311_vm1, %v11688_v25  ;;  %v12271_v25 = vld [vmem:[#allocation3 + $0x181] sm:$0xff]  ;;  %v13021_v45 = vld [vmem:[#allocation36_spill] sm:$0xff] }
 0x42c   : > { %9690 = vmatprep.subr.msk.mxu1 %vm563_vm0, %v8238_v53 }
 0x42e   : > { %9596 = vmatmul.mubr.msk.f32.gmra.mrb[2].mxu1 %vm311_vm1, %v11694_v31  ;;  %v12275_v31 = vld [vmem:[#allocation3 + $0x189] sm:$0xff] }
 0x42f   : > { %9598 = vmatprep.mubr.msk.f32.mxu1 %vm311_vm1, %v11702_v43  ;;  %v13013_v43 = vld [vmem:[#allocation55_spill] sm:$0xff] }
 0x432   : > { %9599 = vmatmul.mubr.msk.f32.gmra.mrb[4].mxu1 %vm311_vm1, %v11708_v46  ;;  %v8272_v46 = vld [vmem:[%s12715_s2 + $0x1c] sm:$0xf] }
 0x433   : > { %9601 = vmatprep.mubr.msk.f32.mxu1 %vm311_vm1, %v11716_v52  ;;  %v13014_v52 = vld [vmem:[#allocation57_spill] sm:$0xff] }
 0x436   : > { %9602 = vmatmul.mubr.msk.f32.gmra.mrb[6].mxu1 %vm311_vm1, %v11722_v58  ;;  %v13015_v58 = vld [vmem:[#allocation59_spill] sm:$0xff] }
 0x437   : > { %9604 = vmatprep.mubr.msk.f32.mxu1 %vm311_vm1, %v11730_v7  ;;  %v13016_v7 = vld [vmem:[#allocation60_spill] sm:$0xff] }
 0x43a   : > { %9605 = vmatmul.mubr.msk.f32.gmra.mrb[8].mxu1 %vm311_vm1, %v11736_v11  ;;  %v13017_v11 = vld [vmem:[#allocation62_spill] sm:$0xff] }
 0x43b   : > { %9607 = vmatprep.mubr.msk.f32.mxu1 %vm311_vm1, %v11744_v34  ;;  %v13018_v34 = vld [vmem:[#allocation64_spill] sm:$0xff] }
 0x43e   : > { %9608 = vmatmul.mubr.msk.f32.gmra.mrb[10].mxu1 %vm311_vm1, %v11750_v29  ;;  %v13019_v29 = vld [vmem:[#allocation34_spill] sm:$0xff] }
 0x43f   : > { %9610 = vmatprep.mubr.msk.f32.mxu1 %vm311_vm1, %v11758_v10  ;;  %v13020_v10 = vld [vmem:[#allocation35_spill] sm:$0xff] }
 0x442   : > { %9611 = vmatmul.mubr.msk.f32.gmra.mrb[12].mxu1 %vm311_vm1, %v11764_v19 }
 0x443   : > { %9613 = vmatprep.mubr.msk.f32.mxu1 %vm311_vm1, %v11772_v27 }
 0x446   : > { %9614 = vmatmul.mubr.msk.f32.gmra.mrb[14].mxu1 %vm311_vm1, %v11778_v37 }
 0x447   : > { %9616 = vmatprep.mubr.msk.f32.mxu1 %vm311_vm1, %v11786_v48 }
 0x44a   : > { %9617 = vmatmul.mubr.msk.f32.gmra.mrb[16].mxu1 %vm311_vm1, %v11792_v50 }
 0x44b   : > { %9619 = vmatprep.mubr.msk.f32.mxu1 %vm311_vm1, %v11800_v62 }
 0x44e   : > { %9620 = vmatmul.mubr.msk.f32.gmra.mrb[18].mxu1 %vm311_vm1, %v11806_v6 }
 0x44f   : > { %9622 = vmatprep.mubr.msk.f32.mxu1 %vm311_vm1, %v11814_v33 }
 0x452   : > { %9623 = vmatmul.mubr.msk.f32.gmra.mrb[20].mxu1 %vm311_vm1, %v11820_v8 }
 0x453   : > { %9625 = vmatprep.mubr.msk.f32.mxu1 %vm311_vm1, %v11828_v17 }
 0x456   : > { %9626 = vmatmul.mubr.msk.f32.gmra.mrb[22].mxu1 %vm311_vm1, %v11834_v22 }
 0x457   : > { %9628 = vmatprep.mubr.msk.f32.mxu1 %vm311_vm1, %v11842_v39 }
 0x45a   : > { %9629 = vmatmul.mubr.msk.f32.gmra.mrb[24].mxu1 %vm311_vm1, %v11848_v44 }
 0x45b   : > { %9631 = vmatprep.mubr.msk.f32.mxu1 %vm311_vm1, %v11853_v47 }
 0x45e   : > { %9632 = vmatmul.mubr.msk.f32.gmra.mrb[26].mxu1 %vm311_vm1, %v11858_v57 }
 0x45f   : > { %9634 = vmatprep.mubr.msk.f32.mxu1 %vm311_vm1, %v13011_v15 }
 0x462   : > { %9635 = vmatmul.mubr.msk.f32.gmra.mrb[28].mxu1 %vm311_vm1, %v13012_v18 }
 0x463   : > { %9637 = vmatprep.mubr.msk.f32.mxu1 %vm311_vm1, %v12271_v25 }
 0x466   : > { %9638 = vmatmul.mubr.msk.f32.gmra.mrb[30].mxu1 %vm311_vm1, %v12275_v31 }
 0x467   : > { %9642 = vmatprep.mubr.msk.f32.mxu1 %vm311_vm1, %v13013_v43  ;;  %v13023_v43 = vld [vmem:[#allocation66_spill] sm:$0xff] }
 0x46a   : > { %9643 = vmatmul.mubr.msk.f32.vlgmr.msra.gmra.mrb[0].mxu1 %vm311_vm1, %v13014_v52  ;;  %v13024_v52 = vld [vmem:[#allocation67_spill] sm:$0xff] }
 0x46b   : > { %9691 = vmatpush3.msk.msra.mxu1 %vm563_vm0, %v8238_v53  ;;  %9645 = vmatprep.mubr.msk.f32.mxu1 %vm311_vm1, %v13015_v58  ;;  %v13022_v53 = vld [vmem:[#allocation37_spill] sm:$0xff] }
 0x46c   : > { %9740 = vmatprep.subr.msk.mxu1 %vm563_vm0, %v8272_v46 }
 0x46e   : > { %9646 = vmatmul.mubr.msk.f32.gmra.mrb[2].mxu1 %vm311_vm1, %v13016_v7 }
 0x46f   : > { %9648 = vmatprep.mubr.msk.f32.mxu1 %vm311_vm1, %v13017_v11  ;;  %v13025_v11 = vld [vmem:[#allocation42_spill] sm:$0xff] }
 0x472   : > { %9649 = vmatmul.mubr.msk.f32.gmra.mrb[4].mxu1 %vm311_vm1, %v13018_v34  ;;  %v13026_v34 = vld [vmem:[#allocation43_spill] sm:$0xff] }
 0x473   : > { %9651 = vmatprep.mubr.msk.f32.mxu1 %vm311_vm1, %v13019_v29  ;;  %v13027_v29 = vld [vmem:[#allocation44_spill] sm:$0xff] }
 0x476   : > { %9652 = vmatmul.mubr.msk.f32.gmra.mrb[6].mxu1 %vm311_vm1, %v13020_v10  ;;  %v13028_v10 = vld [vmem:[#allocation45_spill] sm:$0xff] }
 0x477   : > { %9654 = vmatprep.mubr.msk.f32.mxu1 %vm311_vm1, %v13021_v45  ;;  %v13029_v45 = vld [vmem:[#allocation46_spill] sm:$0xff] }
 0x47a   : > { %9655 = vmatmul.mubr.msk.f32.gmra.mrb[8].mxu1 %vm311_vm1, %v13022_v53  ;;  %v13030_v53 = vld [vmem:[#allocation47_spill] sm:$0xff] }
 0x47b   : > { %9657 = vmatprep.mubr.msk.f32.mxu1 %vm311_vm1, %v13023_v43  ;;  %v13031_v43 = vld [vmem:[#allocation48_spill] sm:$0xff] }
 0x47e   : > { %9658 = vmatmul.mubr.msk.f32.gmra.mrb[10].mxu1 %vm311_vm1, %v13024_v52  ;;  %v13032_v52 = vld [vmem:[#allocation49_spill] sm:$0xff] }
 0x47f   : > { %9660 = vmatprep.mubr.msk.f32.mxu1 %vm311_vm1, %v13025_v11  ;;  %v13033_v11 = vld [vmem:[#allocation50_spill] sm:$0xff] }
 0x482   : > { %9661 = vmatmul.mubr.msk.f32.gmra.mrb[12].mxu1 %vm311_vm1, %v13026_v34  ;;  %v13034_v34 = vld [vmem:[#allocation51_spill] sm:$0xff] }
 0x483   : > { %9663 = vmatprep.mubr.msk.f32.mxu1 %vm311_vm1, %v13027_v29  ;;  %v13035_v29 = vld [vmem:[#allocation52_spill] sm:$0xff] }
 0x486   : > { %9664 = vmatmul.mubr.msk.f32.gmra.mrb[14].mxu1 %vm311_vm1, %v13028_v10  ;;  %v13036_v10 = vld [vmem:[#allocation53_spill] sm:$0xff] }
 0x487   : > { %9666 = vmatprep.mubr.msk.f32.mxu1 %vm311_vm1, %v13029_v45  ;;  %v13037_v45 = vld [vmem:[#allocation54_spill] sm:$0xff] }
 0x48a   : > { %9667 = vmatmul.mubr.msk.f32.gmra.mrb[16].mxu1 %vm311_vm1, %v13030_v53 }
 0x48b   : > { %9669 = vmatprep.mubr.msk.f32.mxu1 %vm311_vm1, %v13031_v43  ;;  %v13038_v43 = vld [vmem:[#allocation56_spill] sm:$0xff] }
 0x48e   : > { %9670 = vmatmul.mubr.msk.f32.gmra.mrb[18].mxu1 %vm311_vm1, %v13032_v52 }
 0x48f   : > { %9672 = vmatprep.mubr.msk.f32.mxu1 %vm311_vm1, %v13033_v11 }
 0x492   : > { %9673 = vmatmul.mubr.msk.f32.gmra.mrb[20].mxu1 %vm311_vm1, %v13034_v34 }
 0x493   : > { %9675 = vmatprep.mubr.msk.f32.mxu1 %vm311_vm1, %v13035_v29  ;;  %v12344_v29 = vld [vmem:[#allocation3 + $0x182] sm:$0xff] }
 0x496   : > { %9676 = vmatmul.mubr.msk.f32.gmra.mrb[22].mxu1 %vm311_vm1, %v13036_v10 }
 0x497   : > { %9678 = vmatprep.mubr.msk.f32.mxu1 %vm311_vm1, %v13037_v45  ;;  %v12348_v45 = vld [vmem:[#allocation3 + $0x18a] sm:$0xff] }
 0x49a   : > { %9679 = vmatmul.mubr.msk.f32.gmra.mrb[24].mxu1 %vm311_vm1, %v12112_v51 }
 0x49b   : > { %9681 = vmatprep.mubr.msk.f32.mxu1 %vm311_vm1, %v13038_v43 }
 0x49e   : > { %9682 = vmatmul.mubr.msk.f32.gmra.mrb[26].mxu1 %vm311_vm1, %v12120_v4 }
 0x49f   : > { %9684 = vmatprep.mubr.msk.f32.mxu1 %vm311_vm1, %v12124_v49  ;;  %v8306_v49 = vld [vmem:[%s12715_s2 + $0x20] sm:$0xf] }
 0x4a2   : > { %9685 = vmatmul.mubr.msk.f32.gmra.mrb[28].mxu1 %vm311_vm1, %v12128_v56 }
 0x4a3   : > { %9687 = vmatprep.mubr.msk.f32.mxu1 %vm311_vm1, %v12344_v29 }
 0x4a6   : > { %9688 = vmatmul.mubr.msk.f32.gmra.mrb[30].mxu1 %vm311_vm1, %v12348_v45 }
 0x4a7   : > { %9692 = vmatprep.mubr.msk.f32.mxu1 %vm311_vm1, %v11889_v61  ;;  %v6350_v61 = vld [vmem:[#allocation3 + $0x198] sm:$0xff] }
 0x4aa   : > { %9693 = vmatmul.mubr.msk.f32.vlgmr.msra.gmra.mrb[0].mxu1 %vm311_vm1, %v11893_v0  ;;  %v6351_v0 = vld [vmem:[#allocation3 + $0x1a0] sm:$0xff] }
 0x4ab   : > { %9741 = vmatpush3.msk.msra.mxu1 %vm563_vm0, %v8272_v46  ;;  %9695 = vmatprep.mubr.msk.f32.mxu1 %vm311_vm1, %v11897_v54  ;;  %v6710_v54 = vld [vmem:[#allocation3 + $0x31] sm:$0xff] }
 0x4ac   : > { %9790 = vmatprep.subr.msk.mxu1 %vm563_vm0, %v8306_v49 }
 0x4ae   : > { %9696 = vmatmul.mubr.msk.f32.gmra.mrb[2].mxu1 %vm311_vm1, %v11901_v2  ;;  %v6711_v2 = vld [vmem:[#allocation3 + $0x39] sm:$0xff] }
 0x4af   : > { %9698 = vmatprep.mubr.msk.f32.mxu1 %vm311_vm1, %v11905_v3  ;;  %v6712_v3 = vld [vmem:[#allocation3 + $0x49] sm:$0xff] }
 0x4b2   : > { %9699 = vmatmul.mubr.msk.f32.gmra.mrb[4].mxu1 %vm311_vm1, %v11909_v41  ;;  %v6713_v41 = vld [vmem:[#allocation3 + $0x51] sm:$0xff] }
 0x4b3   : > { %9701 = vmatprep.mubr.msk.f32.mxu1 %vm311_vm1, %v11913_v42  ;;  %v6714_v42 = vld [vmem:[#allocation3 + $0x61] sm:$0xff] }
 0x4b6   : > { %9702 = vmatmul.mubr.msk.f32.gmra.mrb[6].mxu1 %vm311_vm1, %v11917_v1  ;;  %v6715_v1 = vld [vmem:[#allocation3 + $0x69] sm:$0xff] }
 0x4b7   : > { %9704 = vmatprep.mubr.msk.f32.mxu1 %vm311_vm1, %v11921_v28  ;;  %v6716_v28 = vld [vmem:[#allocation3 + $0x79] sm:$0xff] }
 0x4ba   : > { %9705 = vmatmul.mubr.msk.f32.gmra.mrb[8].mxu1 %vm311_vm1, %v11925_v30  ;;  %v6717_v30 = vld [vmem:[#allocation3 + $0x81] sm:$0xff] }
 0x4bb   : > { %9707 = vmatprep.mubr.msk.f32.mxu1 %vm311_vm1, %v11929_v63  ;;  %v6718_v63 = vld [vmem:[#allocation3 + $0x91] sm:$0xff] }
 0x4be   : > { %9708 = vmatmul.mubr.msk.f32.gmra.mrb[10].mxu1 %vm311_vm1, %v11933_v35  ;;  %v6719_v35 = vld [vmem:[#allocation3 + $0x99] sm:$0xff] }
 0x4bf   : > { %9710 = vmatprep.mubr.msk.f32.mxu1 %vm311_vm1, %v11937_v14  ;;  %v6720_v14 = vld [vmem:[#allocation3 + $0xa9] sm:$0xff] }
 0x4c2   : > { %9711 = vmatmul.mubr.msk.f32.gmra.mrb[12].mxu1 %vm311_vm1, %v11941_v12  ;;  %v13052_v12 = vld [vmem:[#allocation48_spill] sm:$0xff] }
 0x4c3   : > { %9713 = vmatprep.mubr.msk.f32.mxu1 %vm311_vm1, %v11945_v13  ;;  %v13053_v13 = vld [vmem:[#allocation52_spill] sm:$0xff] }
 0x4c6   : > { %9714 = vmatmul.mubr.msk.f32.gmra.mrb[14].mxu1 %vm311_vm1, %v11949_v5  ;;  %v13054_v5 = vld [vmem:[#allocation54_spill] sm:$0xff] }
 0x4c7   : > { %9716 = vmatprep.mubr.msk.f32.mxu1 %vm311_vm1, %v11953_v9  ;;  %v13055_v9 = vld [vmem:[#allocation58_spill] sm:$0xff] }
 0x4ca   : > { %9717 = vmatmul.mubr.msk.f32.gmra.mrb[16].mxu1 %vm311_vm1, %v11957_v16  ;;  %v7130_v16 = vld [vmem:[#allocation3 + $0x19a] sm:$0xff] }
 0x4cb   : > { %9719 = vmatprep.mubr.msk.f32.mxu1 %vm311_vm1, %v11961_v20 }
 0x4ce   : > { %9720 = vmatmul.mubr.msk.f32.gmra.mrb[18].mxu1 %vm311_vm1, %v11965_v21  ;;  %v12541_v21 = vld [vmem:[%s12719_s6] ss:$0 sm:$0xff] }
 0x4cf   : > { %9722 = vmatprep.mubr.msk.f32.mxu1 %vm311_vm1, %v11969_v23 }
 0x4d2   : > { %9723 = vmatmul.mubr.msk.f32.gmra.mrb[20].mxu1 %vm311_vm1, %v11973_v24 }
 0x4d3   : > { %9725 = vmatprep.mubr.msk.f32.mxu1 %vm311_vm1, %v11977_v26 }
 0x4d6   : > { %9726 = vmatmul.mubr.msk.f32.gmra.mrb[22].mxu1 %vm311_vm1, %v11981_v32 }
 0x4d7   : > { %9728 = vmatprep.mubr.msk.f32.mxu1 %vm311_vm1, %v11985_v36 }
 0x4da   : > { %9729 = vmatmul.mubr.msk.f32.gmra.mrb[24].mxu1 %vm311_vm1, %v11989_v38 }
 0x4db   : > { %9731 = vmatprep.mubr.msk.f32.mxu1 %vm311_vm1, %v11993_v40  ;;  %v13056_v40 = vld [vmem:[#allocation5_spill] sm:$0xff] }
 0x4de   : > { %9732 = vmatmul.mubr.msk.f32.gmra.mrb[26].mxu1 %vm311_vm1, %v11997_v55 }
 0x4df   : > { %9734 = vmatprep.mubr.msk.f32.mxu1 %vm311_vm1, %v12198_v59  ;;  %v13057_v59 = vld [vmem:[#allocation4_spill] sm:$0xff] }
 0x4e2   : > { %9735 = vmatmul.mubr.msk.f32.gmra.mrb[28].mxu1 %vm311_vm1, %v12202_v60 }
 0x4e3   : > { %9737 = vmatprep.mubr.msk.f32.mxu1 %vm311_vm1, %v6350_v61 }
 0x4e6   : > { %9738 = vmatmul.mubr.msk.f32.gmra.mrb[30].mxu1 %vm311_vm1, %v6351_v0 }
 0x4e7   : > { %9742 = vmatprep.mubr.msk.f32.mxu1 %vm311_vm1, %v6710_v54 }
 0x4ea   : > { %9743 = vmatmul.mubr.msk.f32.vlgmr.msra.gmra.mrb[0].mxu1 %vm311_vm1, %v6711_v2  ;;  %v13060_v2 = vld [vmem:[#allocation9_spill] sm:$0xff] }
 0x4eb   : > { %9791 = vmatpush3.msk.msra.mxu1 %vm563_vm0, %v8306_v49  ;;  %9745 = vmatprep.mubr.msk.f32.mxu1 %vm311_vm1, %v6712_v3 }
 0x4ee   : > { %9746 = vmatmul.mubr.msk.f32.gmra.mrb[2].mxu1 %vm311_vm1, %v6713_v41 }
 0x4ef   : > { %9748 = vmatprep.mubr.msk.f32.mxu1 %vm311_vm1, %v6714_v42 }
 0x4f2   : > { %9749 = vmatmul.mubr.msk.f32.gmra.mrb[4].mxu1 %vm311_vm1, %v6715_v1  ;;  %v13061_v1 = vld [vmem:[#allocation8_spill] sm:$0xff] }
 0x4f3   : > { %9751 = vmatprep.mubr.msk.f32.mxu1 %vm311_vm1, %v6716_v28 }
 0x4f6   : > { %9752 = vmatmul.mubr.msk.f32.gmra.mrb[6].mxu1 %vm311_vm1, %v6717_v30 }
 0x4f7   : > { %9754 = vmatprep.mubr.msk.f32.mxu1 %vm311_vm1, %v6718_v63 }
 0x4fa   : > { %9755 = vmatmul.mubr.msk.f32.gmra.mrb[8].mxu1 %vm311_vm1, %v6719_v35 }
 0x4fb   : > { %9757 = vmatprep.mubr.msk.f32.mxu1 %vm311_vm1, %v6720_v14 }
 0x4fe   : > { %9758 = vmatmul.mubr.msk.f32.gmra.mrb[10].mxu1 %vm311_vm1, %v11764_v19  ;;  %v6740_v19 = vld [vmem:[#allocation3 + $0x199] sm:$0xff] }
 0x4ff   : > { %9760 = vmatprep.mubr.msk.f32.mxu1 %vm311_vm1, %v11772_v27  ;;  %v6741_v27 = vld [vmem:[#allocation3 + $0x1a1] sm:$0xff] }
 0x502   : > { %9761 = vmatmul.mubr.msk.f32.gmra.mrb[12].mxu1 %vm311_vm1, %v11778_v37  ;;  %v13039_v37 = vld [vmem:[#allocation62_spill] sm:$0xff] }
 0x503   : > { %9763 = vmatprep.mubr.msk.f32.mxu1 %vm311_vm1, %v11786_v48  ;;  %v13040_v48 = vld [vmem:[#allocation64_spill] sm:$0xff] }
 0x506   : > { %9764 = vmatmul.mubr.msk.f32.gmra.mrb[14].mxu1 %vm311_vm1, %v11792_v50  ;;  %v13041_v50 = vld [vmem:[#allocation34_spill] sm:$0xff] }
 0x507   : > { %9766 = vmatprep.mubr.msk.f32.mxu1 %vm311_vm1, %v11800_v62  ;;  %v13042_v62 = vld [vmem:[#allocation35_spill] sm:$0xff] }
 0x50a   : > { %9767 = vmatmul.mubr.msk.f32.gmra.mrb[16].mxu1 %vm311_vm1, %v11806_v6  ;;  %v13043_v6 = vld [vmem:[#allocation36_spill] sm:$0xff] }
 0x50b   : > { %9769 = vmatprep.mubr.msk.f32.mxu1 %vm311_vm1, %v11814_v33  ;;  %v13044_v33 = vld [vmem:[#allocation37_spill] sm:$0xff] }
 0x50e   : > { %9770 = vmatmul.mubr.msk.f32.gmra.mrb[18].mxu1 %vm311_vm1, %v11820_v8  ;;  %v13045_v8 = vld [vmem:[#allocation66_spill] sm:$0xff] }
 0x50f   : > { %9772 = vmatprep.mubr.msk.f32.mxu1 %vm311_vm1, %v11828_v17  ;;  %v13046_v17 = vld [vmem:[#allocation67_spill] sm:$0xff] }
 0x512   : > { %9773 = vmatmul.mubr.msk.f32.gmra.mrb[20].mxu1 %vm311_vm1, %v11834_v22  ;;  %v13047_v22 = vld [vmem:[#allocation42_spill] sm:$0xff] }
 0x513   : > { %9775 = vmatprep.mubr.msk.f32.mxu1 %vm311_vm1, %v11842_v39  ;;  %v13048_v39 = vld [vmem:[#allocation43_spill] sm:$0xff] }
 0x516   : > { %9776 = vmatmul.mubr.msk.f32.gmra.mrb[22].mxu1 %vm311_vm1, %v11848_v44  ;;  %v13049_v44 = vld [vmem:[#allocation44_spill] sm:$0xff] }
 0x517   : > { %9778 = vmatprep.mubr.msk.f32.mxu1 %vm311_vm1, %v11853_v47  ;;  %v13050_v47 = vld [vmem:[#allocation45_spill] sm:$0xff] }
 0x51a   : > { %9779 = vmatmul.mubr.msk.f32.gmra.mrb[24].mxu1 %vm311_vm1, %v11858_v57  ;;  %v13051_v57 = vld [vmem:[#allocation46_spill] sm:$0xff] }
 0x51b   : > { %9781 = vmatprep.mubr.msk.f32.mxu1 %vm311_vm1, %v13011_v15 }
 0x51e   : > { %9782 = vmatmul.mubr.msk.f32.gmra.mrb[26].mxu1 %vm311_vm1, %v13012_v18 }
 0x51f   : > { %9784 = vmatprep.mubr.msk.f32.mxu1 %vm311_vm1, %v12271_v25 }
 0x522   : > { %9785 = vmatmul.mubr.msk.f32.gmra.mrb[28].mxu1 %vm311_vm1, %v12275_v31 }
 0x523   : > { %9787 = vmatprep.mubr.msk.f32.mxu1 %vm311_vm1, %v6740_v19 }
 0x526   : > { %9788 = vmatmul.mubr.msk.f32.gmra.mrb[30].mxu1 %vm311_vm1, %v6741_v27 }
 0x527   : > { %9792 = vmatprep.mubr.msk.f32.mxu1 %vm311_vm1, %v13015_v58 }
 0x52a   : > { %9793 = vmatmul.mubr.msk.f32.vlgmr.msra.gmra.mrb[0].mxu1 %vm311_vm1, %v13016_v7  ;;  %v13058_v7 = vld [vmem:[#allocation7_spill] sm:$0xff] }
 0x52b   : > { %9795 = vmatprep.mubr.msk.f32.mxu1 %vm311_vm1, %v13039_v37  ;;  %v13062_v37 = vld [vmem:[#allocation11_spill] sm:$0xff] }
 0x52e   : > { %9796 = vmatmul.mubr.msk.f32.gmra.mrb[2].mxu1 %vm311_vm1, %v13040_v48 }
 0x52f   : > { %9798 = vmatprep.mubr.msk.f32.mxu1 %vm311_vm1, %v13041_v50 }
 0x532   : > { %9799 = vmatmul.mubr.msk.f32.gmra.mrb[4].mxu1 %vm311_vm1, %v13042_v62 }
 0x533   : > { %9801 = vmatprep.mubr.msk.f32.mxu1 %vm311_vm1, %v13043_v6  ;;  %v13063_v6 = vld [vmem:[#allocation10_spill] sm:$0xff] }
 0x536   : > { %9802 = vmatmul.mubr.msk.f32.gmra.mrb[6].mxu1 %vm311_vm1, %v13044_v33 }
 0x537   : > { %9804 = vmatprep.mubr.msk.f32.mxu1 %vm311_vm1, %v13045_v8 }
 0x53a   : > { %9805 = vmatmul.mubr.msk.f32.gmra.mrb[8].mxu1 %vm311_vm1, %v13046_v17 }
 0x53b   : > { %9807 = vmatprep.mubr.msk.f32.mxu1 %vm311_vm1, %v13047_v22 }
 0x53e   : > { %9808 = vmatmul.mubr.msk.f32.gmra.mrb[10].mxu1 %vm311_vm1, %v13048_v39 }
 0x53f   : > { %9810 = vmatprep.mubr.msk.f32.mxu1 %vm311_vm1, %v13049_v44 }
 0x542   : > { %9811 = vmatmul.mubr.msk.f32.gmra.mrb[12].mxu1 %vm311_vm1, %v13050_v47 }
 0x543   : > { %9813 = vmatprep.mubr.msk.f32.mxu1 %vm311_vm1, %v13051_v57  ;;  %v13064_v57 = vld [vmem:[#allocation13_spill] sm:$0xff] }
 0x546   : > { %9814 = vmatmul.mubr.msk.f32.gmra.mrb[14].mxu1 %vm311_vm1, %v13030_v53 }
 0x547   : > { %9816 = vmatprep.mubr.msk.f32.mxu1 %vm311_vm1, %v13052_v12 }
 0x54a   : > { %9817 = vmatmul.mubr.msk.f32.gmra.mrb[16].mxu1 %vm311_vm1, %v13032_v52 }
 0x54b   : > { %9819 = vmatprep.mubr.msk.f32.mxu1 %vm311_vm1, %v13033_v11 }
 0x54e   : > { %9820 = vmatmul.mubr.msk.f32.gmra.mrb[18].mxu1 %vm311_vm1, %v13034_v34 }
 0x54f   : > { %9822 = vmatprep.mubr.msk.f32.mxu1 %vm311_vm1, %v13053_v13 }
 0x552   : > { %9823 = vmatmul.mubr.msk.f32.gmra.mrb[20].mxu1 %vm311_vm1, %v13036_v10  ;;  %v13059_v10 = vld [vmem:[#allocation6_spill] sm:$0xff] }
 0x553   : > { %9825 = vmatprep.mubr.msk.f32.mxu1 %vm311_vm1, %v13054_v5 }
 0x556   : > { %9826 = vmatmul.mubr.msk.f32.gmra.mrb[22].mxu1 %vm311_vm1, %v12112_v51  ;;  %v7131_v51 = vld [vmem:[#allocation3 + $0x1a2] sm:$0xff] }
 0x557   : > { %9828 = vmatprep.mubr.msk.f32.mxu1 %vm311_vm1, %v13038_v43 }
 0x55a   : > { %9829 = vmatmul.mubr.msk.f32.gmra.mrb[24].mxu1 %vm311_vm1, %v12120_v4  ;;  %v12536_v4 = vld [vmem:[%s12718_s5] ss:$0 sm:$0xff] }
 0x55b   : > { %9831 = vmatprep.mubr.msk.f32.mxu1 %vm311_vm1, %v13055_v9  ;;  %v13065_v9 = vld [vmem:[#allocation12_spill] sm:$0xff] }
 0x55e   : > { %9832 = vmatmul.mubr.msk.f32.gmra.mrb[26].mxu1 %vm311_vm1, %v12128_v56 }
 0x55f   : > { %9834 = vmatprep.mubr.msk.f32.mxu1 %vm311_vm1, %v12344_v29 }
 0x562   : > { %9835 = vmatmul.mubr.msk.f32.gmra.mrb[28].mxu1 %vm311_vm1, %v12348_v45 }
 0x563   : > { %9837 = vmatprep.mubr.msk.f32.mxu1 %vm311_vm1, %v7130_v16 }
 0x566   : > { %9838 = vmatmul.mubr.msk.f32.gmra.mrb[30].mxu1 %vm311_vm1, %v7131_v51 }
 0x5fd   : > { %v9794_v20 = vpop.f32.mrb[0].mxu1 }
 0x5fe   : > { %v7498_v23 = vmul.f32 %v9794_v20, %v12536_v4  ;;  %v7299_v24 = vpop.f32.mrb[1].mxu1 }
 0x5ff   : > { %v7497_v26 = vmul.f32 %v12536_v4, %v7299_v24 }
 0x600   : > { %v7537_v32 = vadd.f32 %v12541_v21, %v7498_v23 }
 0x601   : > { %v7536_v36 = vadd.f32 %v12541_v21, %v7497_v26  ;;  %v9797_v38 = vpop.f32.mrb[2].mxu1 }
 0x602   : > { %v7569_v55 = vadd.f32 %v7537_v32, %v13056_v40  ;;  %v7500_v49 = vmul.f32 %v9797_v38, %v12536_v4  ;;  %v7309_v56 = vpop.f32.mrb[3].mxu1 }
 0x603   : > { %v7568_v60 = vadd.f32 %v7536_v36, %v13057_v59  ;;  %v7499_v15 = vmul.f32 %v12536_v4, %v7309_v56  ;;  %v13066_v36 = vld [vmem:[#allocation15_spill] sm:$0xff] }
 0x604   : > { %v7601_v18 = vmax.f32 %v7569_v55, 0.0  ;;  %v7539_v25 = vadd.f32 %v12541_v21, %v7500_v49  ;;  %v13067_v49 = vld [vmem:[#allocation14_spill] sm:$0xff] }
 0x605   : > { %v7600_v31 = vmax.f32 %v7568_v60, 0.0  ;;  %v7538_v46 = vadd.f32 %v12541_v21, %v7499_v15  ;;  %v9800_v58 = vpop.f32.mrb[4].mxu1 }
 0x606   : > { %7633 = vst.msk [vmem:[%s12554_s13 + $0x8] sm:$0xff] %vm311_vm1, %v7601_v18  ;;  %v7571_v11 = vadd.f32 %v7539_v25, %v13058_v7  ;;  %v7502_v34 = vmul.f32 %v9800_v58, %v12536_v4  ;;  %v7319_v29 = vpop.f32.mrb[5].mxu1 }
 0x607   : > { %7632 = vst.msk [vmem:[%s12554_s13] sm:$0xff] %vm311_vm1, %v7600_v31  ;;  %v7570_v45 = vadd.f32 %v7538_v46, %v13059_v10  ;;  %v7501_v53 = vmul.f32 %v12536_v4, %v7319_v29  ;;  %v13068_v46 = vld [vmem:[#allocation17_spill] sm:$0xff] }
 0x608   : > { %v7603_v43 = vmax.f32 %v7571_v11, 0.0  ;;  %v7541_v52 = vadd.f32 %v12541_v21, %v7502_v34  ;;  %v13069_v34 = vld [vmem:[#allocation16_spill] sm:$0xff] }
 0x609   : > { %v7602_v61 = vmax.f32 %v7570_v45, 0.0  ;;  %v7540_v0 = vadd.f32 %v12541_v21, %v7501_v53  ;;  %v9803_v54 = vpop.f32.mrb[6].mxu1 }
 0x60a   : > { %7635 = vst.msk [vmem:[%s12554_s13 + $0x18] sm:$0xff] %vm311_vm1, %v7603_v43  ;;  %v7573_v3 = vadd.f32 %v7541_v52, %v13060_v2  ;;  %v7504_v41 = vmul.f32 %v9803_v54, %v12536_v4  ;;  %v7329_v42 = vpop.f32.mrb[7].mxu1 }
 0x60b   : > { %7634 = vst.msk [vmem:[%s12554_s13 + $0x10] sm:$0xff] %vm311_vm1, %v7602_v61  ;;  %v7572_v28 = vadd.f32 %v7540_v0, %v13061_v1  ;;  %v7503_v30 = vmul.f32 %v12536_v4, %v7329_v42  ;;  %v13070_v0 = vld [vmem:[#allocation19_spill] sm:$0xff] }
 0x60c   : > { %v7605_v63 = vmax.f32 %v7573_v3, 0.0  ;;  %v7543_v35 = vadd.f32 %v12541_v21, %v7504_v41  ;;  %v13071_v41 = vld [vmem:[#allocation18_spill] sm:$0xff] }
 0x60d   : > { %v7604_v14 = vmax.f32 %v7572_v28, 0.0  ;;  %v7542_v19 = vadd.f32 %v12541_v21, %v7503_v30  ;;  %v9806_v27 = vpop.f32.mrb[8].mxu1 }
 0x60e   : > { %7637 = vst.msk [vmem:[%s12554_s13 + $0x28] sm:$0xff] %vm311_vm1, %v7605_v63  ;;  %v7575_v48 = vadd.f32 %v7543_v35, %v13062_v37  ;;  %v7506_v50 = vmul.f32 %v9806_v27, %v12536_v4  ;;  %v7339_v62 = vpop.f32.mrb[9].mxu1 }
 0x60f   : > { %7636 = vst.msk [vmem:[%s12554_s13 + $0x20] sm:$0xff] %vm311_vm1, %v7604_v14  ;;  %v7574_v33 = vadd.f32 %v7542_v19, %v13063_v6  ;;  %v7505_v8 = vmul.f32 %v12536_v4, %v7339_v62  ;;  %v13072_v19 = vld [vmem:[#allocation21_spill] sm:$0xff] }
 0x610   : > { %v7607_v17 = vmax.f32 %v7575_v48, 0.0  ;;  %v7545_v22 = vadd.f32 %v12541_v21, %v7506_v50  ;;  %v13073_v50 = vld [vmem:[#allocation20_spill] sm:$0xff] }
 0x611   : > { %v7606_v39 = vmax.f32 %v7574_v33, 0.0  ;;  %v7544_v44 = vadd.f32 %v12541_v21, %v7505_v8  ;;  %v9809_v47 = vpop.f32.mrb[10].mxu1 }
 0x612   : > { %7639 = vst.msk [vmem:[%s12554_s13 + $0x38] sm:$0xff] %vm311_vm1, %v7607_v17  ;;  %v7577_v12 = vadd.f32 %v7545_v22, %v13064_v57  ;;  %v7508_v13 = vmul.f32 %v9809_v47, %v12536_v4  ;;  %v7349_v5 = vpop.f32.mrb[11].mxu1 }
 0x613   : > { %7638 = vst.msk [vmem:[%s12554_s13 + $0x30] sm:$0xff] %vm311_vm1, %v7606_v39  ;;  %v7576_v16 = vadd.f32 %v7544_v44, %v13065_v9  ;;  %v7507_v51 = vmul.f32 %v12536_v4, %v7349_v5  ;;  %v13074_v44 = vld [vmem:[#allocation23_spill] sm:$0xff] }
 0x614   : > { %v7609_v20 = vmax.f32 %v7577_v12, 0.0  ;;  %v7547_v23 = vadd.f32 %v12541_v21, %v7508_v13  ;;  %v13075_v13 = vld [vmem:[#allocation22_spill] sm:$0xff] }
 0x615   : > { %v7608_v24 = vmax.f32 %v7576_v16, 0.0  ;;  %v7546_v26 = vadd.f32 %v12541_v21, %v7507_v51  ;;  %v9812_v32 = vpop.f32.mrb[12].mxu1 }
 0x616   : > { %7641 = vst.msk [vmem:[%s12554_s13 + $0x48] sm:$0xff] %vm311_vm1, %v7609_v20  ;;  %v7579_v38 = vadd.f32 %v7547_v23, %v13066_v36  ;;  %v7510_v40 = vmul.f32 %v9812_v32, %v12536_v4  ;;  %v7359_v55 = vpop.f32.mrb[13].mxu1 }
 0x617   : > { %7640 = vst.msk [vmem:[%s12554_s13 + $0x40] sm:$0xff] %vm311_vm1, %v7608_v24  ;;  %v7578_v56 = vadd.f32 %v7546_v26, %v13067_v49  ;;  %v7509_v59 = vmul.f32 %v12536_v4, %v7359_v55  ;;  %v13076_v26 = vld [vmem:[#allocation25_spill] sm:$0xff] }
 0x618   : > { %v7611_v60 = vmax.f32 %v7579_v38, 0.0  ;;  %v7549_v15 = vadd.f32 %v12541_v21, %v7510_v40  ;;  %v13077_v40 = vld [vmem:[#allocation24_spill] sm:$0xff] }
 0x619   : > { %v7610_v18 = vmax.f32 %v7578_v56, 0.0  ;;  %v7548_v25 = vadd.f32 %v12541_v21, %v7509_v59  ;;  %v9815_v31 = vpop.f32.mrb[14].mxu1 }
 0x61a   : > { %7643 = vst.msk [vmem:[%s12554_s13 + $0x58] sm:$0xff] %vm311_vm1, %v7611_v60  ;;  %v7581_v58 = vadd.f32 %v7549_v15, %v13068_v46  ;;  %v7512_v7 = vmul.f32 %v9815_v31, %v12536_v4  ;;  %v7369_v11 = vpop.f32.mrb[15].mxu1 }
 0x61b   : > { %7642 = vst.msk [vmem:[%s12554_s13 + $0x50] sm:$0xff] %vm311_vm1, %v7610_v18  ;;  %v7580_v29 = vadd.f32 %v7548_v25, %v13069_v34  ;;  %v7511_v10 = vmul.f32 %v12536_v4, %v7369_v11  ;;  %v13078_v25 = vld [vmem:[#allocation27_spill] sm:$0xff] }
 0x61c   : > { %v7613_v45 = vmax.f32 %v7581_v58, 0.0  ;;  %v7551_v53 = vadd.f32 %v12541_v21, %v7512_v7  ;;  %v13079_v7 = vld [vmem:[#allocation26_spill] sm:$0xff] }
 0x61d   : > { %v7612_v43 = vmax.f32 %v7580_v29, 0.0  ;;  %v7550_v52 = vadd.f32 %v12541_v21, %v7511_v10  ;;  %v9818_v61 = vpop.f32.mrb[16].mxu1 }
 0x61e   : > { %7645 = vst.msk [vmem:[%s12554_s13 + $0x68] sm:$0xff] %vm311_vm1, %v7613_v45  ;;  %v7583_v54 = vadd.f32 %v7551_v53, %v13070_v0  ;;  %v7514_v2 = vmul.f32 %v9818_v61, %v12536_v4  ;;  %v7379_v3 = vpop.f32.mrb[17].mxu1 }
 0x61f   : > { %7644 = vst.msk [vmem:[%s12554_s13 + $0x60] sm:$0xff] %vm311_vm1, %v7612_v43  ;;  %v7582_v42 = vadd.f32 %v7550_v52, %v13071_v41  ;;  %v7513_v1 = vmul.f32 %v12536_v4, %v7379_v3  ;;  %v13080_v52 = vld [vmem:[#allocation29_spill] sm:$0xff] }
 0x620   : > { %v7615_v28 = vmax.f32 %v7583_v54, 0.0  ;;  %v7553_v30 = vadd.f32 %v12541_v21, %v7514_v2  ;;  %v13081_v2 = vld [vmem:[#allocation28_spill] sm:$0xff] }
 0x621   : > { %v7614_v63 = vmax.f32 %v7582_v42, 0.0  ;;  %v7552_v35 = vadd.f32 %v12541_v21, %v7513_v1  ;;  %v9821_v14 = vpop.f32.mrb[18].mxu1 }
 0x622   : > { %7647 = vst.msk [vmem:[%s12554_s13 + $0x78] sm:$0xff] %vm311_vm1, %v7615_v28  ;;  %v7585_v27 = vadd.f32 %v7553_v30, %v13072_v19  ;;  %v7516_v37 = vmul.f32 %v9821_v14, %v12536_v4  ;;  %v7389_v48 = vpop.f32.mrb[19].mxu1 }
 0x623   : > { %7646 = vst.msk [vmem:[%s12554_s13 + $0x70] sm:$0xff] %vm311_vm1, %v7614_v63  ;;  %v7584_v62 = vadd.f32 %v7552_v35, %v13073_v50  ;;  %v7515_v6 = vmul.f32 %v12536_v4, %v7389_v48  ;;  %v13082_v35 = vld [vmem:[#allocation31_spill] sm:$0xff] }
 0x624   : > { %v7617_v33 = vmax.f32 %v7585_v27, 0.0  ;;  %v7555_v8 = vadd.f32 %v12541_v21, %v7516_v37  ;;  %v13083_v37 = vld [vmem:[#allocation30_spill] sm:$0xff] }
 0x625   : > { %v7616_v17 = vmax.f32 %v7584_v62, 0.0  ;;  %v7554_v22 = vadd.f32 %v12541_v21, %v7515_v6  ;;  %v9824_v39 = vpop.f32.mrb[20].mxu1 }
 0x626   : > { %7649 = vst.msk [vmem:[%s12554_s13 + $0x88] sm:$0xff] %vm311_vm1, %v7617_v33  ;;  %v7587_v47 = vadd.f32 %v7555_v8, %v13074_v44  ;;  %v7518_v57 = vmul.f32 %v9824_v39, %v12536_v4  ;;  %v7399_v12 = vpop.f32.mrb[21].mxu1 }
 0x627   : > { %7648 = vst.msk [vmem:[%s12554_s13 + $0x80] sm:$0xff] %vm311_vm1, %v7616_v17  ;;  %v7586_v5 = vadd.f32 %v7554_v22, %v13075_v13  ;;  %v7517_v9 = vmul.f32 %v12536_v4, %v7399_v12  ;;  %v13084_v22 = vld [vmem:[#allocation33_spill] sm:$0xff] }
 0x628   : > { %v7619_v16 = vmax.f32 %v7587_v47, 0.0  ;;  %v7557_v51 = vadd.f32 %v12541_v21, %v7518_v57  ;;  %v13085_v57 = vld [vmem:[#allocation32_spill] sm:$0xff] }
 0x629   : > { %v7618_v20 = vmax.f32 %v7586_v5, 0.0  ;;  %v7556_v23 = vadd.f32 %v12541_v21, %v7517_v9  ;;  %v9827_v24 = vpop.f32.mrb[22].mxu1 }
 0x62a   : > { %7651 = vst.msk [vmem:[%s12554_s13 + $0x98] sm:$0xff] %vm311_vm1, %v7619_v16  ;;  %v7589_v32 = vadd.f32 %v7557_v51, %v13076_v26  ;;  %v7520_v36 = vmul.f32 %v9827_v24, %v12536_v4  ;;  %v7409_v38 = vpop.f32.mrb[23].mxu1  ;;  %v13087_v24 = vld [vmem:[#allocation38_spill] sm:$0xff] }
 0x62b   : > { %7650 = vst.msk [vmem:[%s12554_s13 + $0x90] sm:$0xff] %vm311_vm1, %v7618_v20  ;;  %v7588_v55 = vadd.f32 %v7556_v23, %v13077_v40  ;;  %v7519_v49 = vmul.f32 %v12536_v4, %v7409_v38  ;;  %v13086_v20 = vld [vmem:[#allocation39_spill] sm:$0xff] }
 0x62c   : > { %v7621_v56 = vmax.f32 %v7589_v32, 0.0  ;;  %v7559_v59 = vadd.f32 %v12541_v21, %v7520_v36 }
 0x62d   : > { %v7620_v60 = vmax.f32 %v7588_v55, 0.0  ;;  %v7558_v15 = vadd.f32 %v12541_v21, %v7519_v49  ;;  %v9830_v18 = vpop.f32.mrb[24].mxu1 }
 0x62e   : > { %7653 = vst.msk [vmem:[%s12554_s13 + $0xa8] sm:$0xff] %vm311_vm1, %v7621_v56  ;;  %v7591_v31 = vadd.f32 %v7559_v59, %v13078_v25  ;;  %v7522_v46 = vmul.f32 %v9830_v18, %v12536_v4  ;;  %v7419_v58 = vpop.f32.mrb[25].mxu1 }
 0x62f   : > { %7652 = vst.msk [vmem:[%s12554_s13 + $0xa0] sm:$0xff] %vm311_vm1, %v7620_v60  ;;  %v7590_v11 = vadd.f32 %v7558_v15, %v13079_v7  ;;  %v7521_v34 = vmul.f32 %v12536_v4, %v7419_v58 }
 0x630   : > { %v7623_v29 = vmax.f32 %v7591_v31, 0.0  ;;  %v7561_v10 = vadd.f32 %v12541_v21, %v7522_v46 }
 0x631   : > { %v7622_v45 = vmax.f32 %v7590_v11, 0.0  ;;  %v7560_v53 = vadd.f32 %v12541_v21, %v7521_v34  ;;  %v9833_v43 = vpop.f32.mrb[26].mxu1 }
 0x632   : > { %7655 = vst.msk [vmem:[%s12554_s13 + $0xb8] sm:$0xff] %vm311_vm1, %v7623_v29  ;;  %v7593_v61 = vadd.f32 %v7561_v10, %v13080_v52  ;;  %v7524_v0 = vmul.f32 %v9833_v43, %v12536_v4  ;;  %v7429_v54 = vpop.f32.mrb[27].mxu1 }
 0x633   : > { %7654 = vst.msk [vmem:[%s12554_s13 + $0xb0] sm:$0xff] %vm311_vm1, %v7622_v45  ;;  %v7592_v3 = vadd.f32 %v7560_v53, %v13081_v2  ;;  %v7523_v41 = vmul.f32 %v12536_v4, %v7429_v54 }
 0x634   : > { %v7625_v42 = vmax.f32 %v7593_v61, 0.0  ;;  %v7563_v1 = vadd.f32 %v12541_v21, %v7524_v0 }
 0x635   : > { %v7624_v28 = vmax.f32 %v7592_v3, 0.0  ;;  %v7562_v30 = vadd.f32 %v12541_v21, %v7523_v41  ;;  %v9836_v63 = vpop.f32.mrb[28].mxu1 }
 0x636   : > { %7657 = vst.msk [vmem:[%s12554_s13 + $0xc8] sm:$0xff] %vm311_vm1, %v7625_v42  ;;  %v7595_v14 = vadd.f32 %v7563_v1, %v13082_v35  ;;  %v7526_v19 = vmul.f32 %v9836_v63, %v12536_v4  ;;  %v7439_v27 = vpop.f32.mrb[29].mxu1 }
 0x637   : > { %7656 = vst.msk [vmem:[%s12554_s13 + $0xc0] sm:$0xff] %vm311_vm1, %v7624_v28  ;;  %v7594_v48 = vadd.f32 %v7562_v30, %v13083_v37  ;;  %v7525_v50 = vmul.f32 %v12536_v4, %v7439_v27 }
 0x638   : > { %v7627_v62 = vmax.f32 %v7595_v14, 0.0  ;;  %v7565_v6 = vadd.f32 %v12541_v21, %v7526_v19 }
 0x639   : > { %v7626_v33 = vmax.f32 %v7594_v48, 0.0  ;;  %v7564_v8 = vadd.f32 %v12541_v21, %v7525_v50  ;;  %v9839_v17 = vpop.f32.mrb[30].mxu1 }
 0x63a   : > { %7659 = vst.msk [vmem:[%s12554_s13 + $0xd8] sm:$0xff] %vm311_vm1, %v7627_v62  ;;  %v7597_v39 = vadd.f32 %v7565_v6, %v13084_v22  ;;  %v7528_v44 = vmul.f32 %v9839_v17, %v12536_v4  ;;  %v7449_v47 = vpop.f32.mrb[31].mxu1 }
 0x63b   : > { %7658 = vst.msk [vmem:[%s12554_s13 + $0xd0] sm:$0xff] %vm311_vm1, %v7626_v33  ;;  %v7596_v12 = vadd.f32 %v7564_v8, %v13085_v57  ;;  %v7527_v13 = vmul.f32 %v12536_v4, %v7449_v47 }
 0x63c   : > { %v7629_v5 = vmax.f32 %v7597_v39, 0.0  ;;  %v7567_v9 = vadd.f32 %v12541_v21, %v7528_v44 }
 0x63d   : > { %v7628_v16 = vmax.f32 %v7596_v12, 0.0  ;;  %v7566_v51 = vadd.f32 %v12541_v21, %v7527_v13 }
 0x63e   : > { %7661 = vst.msk [vmem:[%s12554_s13 + $0xe8] sm:$0xff] %vm311_vm1, %v7629_v5  ;;  %v7599_v23 = vadd.f32 %v7567_v9, %v13086_v20 }
 0x63f   : > { %7660 = vst.msk [vmem:[%s12554_s13 + $0xe0] sm:$0xff] %vm311_vm1, %v7628_v16  ;;  %v7598_v26 = vadd.f32 %v7566_v51, %v13087_v24 }
 0x640   : > { %v7631_v32 = vmax.f32 %v7599_v23, 0.0 }
 0x641   : > { %v7630_v36 = vmax.f32 %v7598_v26, 0.0 }
 0x642   : > { %7663 = vst.msk [vmem:[%s12554_s13 + $0xf8] sm:$0xff] %vm311_vm1, %v7631_v32 }
 0x643   : > { %7662 = vst.msk [vmem:[%s12554_s13 + $0xf0] sm:$0xff] %vm311_vm1, %v7630_v36 }
 0x644 PF: > { %s17_s24 = sadd.s32 1, %s10367_s24  }
 0x645   : > { %p14_p4 = scmp.ge.s32.totalorder %s17_s24, 4  }
 0x647   :  { %16 = sbr.rel (!%p14_p4) target bundleno = 1 (0x1), region = 98 }

</bundles_post_ra>
